<compile_context>
chip_gen: v7x
topology: tpu7x:2x2x1
jax: 0.10.0
libtpu: 0.0.40
codegen_flags: <defaults>
</compile_context>

<pallas_src>
import functools

import jax
import jax.numpy as jnp
from jax import lax
from jax.experimental import pallas as pl
from jax.experimental.pallas import tpu as pltpu


def _round_up(x, m):
    return (x + m - 1) // m * m


# --------------------------------------------------------------------------
# Generation-aware VMEM budget.
# --------------------------------------------------------------------------
@functools.lru_cache(maxsize=None)
def _vmem_limit_bytes():
    cap = 64 * 1024 * 1024            # conservative fallback (v7x physical)
    try:
        info = pltpu.get_tpu_info()
        cap = int(getattr(info, "vmem_capacity_bytes", cap) or cap)
    except Exception:
        pass
    # ~48 MiB scoped on v7x (64 MiB physical), 96 MiB on v5e/v6e (128 MiB).
    return min(cap * 3 // 4, 96 * 1024 * 1024)


def _tile_budget_bytes():
    # Headroom for Mosaic internal scratch / pipeline bookkeeping.
    return _vmem_limit_bytes() * 6 // 10


# --------------------------------------------------------------------------
# Fused GEMM: out = act((A @ W) * scale + bias [+ residual])   (bf16 out)
# --------------------------------------------------------------------------
def _gemm_kernel_single(*refs, use_res, activation):
    if use_res:
        a_ref, w_ref, s_ref, b_ref, r_ref, o_ref = refs
    else:
        a_ref, w_ref, s_ref, b_ref, o_ref = refs
    acc = jnp.dot(a_ref[...], w_ref[...], preferred_element_type=jnp.float32)
    acc = acc * s_ref[...] + b_ref[...]
    if use_res:
        acc = acc + r_ref[...].astype(jnp.float32)
    if activation == "leaky_relu":
        acc = jnp.where(acc >= 0, acc, 0.01 * acc)
    o_ref[...] = acc.astype(o_ref.dtype)


def _gemm_kernel_multi(*refs, use_res, activation):
    if use_res:
        a_ref, w_ref, s_ref, b_ref, r_ref, o_ref, acc_ref = refs
    else:
        a_ref, w_ref, s_ref, b_ref, o_ref, acc_ref = refs

    k = pl.program_id(2)

    @pl.when(k == 0)
    def _():
        acc_ref[...] = jnp.zeros_like(acc_ref)

    acc_ref[...] += jnp.dot(a_ref[...], w_ref[...],
                            preferred_element_type=jnp.float32)

    @pl.when(k == pl.num_programs(2) - 1)
    def _():
        acc = acc_ref[...] * s_ref[...] + b_ref[...]
        if use_res:
            acc = acc + r_ref[...].astype(jnp.float32)
        if activation == "leaky_relu":
            acc = jnp.where(acc >= 0, acc, 0.01 * acc)
        o_ref[...] = acc.astype(o_ref.dtype)


def _select_tiles(M, K, Np, use_res, budget):
    """Pick (tm, tk, tn, multi_k) against the VMEM budget."""
    # Lane-dense N tile; prefer 256-multiples (v6e/v7x 256x256 MXU).
    if Np <= 512:
        tn = Np
    elif Np % 512 == 0:
        tn = 512
    elif Np % 256 == 0:
        tn = 256
    else:
        tn = 128

    def fits(tm, tk, multi_k):
        b = 2 * 2 * (tm * tk + tk * tn + tm * tn)     # dbl-buffered bf16 A/W/out
        if use_res:
            b += 2 * 2 * tm * tn                      # bf16 residual, dbl buf
        if multi_k:
            b += 4 * tm * tn                          # f32 accumulator scratch
        b += 2 * 2 * 4 * tn                           # scale / bias
        return b <= budget

    tm_cands = ([M] if M <= 2048 else []) + \
               [t for t in (2048, 1024, 512, 256, 128, 64, 32, 16) if t < M]

    choice = None
    for tm in tm_cands:                               # prefer full-K single pass
        if fits(tm, K, False):
            choice = (tm, K, False)
            break
    if choice is None:                                # fallback: split K
        Kp = _round_up(K, 128)
        for tk in (512, 256, 128):
            if Kp % tk:
                continue
            for tm in tm_cands:
                if fits(tm, tk, True):
                    choice = (tm, tk, True)
                    break
            if choice is not None:
                break
    if choice is None:
        choice = (16, 128, True)

    tm, tk, multi_k = choice
    # Expose >=2 parallel grid blocks per layer so both v7x TensorCores work.
    if pl.cdiv(M, tm) * (Np // tn) < 2:
        if Np >= 256 and Np % 256 == 0 and Np // tn == 1:
            tn = Np // 2
        elif tm == M and M >= 64 and M % 32 == 0:
            tm = M // 2
    return tm, tk, tn, multi_k


def fused_gemm(a, w, scale, bias, residual=None, activation="none"):
    """act((A[M,K] @ W[K,N]) * scale + bias [+res]) -> bf16 [M, round_up(N,128)]."""
    M, K = a.shape
    Kw, N = w.shape
    assert K == Kw
    use_res = residual is not None

    Np = _round_up(N, 128)
    budget = _tile_budget_bytes()
    tm, tk, tn, multi_k = _select_tiles(M, K, Np, use_res, budget)

    a_bf = a.astype(jnp.bfloat16)
    w_bf = w.astype(jnp.bfloat16)
    if multi_k:
        Kp = _round_up(K, tk)
        if Kp != K:                                   # rare fallback path only
            a_bf = jnp.pad(a_bf, ((0, 0), (0, Kp - K)))
            w_bf = jnp.pad(w_bf, ((0, Kp - K), (0, 0)))
    else:
        Kp = K                                        # full-K: no padding at all
    if Np != N:
        w_bf = jnp.pad(w_bf, ((0, 0), (0, Np - N)))
    s_p = jnp.asarray(scale, jnp.float32).reshape(1, N)
    b_p = jnp.asarray(bias, jnp.float32).reshape(1, N)
    if Np != N:
        s_p = jnp.pad(s_p, ((0, 0), (0, Np - N)))
        b_p = jnp.pad(b_p, ((0, 0), (0, Np - N)))

    args = [a_bf, w_bf, s_p, b_p]
    if multi_k:
        in_specs = [
            pl.BlockSpec((tm, tk), lambda i, j, k: (i, k)),
            pl.BlockSpec((tk, tn), lambda i, j, k: (k, j)),
            pl.BlockSpec((1, tn), lambda i, j, k: (0, j)),
            pl.BlockSpec((1, tn), lambda i, j, k: (0, j)),
        ]
        res_spec = pl.BlockSpec((tm, tn), lambda i, j, k: (i, j))
        out_spec = pl.BlockSpec((tm, tn), lambda i, j, k: (i, j))
        grid = (pl.cdiv(M, tm), Np // tn, Kp // tk)
        semantics = ("parallel", "parallel", "arbitrary")
        scratch = [pltpu.VMEM((tm, tn), jnp.float32)]
        kernel = functools.partial(_gemm_kernel_multi, use_res=use_res,
                                   activation=activation)
    else:
        in_specs = [
            pl.BlockSpec((tm, Kp), lambda i, j: (i, 0)),
            pl.BlockSpec((Kp, tn), lambda i, j: (0, j)),
            pl.BlockSpec((1, tn), lambda i, j: (0, j)),
            pl.BlockSpec((1, tn), lambda i, j: (0, j)),
        ]
        res_spec = pl.BlockSpec((tm, tn), lambda i, j: (i, j))
        out_spec = pl.BlockSpec((tm, tn), lambda i, j: (i, j))
        grid = (pl.cdiv(M, tm), Np // tn)
        semantics = ("parallel", "parallel")
        scratch = []
        kernel = functools.partial(_gemm_kernel_single, use_res=use_res,
                                   activation=activation)

    if use_res:
        r_bf = residual.astype(jnp.bfloat16)
        if r_bf.shape[1] != Np:
            # TODO(synk): keep the residual chain in padded (M, Np) layout to
            #             avoid this pad copy on the C<128 stage.
            r_bf = jnp.pad(r_bf, ((0, 0), (0, Np - r_bf.shape[1])))
        args.append(r_bf)
        in_specs.append(res_spec)

    flops = 2 * M * Kp * Np
    bytes_accessed = (M * Kp + Kp * Np + M * Np * (2 if use_res else 1)) * 2 \
                     + 2 * Np * 4 * 2

    out = pl.pallas_call(
        kernel,
        out_shape=jax.ShapeDtypeStruct((M, Np), jnp.bfloat16),
        grid=grid,
        in_specs=in_specs,
        out_specs=out_spec,
        scratch_shapes=scratch,
        compiler_params=pltpu.CompilerParams(
            dimension_semantics=semantics,
            vmem_limit_bytes=_vmem_limit_bytes()),
        cost_estimate=pl.CostEstimate(flops=flops, transcendentals=0,
                                      bytes_accessed=bytes_accessed),
    )(*args)
    return out


# --------------------------------------------------------------------------
# MaxPool 3x3 / stride 2 / pad 1: nine shifted strided slices, reduced in a
# single lane-dense (rows, 128) elementwise-max Pallas kernel.
# --------------------------------------------------------------------------
def _max9_kernel(*refs):
    srcs, o_ref = refs[:-1], refs[-1]
    v = srcs[0][...]
    for r in srcs[1:]:
        v = jnp.maximum(v, r[...])
    o_ref[...] = v


def maxpool3x3_s2_p1(x):
    # TODO(synk): gather the 3x3/2 windows inside the kernel (or fuse the pool
    #             into the gate conv epilogue) instead of materializing the 9
    #             shifted slices in HBM.
    N, H, W, C = x.shape
    Ho = (H + 2 - 3) // 2 + 1
    Wo = (W + 2 - 3) // 2 + 1
    xp = jnp.pad(x, ((0, 0), (1, 1), (1, 1), (0, 0)),
                 constant_values=-jnp.inf)
    M = N * Ho * Wo
    L = M * C
    Lp = _round_up(L, 128)
    rows = Lp // 128

    slices = []
    for i in range(3):
        for j in range(3):
            s = lax.slice(xp, (0, i, j, 0),
                          (N, i + (Ho - 1) * 2 + 1, j + (Wo - 1) * 2 + 1, C),
                          (1, 2, 2, 1)).reshape(-1)
            if Lp != L:
                s = jnp.pad(s, (0, Lp - L))
            # lane-dense layout: elementwise max commutes with the reshape.
            slices.append(s.reshape(rows, 128))

    tr = rows if rows <= 2048 else 2048
    out = pl.pallas_call(
        _max9_kernel,
        out_shape=jax.ShapeDtypeStruct((rows, 128), x.dtype),
        grid=(pl.cdiv(rows, tr),),
        in_specs=[pl.BlockSpec((tr, 128), lambda i: (i, 0))] * 9,
        out_specs=pl.BlockSpec((tr, 128), lambda i: (i, 0)),
        compiler_params=pltpu.CompilerParams(
            dimension_semantics=("parallel",),
            vmem_limit_bytes=_vmem_limit_bytes()),
    )(*slices)
    return out.reshape(-1)[:L].reshape(N, Ho, Wo, C)


# --------------------------------------------------------------------------
# Fused classifier head: AdaptiveAvgPool(1,1) + fc1 + LeakyReLU + fc2 + softmax
# --------------------------------------------------------------------------
def _head_kernel(x_ref, w1_ref, b1_ref, w2_ref, b2_ref, o_ref, *, inv_hw):
    pooled = jnp.sum(x_ref[...], axis=1) * inv_hw                 # avg pool
    h = jnp.dot(pooled, w1_ref[...],
                preferred_element_type=jnp.float32) + b1_ref[...]
    h = jnp.where(h >= 0, h, 0.01 * h)                            # LeakyReLU
    logits = jnp.dot(h, w2_ref[...],
                     preferred_element_type=jnp.float32) + b2_ref[...]
    mx = jnp.max(logits, axis=-1, keepdims=True)
    e = jnp.exp(logits - mx)
    inv = pl.reciprocal(jnp.sum(e, axis=-1, keepdims=True), approx=False)
    o_ref[...] = (e * inv).astype(o_ref.dtype)


def decoder_head(x, w1, b1, w2, b2):
    N, HW, C = x.shape
    Ci, Ch = w1.shape
    Ch2, n_classes = w2.shape
    assert C == Ci and Ch == Ch2
    return pl.pallas_call(
        functools.partial(_head_kernel, inv_hw=1.0 / HW),
        out_shape=jax.ShapeDtypeStruct((N, n_classes), jnp.float32),
        grid=(1,),
        in_specs=[
            pl.BlockSpec((N, HW, C), lambda i: (0, 0, 0)),
            pl.BlockSpec((C, Ch), lambda i: (0, 0)),
            pl.BlockSpec((1, Ch), lambda i: (0, 0)),
            pl.BlockSpec((Ch, n_classes), lambda i: (0, 0)),
            pl.BlockSpec((1, n_classes), lambda i: (0, 0)),
        ],
        out_specs=pl.BlockSpec((N, n_classes), lambda i: (0, 0)),
        compiler_params=pltpu.CompilerParams(
            dimension_semantics=("arbitrary",),
            vmem_limit_bytes=_vmem_limit_bytes()),
    )(x.astype(jnp.float32), w1.astype(jnp.float32),
      b1.reshape(1, Ch).astype(jnp.float32), w2.astype(jnp.float32),
      b2.reshape(1, n_classes).astype(jnp.float32))


# --------------------------------------------------------------------------
# Plain-JAX glue: im2col patch extraction (emitted directly in bf16).
# TODO(synk): replace im2col with an in-kernel patch gather (manual DMA halo
#             slabs over a pl.ANY input) to remove the kh*kw expansion.
# --------------------------------------------------------------------------
def _im2col(x, kh, kw, stride, pad):
    """x: NHWC -> (patches[N*Ho*Wo, kh*kw*C] bf16, Ho, Wo)."""
    N, H, W, C = x.shape
    x = x.astype(jnp.bfloat16)
    if pad:
        x = jnp.pad(x, ((0, 0), (pad, pad), (pad, pad), (0, 0)))
    Ho = (H + 2 * pad - kh) // stride + 1
    Wo = (W + 2 * pad - kw) // stride + 1
    if kh == 1 and kw == 1:                      # 1x1 conv: plain strided slice
        cols = lax.slice(x, (0, 0, 0, 0),
                         (N, (Ho - 1) * stride + 1, (Wo - 1) * stride + 1, C),
                         (1, stride, stride, 1))
        return cols.reshape(N * Ho * Wo, C), Ho, Wo
    patches = []
    for i in range(kh):
        for j in range(kw):
            patches.append(
                lax.slice(x, (0, i, j, 0),
                          (N, i + (Ho - 1) * stride + 1,
                           j + (Wo - 1) * stride + 1, C),
                          (1, stride, stride, 1)))
    cols = jnp.stack(patches, axis=3)            # [N, Ho, Wo, kh*kw, C]
    return cols.reshape(N * Ho * Wo, kh * kw * C), Ho, Wo


def conv_bn_act(x, w, bn_scale, bn_bias, stride, pad, activation="none",
                residual=None):
    """conv (HWIO, no bias) + folded BN + optional residual + activation."""
    N, H, W, C = x.shape
    kh, kw, cin, cout = w.shape
    cols, Ho, Wo = _im2col(x, kh, kw, stride, pad)
    wmat = w.reshape(kh * kw * cin, cout)
    res2 = None if residual is None else residual.reshape(N * Ho * Wo, cout)
    out = fused_gemm(cols, wmat, bn_scale, bn_bias, residual=res2,
                     activation=activation)
    if out.shape[1] != cout:
        out = out[:, :cout]
    return out.reshape(N, Ho, Wo, cout)


# --------------------------------------------------------------------------
# Deterministic parameter init (synthetic -- shapes follow the nn.Module)
# --------------------------------------------------------------------------
def _init_conv(key, kh, kw, cin, cout):
    fan_in = kh * kw * cin
    std = (2.0 / fan_in) ** 0.5
    return jax.random.normal(key, (kh, kw, cin, cout), jnp.float32) * std


def _init_bn(key, c, eps=1e-5):
    k1, k2, k3, k4 = jax.random.split(key, 4)
    gamma = 1.0 + 0.1 * jax.random.normal(k1, (c,), jnp.float32)
    beta = 0.1 * jax.random.normal(k2, (c,), jnp.float32)
    mean = 0.1 * jax.random.normal(k3, (c,), jnp.float32)
    var = jax.random.uniform(k4, (c,), jnp.float32, 0.5, 1.5)
    scale = gamma / jnp.sqrt(var + eps)          # BN folded (inference mode)
    bias = beta - mean * scale
    return scale, bias


def _init_linear(key, cin, cout):
    k1, k2 = jax.random.split(key)
    bound = 1.0 / (cin ** 0.5)
    w = jax.random.uniform(k1, (cin, cout), jnp.float32, -bound, bound)
    b = jax.random.uniform(k2, (cout,), jnp.float32, -bound, bound)
    return w, b


def init_resnet_params(key, in_channels, blocks_sizes, n_classes):
    keys = iter(jax.random.split(key, 64))
    params = {}
    # gate: conv7x7 s2 p3 + BN
    params["gate_w"] = _init_conv(next(keys), 7, 7, in_channels, blocks_sizes[0])
    params["gate_bn"] = _init_bn(next(keys), blocks_sizes[0])

    layer_io = [(blocks_sizes[0], blocks_sizes[0])] + list(
        zip(blocks_sizes, blocks_sizes[1:]))
    layer_cfg = []
    layers = []
    for cin, cout in layer_io:
        ds = 2 if cin != cout else 1
        p = {
            "w1": _init_conv(next(keys), 3, 3, cin, cout),
            "bn1": _init_bn(next(keys), cout),
            "w2": _init_conv(next(keys), 3, 3, cout, cout),
            "bn2": _init_bn(next(keys), cout),
        }
        if cin != cout:  # shortcut: conv1x1 stride ds + BN
            p["ws"] = _init_conv(next(keys), 1, 1, cin, cout)
            p["bns"] = _init_bn(next(keys), cout)
        layers.append(p)
        layer_cfg.append((cin, cout, ds))
    params["layers"] = layers

    feat = blocks_sizes[-1]
    params["fc1"] = _init_linear(next(keys), feat, feat // 2)
    params["fc2"] = _init_linear(next(keys), feat // 2, n_classes)
    return params, layer_cfg


# --------------------------------------------------------------------------
# Forward pass (mirrors ResNet.forward, inference mode)
# --------------------------------------------------------------------------
def resnet_forward(x_nchw, params, layer_cfg):
    # layout: transpose PyTorch NCHW -> NHWC for all Pallas kernels.
    x = jnp.transpose(x_nchw.astype(jnp.float32), (0, 2, 3, 1))

    # --- encoder gate: conv7x7/2 + BN + LeakyReLU + MaxPool3x3/2 ---
    gs, gb = params["gate_bn"]
    x = conv_bn_act(x, params["gate_w"], gs, gb, stride=2, pad=3,
                    activation="leaky_relu")
    x = maxpool3x3_s2_p1(x)

    # --- residual layers ---
    for p, (cin, cout, ds) in zip(params["layers"], layer_cfg):
        if cin != cout:
            ss, sb = p["bns"]
            residual = conv_bn_act(x, p["ws"], ss, sb, stride=ds, pad=0,
                                   activation="none")
        else:
            residual = x
        s1, b1 = p["bn1"]
        h = conv_bn_act(x, p["w1"], s1, b1, stride=ds, pad=1,
                        activation="leaky_relu")
        s2, b2 = p["bn2"]
        # conv2 + BN, add residual, then LeakyReLU -- fused in one kernel.
        x = conv_bn_act(h, p["w2"], s2, b2, stride=1, pad=1,
                        activation="leaky_relu", residual=residual)

    # --- decoder: fused avg-pool + fc1 + LeakyReLU + fc2 + softmax ---
    # TODO(synk): Dropout(0.4) treated as identity (inference-mode forward).
    N, H, W, C = x.shape
    w1, b1 = params["fc1"]
    w2, b2 = params["fc2"]
    return decoder_head(x.reshape(N, H * W, C), w1, b1, w2, b2)


# --------------------------------------------------------------------------
if __name__ == "__main__":
    batch = 2
    in_channels = 4
    spatial = 16
    n_classes = 10
    blocks_sizes = [32, 64, 128, 256]   # scaled-down version of [64,128,256,512]

    key = jax.random.PRNGKey(0)
    k_params, k_x = jax.random.split(key)
    params, layer_cfg = init_resnet_params(k_params, in_channels, blocks_sizes,
                                           n_classes)
    x = jax.random.normal(k_x, (batch, in_channels, spatial, spatial),
                          jnp.float32)

    fwd = jax.jit(functools.partial(resnet_forward, layer_cfg=layer_cfg))
    out = fwd(x, params)
    out = jax.block_until_ready(out)

    assert out.shape == (batch, n_classes)
    assert bool(jnp.all(jnp.isfinite(out)))
    assert bool(jnp.allclose(jnp.sum(out, axis=1), 1.0, atol=1e-3))
    print("KERNEL_OK")
</pallas_src>

<mosaic_0001>
module attributes {stable_mosaic.version = 11 : i64} {
  func.func @_gemm_kernel_single(%arg0: i32, %arg1: i32, %arg2: memref<64x196xbf16, #tpu.memory_space<vmem>>, %arg3: memref<196x128xbf16, #tpu.memory_space<vmem>>, %arg4: memref<1x128xf32, #tpu.memory_space<vmem>>, %arg5: memref<1x128xf32, #tpu.memory_space<vmem>>, %arg6: memref<64x128xbf16, #tpu.memory_space<vmem>>) attributes {dimension_semantics = [#tpu.dimension_semantics<parallel>, #tpu.dimension_semantics<parallel>], iteration_bounds = array<i64: 2, 1>, scalar_prefetch = 0 : i64, scratch_operands = 0 : i64, tpu.core_type = #tpu.core_type<tc>, window_params = [{transform_indices = @transform_0, window_bounds = array<i64: 64, 196>}, {transform_indices = @transform_1, window_bounds = array<i64: 196, 128>}, {transform_indices = @transform_2, window_bounds = array<i64: 1, 128>}, {transform_indices = @transform_3, window_bounds = array<i64: 1, 128>}, {transform_indices = @transform_4, window_bounds = array<i64: 64, 128>}]} {
    %c0 = arith.constant 0 : index
    %c0_0 = arith.constant 0 : index
    %0 = vector.load %arg2[%c0, %c0_0] : memref<64x196xbf16, #tpu.memory_space<vmem>>, vector<64x196xbf16>
    %c0_1 = arith.constant 0 : index
    %c0_2 = arith.constant 0 : index
    %1 = vector.load %arg3[%c0_1, %c0_2] : memref<196x128xbf16, #tpu.memory_space<vmem>>, vector<196x128xbf16>
    %cst = arith.constant dense<0.000000e+00> : vector<64x128xf32>
    %2 = tpu.matmul %0, %1, %cst {dimension_numbers = #tpu.dot_dimension_numbers<[1], [0], [0], [1], [0, 0, 1, 1], [], []>} : vector<64x196xbf16>, vector<196x128xbf16>, vector<64x128xf32> -> vector<64x128xf32>
    %c0_3 = arith.constant 0 : index
    %c0_4 = arith.constant 0 : index
    %3 = vector.load %arg4[%c0_3, %c0_4] : memref<1x128xf32, #tpu.memory_space<vmem>>, vector<1x128xf32>
    %4 = vector.broadcast %3 : vector<1x128xf32> to vector<64x128xf32>
    %5 = arith.mulf %2, %4 : vector<64x128xf32>
    %c0_5 = arith.constant 0 : index
    %c0_6 = arith.constant 0 : index
    %6 = vector.load %arg5[%c0_5, %c0_6] : memref<1x128xf32, #tpu.memory_space<vmem>>, vector<1x128xf32>
    %7 = vector.broadcast %6 : vector<1x128xf32> to vector<64x128xf32>
    %8 = arith.addf %5, %7 : vector<64x128xf32>
    %cst_7 = arith.constant 0.000000e+00 : f32
    %9 = vector.broadcast %cst_7 : f32 to vector<64x128xf32>
    %10 = arith.cmpf oge, %8, %9 : vector<64x128xf32>
    %cst_8 = arith.constant 0.00999999977 : f32
    %11 = vector.broadcast %cst_8 : f32 to vector<64x128xf32>
    %12 = arith.mulf %11, %8 : vector<64x128xf32>
    %13 = arith.select %10, %8, %12 : vector<64x128xi1>, vector<64x128xf32>
    %14 = arith.truncf %13 : vector<64x128xf32> to vector<64x128xbf16>
    %c0_9 = arith.constant 0 : index
    %c0_10 = arith.constant 0 : index
    %15 = vector.load %arg6[%c0_9, %c0_10] : memref<64x128xbf16, #tpu.memory_space<vmem>>, vector<64x128xbf16>
    tpu.vector_store %arg6[%c0_9, %c0_10], %14 {strides = array<i32>} : memref<64x128xbf16, #tpu.memory_space<vmem>>, vector<64x128xbf16>,
    return
  }
  func.func @transform_0(%arg0: i32, %arg1: i32) -> (i32, i32) {
    %c0_i32 = arith.constant 0 : i32
    %c0_i32_0 = arith.constant 0 : i32
    return %arg0, %c0_i32 : i32, i32
  }
  func.func @transform_1(%arg0: i32, %arg1: i32) -> (i32, i32) {
    %c0_i32 = arith.constant 0 : i32
    %c0_i32_0 = arith.constant 0 : i32
    return %c0_i32, %arg1 : i32, i32
  }
  func.func @transform_2(%arg0: i32, %arg1: i32) -> (i32, i32) {
    %c0_i32 = arith.constant 0 : i32
    %c0_i32_0 = arith.constant 0 : i32
    return %c0_i32, %arg1 : i32, i32
  }
  func.func @transform_3(%arg0: i32, %arg1: i32) -> (i32, i32) {
    %c0_i32 = arith.constant 0 : i32
    %c0_i32_0 = arith.constant 0 : i32
    return %c0_i32, %arg1 : i32, i32
  }
  func.func @transform_4(%arg0: i32, %arg1: i32) -> (i32, i32) {
    %c0_i32 = arith.constant 0 : i32
    return %arg0, %arg1 : i32, i32
  }
}

module attributes {stable_mosaic.version = 11 : i64} {
  func.func @_max9_kernel(%arg0: i32, %arg1: memref<8x128xbf16, #tpu.memory_space<vmem>>, %arg2: memref<8x128xbf16, #tpu.memory_space<vmem>>, %arg3: memref<8x128xbf16, #tpu.memory_space<vmem>>, %arg4: memref<8x128xbf16, #tpu.memory_space<vmem>>, %arg5: memref<8x128xbf16, #tpu.memory_space<vmem>>, %arg6: memref<8x128xbf16, #tpu.memory_space<vmem>>, %arg7: memref<8x128xbf16, #tpu.memory_space<vmem>>, %arg8: memref<8x128xbf16, #tpu.memory_space<vmem>>, %arg9: memref<8x128xbf16, #tpu.memory_space<vmem>>, %arg10: memref<8x128xbf16, #tpu.memory_space<vmem>>) attributes {dimension_semantics = [#tpu.dimension_semantics<parallel>], iteration_bounds = array<i64: 1>, scalar_prefetch = 0 : i64, scratch_operands = 0 : i64, tpu.core_type = #tpu.core_type<tc>, window_params = [{transform_indices = @transform_0, window_bounds = array<i64: 8, 128>}, {transform_indices = @transform_1, window_bounds = array<i64: 8, 128>}, {transform_indices = @transform_2, window_bounds = array<i64: 8, 128>}, {transform_indices = @transform_3, window_bounds = array<i64: 8, 128>}, {transform_indices = @transform_4, window_bounds = array<i64: 8, 128>}, {transform_indices = @transform_5, window_bounds = array<i64: 8, 128>}, {transform_indices = @transform_6, window_bounds = array<i64: 8, 128>}, {transform_indices = @transform_7, window_bounds = array<i64: 8, 128>}, {transform_indices = @transform_8, window_bounds = array<i64: 8, 128>}, {transform_indices = @transform_9, window_bounds = array<i64: 8, 128>}]} {
    %c0 = arith.constant 0 : index
    %c0_0 = arith.constant 0 : index
    %0 = vector.load %arg1[%c0, %c0_0] : memref<8x128xbf16, #tpu.memory_space<vmem>>, vector<8x128xbf16>
    %c0_1 = arith.constant 0 : index
    %c0_2 = arith.constant 0 : index
    %1 = vector.load %arg2[%c0_1, %c0_2] : memref<8x128xbf16, #tpu.memory_space<vmem>>, vector<8x128xbf16>
    %2 = arith.maximumf %0, %1 : vector<8x128xbf16>
    %c0_3 = arith.constant 0 : index
    %c0_4 = arith.constant 0 : index
    %3 = vector.load %arg3[%c0_3, %c0_4] : memref<8x128xbf16, #tpu.memory_space<vmem>>, vector<8x128xbf16>
    %4 = arith.maximumf %2, %3 : vector<8x128xbf16>
    %c0_5 = arith.constant 0 : index
    %c0_6 = arith.constant 0 : index
    %5 = vector.load %arg4[%c0_5, %c0_6] : memref<8x128xbf16, #tpu.memory_space<vmem>>, vector<8x128xbf16>
    %6 = arith.maximumf %4, %5 : vector<8x128xbf16>
    %c0_7 = arith.constant 0 : index
    %c0_8 = arith.constant 0 : index
    %7 = vector.load %arg5[%c0_7, %c0_8] : memref<8x128xbf16, #tpu.memory_space<vmem>>, vector<8x128xbf16>
    %8 = arith.maximumf %6, %7 : vector<8x128xbf16>
    %c0_9 = arith.constant 0 : index
    %c0_10 = arith.constant 0 : index
    %9 = vector.load %arg6[%c0_9, %c0_10] : memref<8x128xbf16, #tpu.memory_space<vmem>>, vector<8x128xbf16>
    %10 = arith.maximumf %8, %9 : vector<8x128xbf16>
    %c0_11 = arith.constant 0 : index
    %c0_12 = arith.constant 0 : index
    %11 = vector.load %arg7[%c0_11, %c0_12] : memref<8x128xbf16, #tpu.memory_space<vmem>>, vector<8x128xbf16>
    %12 = arith.maximumf %10, %11 : vector<8x128xbf16>
    %c0_13 = arith.constant 0 : index
    %c0_14 = arith.constant 0 : index
    %13 = vector.load %arg8[%c0_13, %c0_14] : memref<8x128xbf16, #tpu.memory_space<vmem>>, vector<8x128xbf16>
    %14 = arith.maximumf %12, %13 : vector<8x128xbf16>
    %c0_15 = arith.constant 0 : index
    %c0_16 = arith.constant 0 : index
    %15 = vector.load %arg9[%c0_15, %c0_16] : memref<8x128xbf16, #tpu.memory_space<vmem>>, vector<8x128xbf16>
    %16 = arith.maximumf %14, %15 : vector<8x128xbf16>
    %c0_17 = arith.constant 0 : index
    %c0_18 = arith.constant 0 : index
    %17 = vector.load %arg10[%c0_17, %c0_18] : memref<8x128xbf16, #tpu.memory_space<vmem>>, vector<8x128xbf16>
    tpu.vector_store %arg10[%c0_17, %c0_18], %16 {strides = array<i32>} : memref<8x128xbf16, #tpu.memory_space<vmem>>, vector<8x128xbf16>,
    return
  }
  func.func @transform_0(%arg0: i32) -> (i32, i32) {
    %c0_i32 = arith.constant 0 : i32
    %c0_i32_0 = arith.constant 0 : i32
    return %arg0, %c0_i32 : i32, i32
  }
  func.func @transform_1(%arg0: i32) -> (i32, i32) {
    %c0_i32 = arith.constant 0 : i32
    %c0_i32_0 = arith.constant 0 : i32
    return %arg0, %c0_i32 : i32, i32
  }
  func.func @transform_2(%arg0: i32) -> (i32, i32) {
    %c0_i32 = arith.constant 0 : i32
    %c0_i32_0 = arith.constant 0 : i32
    return %arg0, %c0_i32 : i32, i32
  }
  func.func @transform_3(%arg0: i32) -> (i32, i32) {
    %c0_i32 = arith.constant 0 : i32
    %c0_i32_0 = arith.constant 0 : i32
    return %arg0, %c0_i32 : i32, i32
  }
  func.func @transform_4(%arg0: i32) -> (i32, i32) {
    %c0_i32 = arith.constant 0 : i32
    %c0_i32_0 = arith.constant 0 : i32
    return %arg0, %c0_i32 : i32, i32
  }
  func.func @transform_5(%arg0: i32) -> (i32, i32) {
    %c0_i32 = arith.constant 0 : i32
    %c0_i32_0 = arith.constant 0 : i32
    return %arg0, %c0_i32 : i32, i32
  }
  func.func @transform_6(%arg0: i32) -> (i32, i32) {
    %c0_i32 = arith.constant 0 : i32
    %c0_i32_0 = arith.constant 0 : i32
    return %arg0, %c0_i32 : i32, i32
  }
  func.func @transform_7(%arg0: i32) -> (i32, i32) {
    %c0_i32 = arith.constant 0 : i32
    %c0_i32_0 = arith.constant 0 : i32
    return %arg0, %c0_i32 : i32, i32
  }
  func.func @transform_8(%arg0: i32) -> (i32, i32) {
    %c0_i32 = arith.constant 0 : i32
    %c0_i32_0 = arith.constant 0 : i32
    return %arg0, %c0_i32 : i32, i32
  }
  func.func @transform_9(%arg0: i32) -> (i32, i32) {
    %c0_i32 = arith.constant 0 : i32
    %c0_i32_0 = arith.constant 0 : i32
    return %arg0, %c0_i32 : i32, i32
  }
}

module attributes {stable_mosaic.version = 11 : i64} {
  func.func @_gemm_kernel_single(%arg0: i32, %arg1: i32, %arg2: memref<32x288xbf16, #tpu.memory_space<vmem>>, %arg3: memref<288x128xbf16, #tpu.memory_space<vmem>>, %arg4: memref<1x128xf32, #tpu.memory_space<vmem>>, %arg5: memref<1x128xf32, #tpu.memory_space<vmem>>, %arg6: memref<32x128xbf16, #tpu.memory_space<vmem>>) attributes {dimension_semantics = [#tpu.dimension_semantics<parallel>, #tpu.dimension_semantics<parallel>], iteration_bounds = array<i64: 1, 1>, scalar_prefetch = 0 : i64, scratch_operands = 0 : i64, tpu.core_type = #tpu.core_type<tc>, window_params = [{transform_indices = @transform_0, window_bounds = array<i64: 32, 288>}, {transform_indices = @transform_1, window_bounds = array<i64: 288, 128>}, {transform_indices = @transform_2, window_bounds = array<i64: 1, 128>}, {transform_indices = @transform_3, window_bounds = array<i64: 1, 128>}, {transform_indices = @transform_4, window_bounds = array<i64: 32, 128>}]} {
    %c0 = arith.constant 0 : index
    %c0_0 = arith.constant 0 : index
    %0 = vector.load %arg2[%c0, %c0_0] : memref<32x288xbf16, #tpu.memory_space<vmem>>, vector<32x288xbf16>
    %c0_1 = arith.constant 0 : index
    %c0_2 = arith.constant 0 : index
    %1 = vector.load %arg3[%c0_1, %c0_2] : memref<288x128xbf16, #tpu.memory_space<vmem>>, vector<288x128xbf16>
    %cst = arith.constant dense<0.000000e+00> : vector<32x128xf32>
    %2 = tpu.matmul %0, %1, %cst {dimension_numbers = #tpu.dot_dimension_numbers<[1], [0], [0], [1], [0, 0, 1, 1], [], []>} : vector<32x288xbf16>, vector<288x128xbf16>, vector<32x128xf32> -> vector<32x128xf32>
    %c0_3 = arith.constant 0 : index
    %c0_4 = arith.constant 0 : index
    %3 = vector.load %arg4[%c0_3, %c0_4] : memref<1x128xf32, #tpu.memory_space<vmem>>, vector<1x128xf32>
    %4 = vector.broadcast %3 : vector<1x128xf32> to vector<32x128xf32>
    %5 = arith.mulf %2, %4 : vector<32x128xf32>
    %c0_5 = arith.constant 0 : index
    %c0_6 = arith.constant 0 : index
    %6 = vector.load %arg5[%c0_5, %c0_6] : memref<1x128xf32, #tpu.memory_space<vmem>>, vector<1x128xf32>
    %7 = vector.broadcast %6 : vector<1x128xf32> to vector<32x128xf32>
    %8 = arith.addf %5, %7 : vector<32x128xf32>
    %cst_7 = arith.constant 0.000000e+00 : f32
    %9 = vector.broadcast %cst_7 : f32 to vector<32x128xf32>
    %10 = arith.cmpf oge, %8, %9 : vector<32x128xf32>
    %cst_8 = arith.constant 0.00999999977 : f32
    %11 = vector.broadcast %cst_8 : f32 to vector<32x128xf32>
    %12 = arith.mulf %11, %8 : vector<32x128xf32>
    %13 = arith.select %10, %8, %12 : vector<32x128xi1>, vector<32x128xf32>
    %14 = arith.truncf %13 : vector<32x128xf32> to vector<32x128xbf16>
    %c0_9 = arith.constant 0 : index
    %c0_10 = arith.constant 0 : index
    %15 = vector.load %arg6[%c0_9, %c0_10] : memref<32x128xbf16, #tpu.memory_space<vmem>>, vector<32x128xbf16>
    tpu.vector_store %arg6[%c0_9, %c0_10], %14 {strides = array<i32>} : memref<32x128xbf16, #tpu.memory_space<vmem>>, vector<32x128xbf16>,
    return
  }
  func.func @transform_0(%arg0: i32, %arg1: i32) -> (i32, i32) {
    %c0_i32 = arith.constant 0 : i32
    %c0_i32_0 = arith.constant 0 : i32
    return %arg0, %c0_i32 : i32, i32
  }
  func.func @transform_1(%arg0: i32, %arg1: i32) -> (i32, i32) {
    %c0_i32 = arith.constant 0 : i32
    %c0_i32_0 = arith.constant 0 : i32
    return %c0_i32, %arg1 : i32, i32
  }
  func.func @transform_2(%arg0: i32, %arg1: i32) -> (i32, i32) {
    %c0_i32 = arith.constant 0 : i32
    %c0_i32_0 = arith.constant 0 : i32
    return %c0_i32, %arg1 : i32, i32
  }
  func.func @transform_3(%arg0: i32, %arg1: i32) -> (i32, i32) {
    %c0_i32 = arith.constant 0 : i32
    %c0_i32_0 = arith.constant 0 : i32
    return %c0_i32, %arg1 : i32, i32
  }
  func.func @transform_4(%arg0: i32, %arg1: i32) -> (i32, i32) {
    %c0_i32 = arith.constant 0 : i32
    return %arg0, %arg1 : i32, i32
  }
}

module attributes {stable_mosaic.version = 11 : i64} {
  func.func @_gemm_kernel_single(%arg0: i32, %arg1: i32, %arg2: memref<32x288xbf16, #tpu.memory_space<vmem>>, %arg3: memref<288x128xbf16, #tpu.memory_space<vmem>>, %arg4: memref<1x128xf32, #tpu.memory_space<vmem>>, %arg5: memref<1x128xf32, #tpu.memory_space<vmem>>, %arg6: memref<32x128xbf16, #tpu.memory_space<vmem>>, %arg7: memref<32x128xbf16, #tpu.memory_space<vmem>>) attributes {dimension_semantics = [#tpu.dimension_semantics<parallel>, #tpu.dimension_semantics<parallel>], iteration_bounds = array<i64: 1, 1>, scalar_prefetch = 0 : i64, scratch_operands = 0 : i64, tpu.core_type = #tpu.core_type<tc>, window_params = [{transform_indices = @transform_0, window_bounds = array<i64: 32, 288>}, {transform_indices = @transform_1, window_bounds = array<i64: 288, 128>}, {transform_indices = @transform_2, window_bounds = array<i64: 1, 128>}, {transform_indices = @transform_3, window_bounds = array<i64: 1, 128>}, {transform_indices = @transform_4, window_bounds = array<i64: 32, 128>}, {transform_indices = @transform_5, window_bounds = array<i64: 32, 128>}]} {
    %c0 = arith.constant 0 : index
    %c0_0 = arith.constant 0 : index
    %0 = vector.load %arg2[%c0, %c0_0] : memref<32x288xbf16, #tpu.memory_space<vmem>>, vector<32x288xbf16>
    %c0_1 = arith.constant 0 : index
    %c0_2 = arith.constant 0 : index
    %1 = vector.load %arg3[%c0_1, %c0_2] : memref<288x128xbf16, #tpu.memory_space<vmem>>, vector<288x128xbf16>
    %cst = arith.constant dense<0.000000e+00> : vector<32x128xf32>
    %2 = tpu.matmul %0, %1, %cst {dimension_numbers = #tpu.dot_dimension_numbers<[1], [0], [0], [1], [0, 0, 1, 1], [], []>} : vector<32x288xbf16>, vector<288x128xbf16>, vector<32x128xf32> -> vector<32x128xf32>
    %c0_3 = arith.constant 0 : index
    %c0_4 = arith.constant 0 : index
    %3 = vector.load %arg4[%c0_3, %c0_4] : memref<1x128xf32, #tpu.memory_space<vmem>>, vector<1x128xf32>
    %4 = vector.broadcast %3 : vector<1x128xf32> to vector<32x128xf32>
    %5 = arith.mulf %2, %4 : vector<32x128xf32>
    %c0_5 = arith.constant 0 : index
    %c0_6 = arith.constant 0 : index
    %6 = vector.load %arg5[%c0_5, %c0_6] : memref<1x128xf32, #tpu.memory_space<vmem>>, vector<1x128xf32>
    %7 = vector.broadcast %6 : vector<1x128xf32> to vector<32x128xf32>
    %8 = arith.addf %5, %7 : vector<32x128xf32>
    %c0_7 = arith.constant 0 : index
    %c0_8 = arith.constant 0 : index
    %9 = vector.load %arg6[%c0_7, %c0_8] : memref<32x128xbf16, #tpu.memory_space<vmem>>, vector<32x128xbf16>
    %10 = arith.extf %9 : vector<32x128xbf16> to vector<32x128xf32>
    %11 = arith.addf %8, %10 : vector<32x128xf32>
    %cst_9 = arith.constant 0.000000e+00 : f32
    %12 = vector.broadcast %cst_9 : f32 to vector<32x128xf32>
    %13 = arith.cmpf oge, %11, %12 : vector<32x128xf32>
    %cst_10 = arith.constant 0.00999999977 : f32
    %14 = vector.broadcast %cst_10 : f32 to vector<32x128xf32>
    %15 = arith.mulf %14, %11 : vector<32x128xf32>
    %16 = arith.select %13, %11, %15 : vector<32x128xi1>, vector<32x128xf32>
    %17 = arith.truncf %16 : vector<32x128xf32> to vector<32x128xbf16>
    %c0_11 = arith.constant 0 : index
    %c0_12 = arith.constant 0 : index
    %18 = vector.load %arg7[%c0_11, %c0_12] : memref<32x128xbf16, #tpu.memory_space<vmem>>, vector<32x128xbf16>
    tpu.vector_store %arg7[%c0_11, %c0_12], %17 {strides = array<i32>} : memref<32x128xbf16, #tpu.memory_space<vmem>>, vector<32x128xbf16>,
    return
  }
  func.func @transform_0(%arg0: i32, %arg1: i32) -> (i32, i32) {
    %c0_i32 = arith.constant 0 : i32
    %c0_i32_0 = arith.constant 0 : i32
    return %arg0, %c0_i32 : i32, i32
  }
  func.func @transform_1(%arg0: i32, %arg1: i32) -> (i32, i32) {
    %c0_i32 = arith.constant 0 : i32
    %c0_i32_0 = arith.constant 0 : i32
    return %c0_i32, %arg1 : i32, i32
  }
  func.func @transform_2(%arg0: i32, %arg1: i32) -> (i32, i32) {
    %c0_i32 = arith.constant 0 : i32
    %c0_i32_0 = arith.constant 0 : i32
    return %c0_i32, %arg1 : i32, i32
  }
  func.func @transform_3(%arg0: i32, %arg1: i32) -> (i32, i32) {
    %c0_i32 = arith.constant 0 : i32
    %c0_i32_0 = arith.constant 0 : i32
    return %c0_i32, %arg1 : i32, i32
  }
  func.func @transform_4(%arg0: i32, %arg1: i32) -> (i32, i32) {
    %c0_i32 = arith.constant 0 : i32
    return %arg0, %arg1 : i32, i32
  }
  func.func @transform_5(%arg0: i32, %arg1: i32) -> (i32, i32) {
    %c0_i32 = arith.constant 0 : i32
    return %arg0, %arg1 : i32, i32
  }
}

module attributes {stable_mosaic.version = 11 : i64} {
  func.func @_gemm_kernel_single(%arg0: i32, %arg1: i32, %arg2: memref<8x288xbf16, #tpu.memory_space<vmem>>, %arg3: memref<288x128xbf16, #tpu.memory_space<vmem>>, %arg4: memref<1x128xf32, #tpu.memory_space<vmem>>, %arg5: memref<1x128xf32, #tpu.memory_space<vmem>>, %arg6: memref<8x128xbf16, #tpu.memory_space<vmem>>) attributes {dimension_semantics = [#tpu.dimension_semantics<parallel>, #tpu.dimension_semantics<parallel>], iteration_bounds = array<i64: 1, 1>, scalar_prefetch = 0 : i64, scratch_operands = 0 : i64, tpu.core_type = #tpu.core_type<tc>, window_params = [{transform_indices = @transform_0, window_bounds = array<i64: 8, 288>}, {transform_indices = @transform_1, window_bounds = array<i64: 288, 128>}, {transform_indices = @transform_2, window_bounds = array<i64: 1, 128>}, {transform_indices = @transform_3, window_bounds = array<i64: 1, 128>}, {transform_indices = @transform_4, window_bounds = array<i64: 8, 128>}]} {
    %c0 = arith.constant 0 : index
    %c0_0 = arith.constant 0 : index
    %0 = vector.load %arg2[%c0, %c0_0] : memref<8x288xbf16, #tpu.memory_space<vmem>>, vector<8x288xbf16>
    %c0_1 = arith.constant 0 : index
    %c0_2 = arith.constant 0 : index
    %1 = vector.load %arg3[%c0_1, %c0_2] : memref<288x128xbf16, #tpu.memory_space<vmem>>, vector<288x128xbf16>
    %cst = arith.constant dense<0.000000e+00> : vector<8x128xf32>
    %2 = tpu.matmul %0, %1, %cst {dimension_numbers = #tpu.dot_dimension_numbers<[1], [0], [0], [1], [0, 0, 1, 1], [], []>} : vector<8x288xbf16>, vector<288x128xbf16>, vector<8x128xf32> -> vector<8x128xf32>
    %c0_3 = arith.constant 0 : index
    %c0_4 = arith.constant 0 : index
    %3 = vector.load %arg4[%c0_3, %c0_4] : memref<1x128xf32, #tpu.memory_space<vmem>>, vector<1x128xf32>
    %4 = vector.broadcast %3 : vector<1x128xf32> to vector<8x128xf32>
    %5 = arith.mulf %2, %4 : vector<8x128xf32>
    %c0_5 = arith.constant 0 : index
    %c0_6 = arith.constant 0 : index
    %6 = vector.load %arg5[%c0_5, %c0_6] : memref<1x128xf32, #tpu.memory_space<vmem>>, vector<1x128xf32>
    %7 = vector.broadcast %6 : vector<1x128xf32> to vector<8x128xf32>
    %8 = arith.addf %5, %7 : vector<8x128xf32>
    %cst_7 = arith.constant 0.000000e+00 : f32
    %9 = vector.broadcast %cst_7 : f32 to vector<8x128xf32>
    %10 = arith.cmpf oge, %8, %9 : vector<8x128xf32>
    %cst_8 = arith.constant 0.00999999977 : f32
    %11 = vector.broadcast %cst_8 : f32 to vector<8x128xf32>
    %12 = arith.mulf %11, %8 : vector<8x128xf32>
    %13 = arith.select %10, %8, %12 : vector<8x128xi1>, vector<8x128xf32>
    %14 = arith.truncf %13 : vector<8x128xf32> to vector<8x128xbf16>
    %c0_9 = arith.constant 0 : index
    %c0_10 = arith.constant 0 : index
    %15 = vector.load %arg6[%c0_9, %c0_10] : memref<8x128xbf16, #tpu.memory_space<vmem>>, vector<8x128xbf16>
    tpu.vector_store %arg6[%c0_9, %c0_10], %14 {strides = array<i32>} : memref<8x128xbf16, #tpu.memory_space<vmem>>, vector<8x128xbf16>,
    return
  }
  func.func @transform_0(%arg0: i32, %arg1: i32) -> (i32, i32) {
    %c0_i32 = arith.constant 0 : i32
    %c0_i32_0 = arith.constant 0 : i32
    return %arg0, %c0_i32 : i32, i32
  }
  func.func @transform_1(%arg0: i32, %arg1: i32) -> (i32, i32) {
    %c0_i32 = arith.constant 0 : i32
    %c0_i32_0 = arith.constant 0 : i32
    return %c0_i32, %arg1 : i32, i32
  }
  func.func @transform_2(%arg0: i32, %arg1: i32) -> (i32, i32) {
    %c0_i32 = arith.constant 0 : i32
    %c0_i32_0 = arith.constant 0 : i32
    return %c0_i32, %arg1 : i32, i32
  }
  func.func @transform_3(%arg0: i32, %arg1: i32) -> (i32, i32) {
    %c0_i32 = arith.constant 0 : i32
    %c0_i32_0 = arith.constant 0 : i32
    return %c0_i32, %arg1 : i32, i32
  }
  func.func @transform_4(%arg0: i32, %arg1: i32) -> (i32, i32) {
    %c0_i32 = arith.constant 0 : i32
    return %arg0, %arg1 : i32, i32
  }
}

module attributes {stable_mosaic.version = 11 : i64} {
  func.func @_gemm_kernel_single(%arg0: i32, %arg1: i32, %arg2: memref<8x32xbf16, #tpu.memory_space<vmem>>, %arg3: memref<32x128xbf16, #tpu.memory_space<vmem>>, %arg4: memref<1x128xf32, #tpu.memory_space<vmem>>, %arg5: memref<1x128xf32, #tpu.memory_space<vmem>>, %arg6: memref<8x128xbf16, #tpu.memory_space<vmem>>) attributes {dimension_semantics = [#tpu.dimension_semantics<parallel>, #tpu.dimension_semantics<parallel>], iteration_bounds = array<i64: 1, 1>, scalar_prefetch = 0 : i64, scratch_operands = 0 : i64, tpu.core_type = #tpu.core_type<tc>, window_params = [{transform_indices = @transform_0, window_bounds = array<i64: 8, 32>}, {transform_indices = @transform_1, window_bounds = array<i64: 32, 128>}, {transform_indices = @transform_2, window_bounds = array<i64: 1, 128>}, {transform_indices = @transform_3, window_bounds = array<i64: 1, 128>}, {transform_indices = @transform_4, window_bounds = array<i64: 8, 128>}]} {
    %c0 = arith.constant 0 : index
    %c0_0 = arith.constant 0 : index
    %0 = vector.load %arg2[%c0, %c0_0] : memref<8x32xbf16, #tpu.memory_space<vmem>>, vector<8x32xbf16>
    %c0_1 = arith.constant 0 : index
    %c0_2 = arith.constant 0 : index
    %1 = vector.load %arg3[%c0_1, %c0_2] : memref<32x128xbf16, #tpu.memory_space<vmem>>, vector<32x128xbf16>
    %cst = arith.constant dense<0.000000e+00> : vector<8x128xf32>
    %2 = tpu.matmul %0, %1, %cst {dimension_numbers = #tpu.dot_dimension_numbers<[1], [0], [0], [1], [0, 0, 1, 1], [], []>} : vector<8x32xbf16>, vector<32x128xbf16>, vector<8x128xf32> -> vector<8x128xf32>
    %c0_3 = arith.constant 0 : index
    %c0_4 = arith.constant 0 : index
    %3 = vector.load %arg4[%c0_3, %c0_4] : memref<1x128xf32, #tpu.memory_space<vmem>>, vector<1x128xf32>
    %4 = vector.broadcast %3 : vector<1x128xf32> to vector<8x128xf32>
    %5 = arith.mulf %2, %4 : vector<8x128xf32>
    %c0_5 = arith.constant 0 : index
    %c0_6 = arith.constant 0 : index
    %6 = vector.load %arg5[%c0_5, %c0_6] : memref<1x128xf32, #tpu.memory_space<vmem>>, vector<1x128xf32>
    %7 = vector.broadcast %6 : vector<1x128xf32> to vector<8x128xf32>
    %8 = arith.addf %5, %7 : vector<8x128xf32>
    %9 = arith.truncf %8 : vector<8x128xf32> to vector<8x128xbf16>
    %c0_7 = arith.constant 0 : index
    %c0_8 = arith.constant 0 : index
    %10 = vector.load %arg6[%c0_7, %c0_8] : memref<8x128xbf16, #tpu.memory_space<vmem>>, vector<8x128xbf16>
    tpu.vector_store %arg6[%c0_7, %c0_8], %9 {strides = array<i32>} : memref<8x128xbf16, #tpu.memory_space<vmem>>, vector<8x128xbf16>,
    return
  }
  func.func @transform_0(%arg0: i32, %arg1: i32) -> (i32, i32) {
    %c0_i32 = arith.constant 0 : i32
    %c0_i32_0 = arith.constant 0 : i32
    return %arg0, %c0_i32 : i32, i32
  }
  func.func @transform_1(%arg0: i32, %arg1: i32) -> (i32, i32) {
    %c0_i32 = arith.constant 0 : i32
    %c0_i32_0 = arith.constant 0 : i32
    return %c0_i32, %arg1 : i32, i32
  }
  func.func @transform_2(%arg0: i32, %arg1: i32) -> (i32, i32) {
    %c0_i32 = arith.constant 0 : i32
    %c0_i32_0 = arith.constant 0 : i32
    return %c0_i32, %arg1 : i32, i32
  }
  func.func @transform_3(%arg0: i32, %arg1: i32) -> (i32, i32) {
    %c0_i32 = arith.constant 0 : i32
    %c0_i32_0 = arith.constant 0 : i32
    return %c0_i32, %arg1 : i32, i32
  }
  func.func @transform_4(%arg0: i32, %arg1: i32) -> (i32, i32) {
    %c0_i32 = arith.constant 0 : i32
    return %arg0, %arg1 : i32, i32
  }
}

module attributes {stable_mosaic.version = 11 : i64} {
  func.func @_gemm_kernel_single(%arg0: i32, %arg1: i32, %arg2: memref<8x576xbf16, #tpu.memory_space<vmem>>, %arg3: memref<576x128xbf16, #tpu.memory_space<vmem>>, %arg4: memref<1x128xf32, #tpu.memory_space<vmem>>, %arg5: memref<1x128xf32, #tpu.memory_space<vmem>>, %arg6: memref<8x128xbf16, #tpu.memory_space<vmem>>, %arg7: memref<8x128xbf16, #tpu.memory_space<vmem>>) attributes {dimension_semantics = [#tpu.dimension_semantics<parallel>, #tpu.dimension_semantics<parallel>], iteration_bounds = array<i64: 1, 1>, scalar_prefetch = 0 : i64, scratch_operands = 0 : i64, tpu.core_type = #tpu.core_type<tc>, window_params = [{transform_indices = @transform_0, window_bounds = array<i64: 8, 576>}, {transform_indices = @transform_1, window_bounds = array<i64: 576, 128>}, {transform_indices = @transform_2, window_bounds = array<i64: 1, 128>}, {transform_indices = @transform_3, window_bounds = array<i64: 1, 128>}, {transform_indices = @transform_4, window_bounds = array<i64: 8, 128>}, {transform_indices = @transform_5, window_bounds = array<i64: 8, 128>}]} {
    %c0 = arith.constant 0 : index
    %c0_0 = arith.constant 0 : index
    %0 = vector.load %arg2[%c0, %c0_0] : memref<8x576xbf16, #tpu.memory_space<vmem>>, vector<8x576xbf16>
    %c0_1 = arith.constant 0 : index
    %c0_2 = arith.constant 0 : index
    %1 = vector.load %arg3[%c0_1, %c0_2] : memref<576x128xbf16, #tpu.memory_space<vmem>>, vector<576x128xbf16>
    %cst = arith.constant dense<0.000000e+00> : vector<8x128xf32>
    %2 = tpu.matmul %0, %1, %cst {dimension_numbers = #tpu.dot_dimension_numbers<[1], [0], [0], [1], [0, 0, 1, 1], [], []>} : vector<8x576xbf16>, vector<576x128xbf16>, vector<8x128xf32> -> vector<8x128xf32>
    %c0_3 = arith.constant 0 : index
    %c0_4 = arith.constant 0 : index
    %3 = vector.load %arg4[%c0_3, %c0_4] : memref<1x128xf32, #tpu.memory_space<vmem>>, vector<1x128xf32>
    %4 = vector.broadcast %3 : vector<1x128xf32> to vector<8x128xf32>
    %5 = arith.mulf %2, %4 : vector<8x128xf32>
    %c0_5 = arith.constant 0 : index
    %c0_6 = arith.constant 0 : index
    %6 = vector.load %arg5[%c0_5, %c0_6] : memref<1x128xf32, #tpu.memory_space<vmem>>, vector<1x128xf32>
    %7 = vector.broadcast %6 : vector<1x128xf32> to vector<8x128xf32>
    %8 = arith.addf %5, %7 : vector<8x128xf32>
    %c0_7 = arith.constant 0 : index
    %c0_8 = arith.constant 0 : index
    %9 = vector.load %arg6[%c0_7, %c0_8] : memref<8x128xbf16, #tpu.memory_space<vmem>>, vector<8x128xbf16>
    %10 = arith.extf %9 : vector<8x128xbf16> to vector<8x128xf32>
    %11 = arith.addf %8, %10 : vector<8x128xf32>
    %cst_9 = arith.constant 0.000000e+00 : f32
    %12 = vector.broadcast %cst_9 : f32 to vector<8x128xf32>
    %13 = arith.cmpf oge, %11, %12 : vector<8x128xf32>
    %cst_10 = arith.constant 0.00999999977 : f32
    %14 = vector.broadcast %cst_10 : f32 to vector<8x128xf32>
    %15 = arith.mulf %14, %11 : vector<8x128xf32>
    %16 = arith.select %13, %11, %15 : vector<8x128xi1>, vector<8x128xf32>
    %17 = arith.truncf %16 : vector<8x128xf32> to vector<8x128xbf16>
    %c0_11 = arith.constant 0 : index
    %c0_12 = arith.constant 0 : index
    %18 = vector.load %arg7[%c0_11, %c0_12] : memref<8x128xbf16, #tpu.memory_space<vmem>>, vector<8x128xbf16>
    tpu.vector_store %arg7[%c0_11, %c0_12], %17 {strides = array<i32>} : memref<8x128xbf16, #tpu.memory_space<vmem>>, vector<8x128xbf16>,
    return
  }
  func.func @transform_0(%arg0: i32, %arg1: i32) -> (i32, i32) {
    %c0_i32 = arith.constant 0 : i32
    %c0_i32_0 = arith.constant 0 : i32
    return %arg0, %c0_i32 : i32, i32
  }
  func.func @transform_1(%arg0: i32, %arg1: i32) -> (i32, i32) {
    %c0_i32 = arith.constant 0 : i32
    %c0_i32_0 = arith.constant 0 : i32
    return %c0_i32, %arg1 : i32, i32
  }
  func.func @transform_2(%arg0: i32, %arg1: i32) -> (i32, i32) {
    %c0_i32 = arith.constant 0 : i32
    %c0_i32_0 = arith.constant 0 : i32
    return %c0_i32, %arg1 : i32, i32
  }
  func.func @transform_3(%arg0: i32, %arg1: i32) -> (i32, i32) {
    %c0_i32 = arith.constant 0 : i32
    %c0_i32_0 = arith.constant 0 : i32
    return %c0_i32, %arg1 : i32, i32
  }
  func.func @transform_4(%arg0: i32, %arg1: i32) -> (i32, i32) {
    %c0_i32 = arith.constant 0 : i32
    return %arg0, %arg1 : i32, i32
  }
  func.func @transform_5(%arg0: i32, %arg1: i32) -> (i32, i32) {
    %c0_i32 = arith.constant 0 : i32
    return %arg0, %arg1 : i32, i32
  }
}

module attributes {stable_mosaic.version = 11 : i64} {
  func.func @_gemm_kernel_single(%arg0: i32, %arg1: i32, %arg2: memref<2x64xbf16, #tpu.memory_space<vmem>>, %arg3: memref<64x128xbf16, #tpu.memory_space<vmem>>, %arg4: memref<1x128xf32, #tpu.memory_space<vmem>>, %arg5: memref<1x128xf32, #tpu.memory_space<vmem>>, %arg6: memref<2x128xbf16, #tpu.memory_space<vmem>>) attributes {dimension_semantics = [#tpu.dimension_semantics<parallel>, #tpu.dimension_semantics<parallel>], iteration_bounds = array<i64: 1, 1>, scalar_prefetch = 0 : i64, scratch_operands = 0 : i64, tpu.core_type = #tpu.core_type<tc>, window_params = [{transform_indices = @transform_0, window_bounds = array<i64: 2, 64>}, {transform_indices = @transform_1, window_bounds = array<i64: 64, 128>}, {transform_indices = @transform_2, window_bounds = array<i64: 1, 128>}, {transform_indices = @transform_3, window_bounds = array<i64: 1, 128>}, {transform_indices = @transform_4, window_bounds = array<i64: 2, 128>}]} {
    %c0 = arith.constant 0 : index
    %c0_0 = arith.constant 0 : index
    %0 = vector.load %arg2[%c0, %c0_0] : memref<2x64xbf16, #tpu.memory_space<vmem>>, vector<2x64xbf16>
    %c0_1 = arith.constant 0 : index
    %c0_2 = arith.constant 0 : index
    %1 = vector.load %arg3[%c0_1, %c0_2] : memref<64x128xbf16, #tpu.memory_space<vmem>>, vector<64x128xbf16>
    %cst = arith.constant dense<0.000000e+00> : vector<2x128xf32>
    %2 = tpu.matmul %0, %1, %cst {dimension_numbers = #tpu.dot_dimension_numbers<[1], [0], [0], [1], [0, 0, 1, 1], [], []>} : vector<2x64xbf16>, vector<64x128xbf16>, vector<2x128xf32> -> vector<2x128xf32>
    %c0_3 = arith.constant 0 : index
    %c0_4 = arith.constant 0 : index
    %3 = vector.load %arg4[%c0_3, %c0_4] : memref<1x128xf32, #tpu.memory_space<vmem>>, vector<1x128xf32>
    %4 = vector.broadcast %3 : vector<1x128xf32> to vector<2x128xf32>
    %5 = arith.mulf %2, %4 : vector<2x128xf32>
    %c0_5 = arith.constant 0 : index
    %c0_6 = arith.constant 0 : index
    %6 = vector.load %arg5[%c0_5, %c0_6] : memref<1x128xf32, #tpu.memory_space<vmem>>, vector<1x128xf32>
    %7 = vector.broadcast %6 : vector<1x128xf32> to vector<2x128xf32>
    %8 = arith.addf %5, %7 : vector<2x128xf32>
    %9 = arith.truncf %8 : vector<2x128xf32> to vector<2x128xbf16>
    %c0_7 = arith.constant 0 : index
    %c0_8 = arith.constant 0 : index
    %10 = vector.load %arg6[%c0_7, %c0_8] : memref<2x128xbf16, #tpu.memory_space<vmem>>, vector<2x128xbf16>
    tpu.vector_store %arg6[%c0_7, %c0_8], %9 {strides = array<i32>} : memref<2x128xbf16, #tpu.memory_space<vmem>>, vector<2x128xbf16>,
    return
  }
  func.func @transform_0(%arg0: i32, %arg1: i32) -> (i32, i32) {
    %c0_i32 = arith.constant 0 : i32
    %c0_i32_0 = arith.constant 0 : i32
    return %arg0, %c0_i32 : i32, i32
  }
  func.func @transform_1(%arg0: i32, %arg1: i32) -> (i32, i32) {
    %c0_i32 = arith.constant 0 : i32
    %c0_i32_0 = arith.constant 0 : i32
    return %c0_i32, %arg1 : i32, i32
  }
  func.func @transform_2(%arg0: i32, %arg1: i32) -> (i32, i32) {
    %c0_i32 = arith.constant 0 : i32
    %c0_i32_0 = arith.constant 0 : i32
    return %c0_i32, %arg1 : i32, i32
  }
  func.func @transform_3(%arg0: i32, %arg1: i32) -> (i32, i32) {
    %c0_i32 = arith.constant 0 : i32
    %c0_i32_0 = arith.constant 0 : i32
    return %c0_i32, %arg1 : i32, i32
  }
  func.func @transform_4(%arg0: i32, %arg1: i32) -> (i32, i32) {
    %c0_i32 = arith.constant 0 : i32
    return %arg0, %arg1 : i32, i32
  }
}

module attributes {stable_mosaic.version = 11 : i64} {
  func.func @_gemm_kernel_single(%arg0: i32, %arg1: i32, %arg2: memref<2x576xbf16, #tpu.memory_space<vmem>>, %arg3: memref<576x128xbf16, #tpu.memory_space<vmem>>, %arg4: memref<1x128xf32, #tpu.memory_space<vmem>>, %arg5: memref<1x128xf32, #tpu.memory_space<vmem>>, %arg6: memref<2x128xbf16, #tpu.memory_space<vmem>>) attributes {dimension_semantics = [#tpu.dimension_semantics<parallel>, #tpu.dimension_semantics<parallel>], iteration_bounds = array<i64: 1, 1>, scalar_prefetch = 0 : i64, scratch_operands = 0 : i64, tpu.core_type = #tpu.core_type<tc>, window_params = [{transform_indices = @transform_0, window_bounds = array<i64: 2, 576>}, {transform_indices = @transform_1, window_bounds = array<i64: 576, 128>}, {transform_indices = @transform_2, window_bounds = array<i64: 1, 128>}, {transform_indices = @transform_3, window_bounds = array<i64: 1, 128>}, {transform_indices = @transform_4, window_bounds = array<i64: 2, 128>}]} {
    %c0 = arith.constant 0 : index
    %c0_0 = arith.constant 0 : index
    %0 = vector.load %arg2[%c0, %c0_0] : memref<2x576xbf16, #tpu.memory_space<vmem>>, vector<2x576xbf16>
    %c0_1 = arith.constant 0 : index
    %c0_2 = arith.constant 0 : index
    %1 = vector.load %arg3[%c0_1, %c0_2] : memref<576x128xbf16, #tpu.memory_space<vmem>>, vector<576x128xbf16>
    %cst = arith.constant dense<0.000000e+00> : vector<2x128xf32>
    %2 = tpu.matmul %0, %1, %cst {dimension_numbers = #tpu.dot_dimension_numbers<[1], [0], [0], [1], [0, 0, 1, 1], [], []>} : vector<2x576xbf16>, vector<576x128xbf16>, vector<2x128xf32> -> vector<2x128xf32>
    %c0_3 = arith.constant 0 : index
    %c0_4 = arith.constant 0 : index
    %3 = vector.load %arg4[%c0_3, %c0_4] : memref<1x128xf32, #tpu.memory_space<vmem>>, vector<1x128xf32>
    %4 = vector.broadcast %3 : vector<1x128xf32> to vector<2x128xf32>
    %5 = arith.mulf %2, %4 : vector<2x128xf32>
    %c0_5 = arith.constant 0 : index
    %c0_6 = arith.constant 0 : index
    %6 = vector.load %arg5[%c0_5, %c0_6] : memref<1x128xf32, #tpu.memory_space<vmem>>, vector<1x128xf32>
    %7 = vector.broadcast %6 : vector<1x128xf32> to vector<2x128xf32>
    %8 = arith.addf %5, %7 : vector<2x128xf32>
    %cst_7 = arith.constant 0.000000e+00 : f32
    %9 = vector.broadcast %cst_7 : f32 to vector<2x128xf32>
    %10 = arith.cmpf oge, %8, %9 : vector<2x128xf32>
    %cst_8 = arith.constant 0.00999999977 : f32
    %11 = vector.broadcast %cst_8 : f32 to vector<2x128xf32>
    %12 = arith.mulf %11, %8 : vector<2x128xf32>
    %13 = arith.select %10, %8, %12 : vector<2x128xi1>, vector<2x128xf32>
    %14 = arith.truncf %13 : vector<2x128xf32> to vector<2x128xbf16>
    %c0_9 = arith.constant 0 : index
    %c0_10 = arith.constant 0 : index
    %15 = vector.load %arg6[%c0_9, %c0_10] : memref<2x128xbf16, #tpu.memory_space<vmem>>, vector<2x128xbf16>
    tpu.vector_store %arg6[%c0_9, %c0_10], %14 {strides = array<i32>} : memref<2x128xbf16, #tpu.memory_space<vmem>>, vector<2x128xbf16>,
    return
  }
  func.func @transform_0(%arg0: i32, %arg1: i32) -> (i32, i32) {
    %c0_i32 = arith.constant 0 : i32
    %c0_i32_0 = arith.constant 0 : i32
    return %arg0, %c0_i32 : i32, i32
  }
  func.func @transform_1(%arg0: i32, %arg1: i32) -> (i32, i32) {
    %c0_i32 = arith.constant 0 : i32
    %c0_i32_0 = arith.constant 0 : i32
    return %c0_i32, %arg1 : i32, i32
  }
  func.func @transform_2(%arg0: i32, %arg1: i32) -> (i32, i32) {
    %c0_i32 = arith.constant 0 : i32
    %c0_i32_0 = arith.constant 0 : i32
    return %c0_i32, %arg1 : i32, i32
  }
  func.func @transform_3(%arg0: i32, %arg1: i32) -> (i32, i32) {
    %c0_i32 = arith.constant 0 : i32
    %c0_i32_0 = arith.constant 0 : i32
    return %c0_i32, %arg1 : i32, i32
  }
  func.func @transform_4(%arg0: i32, %arg1: i32) -> (i32, i32) {
    %c0_i32 = arith.constant 0 : i32
    return %arg0, %arg1 : i32, i32
  }
}

module attributes {stable_mosaic.version = 11 : i64} {
  func.func @_gemm_kernel_single(%arg0: i32, %arg1: i32, %arg2: memref<2x1152xbf16, #tpu.memory_space<vmem>>, %arg3: memref<1152x128xbf16, #tpu.memory_space<vmem>>, %arg4: memref<1x128xf32, #tpu.memory_space<vmem>>, %arg5: memref<1x128xf32, #tpu.memory_space<vmem>>, %arg6: memref<2x128xbf16, #tpu.memory_space<vmem>>, %arg7: memref<2x128xbf16, #tpu.memory_space<vmem>>) attributes {dimension_semantics = [#tpu.dimension_semantics<parallel>, #tpu.dimension_semantics<parallel>], iteration_bounds = array<i64: 1, 1>, scalar_prefetch = 0 : i64, scratch_operands = 0 : i64, tpu.core_type = #tpu.core_type<tc>, window_params = [{transform_indices = @transform_0, window_bounds = array<i64: 2, 1152>}, {transform_indices = @transform_1, window_bounds = array<i64: 1152, 128>}, {transform_indices = @transform_2, window_bounds = array<i64: 1, 128>}, {transform_indices = @transform_3, window_bounds = array<i64: 1, 128>}, {transform_indices = @transform_4, window_bounds = array<i64: 2, 128>}, {transform_indices = @transform_5, window_bounds = array<i64: 2, 128>}]} {
    %c0 = arith.constant 0 : index
    %c0_0 = arith.constant 0 : index
    %0 = vector.load %arg2[%c0, %c0_0] : memref<2x1152xbf16, #tpu.memory_space<vmem>>, vector<2x1152xbf16>
    %c0_1 = arith.constant 0 : index
    %c0_2 = arith.constant 0 : index
    %1 = vector.load %arg3[%c0_1, %c0_2] : memref<1152x128xbf16, #tpu.memory_space<vmem>>, vector<1152x128xbf16>
    %cst = arith.constant dense<0.000000e+00> : vector<2x128xf32>
    %2 = tpu.matmul %0, %1, %cst {dimension_numbers = #tpu.dot_dimension_numbers<[1], [0], [0], [1], [0, 0, 1, 1], [], []>} : vector<2x1152xbf16>, vector<1152x128xbf16>, vector<2x128xf32> -> vector<2x128xf32>
    %c0_3 = arith.constant 0 : index
    %c0_4 = arith.constant 0 : index
    %3 = vector.load %arg4[%c0_3, %c0_4] : memref<1x128xf32, #tpu.memory_space<vmem>>, vector<1x128xf32>
    %4 = vector.broadcast %3 : vector<1x128xf32> to vector<2x128xf32>
    %5 = arith.mulf %2, %4 : vector<2x128xf32>
    %c0_5 = arith.constant 0 : index
    %c0_6 = arith.constant 0 : index
    %6 = vector.load %arg5[%c0_5, %c0_6] : memref<1x128xf32, #tpu.memory_space<vmem>>, vector<1x128xf32>
    %7 = vector.broadcast %6 : vector<1x128xf32> to vector<2x128xf32>
    %8 = arith.addf %5, %7 : vector<2x128xf32>
    %c0_7 = arith.constant 0 : index
    %c0_8 = arith.constant 0 : index
    %9 = vector.load %arg6[%c0_7, %c0_8] : memref<2x128xbf16, #tpu.memory_space<vmem>>, vector<2x128xbf16>
    %10 = arith.extf %9 : vector<2x128xbf16> to vector<2x128xf32>
    %11 = arith.addf %8, %10 : vector<2x128xf32>
    %cst_9 = arith.constant 0.000000e+00 : f32
    %12 = vector.broadcast %cst_9 : f32 to vector<2x128xf32>
    %13 = arith.cmpf oge, %11, %12 : vector<2x128xf32>
    %cst_10 = arith.constant 0.00999999977 : f32
    %14 = vector.broadcast %cst_10 : f32 to vector<2x128xf32>
    %15 = arith.mulf %14, %11 : vector<2x128xf32>
    %16 = arith.select %13, %11, %15 : vector<2x128xi1>, vector<2x128xf32>
    %17 = arith.truncf %16 : vector<2x128xf32> to vector<2x128xbf16>
    %c0_11 = arith.constant 0 : index
    %c0_12 = arith.constant 0 : index
    %18 = vector.load %arg7[%c0_11, %c0_12] : memref<2x128xbf16, #tpu.memory_space<vmem>>, vector<2x128xbf16>
    tpu.vector_store %arg7[%c0_11, %c0_12], %17 {strides = array<i32>} : memref<2x128xbf16, #tpu.memory_space<vmem>>, vector<2x128xbf16>,
    return
  }
  func.func @transform_0(%arg0: i32, %arg1: i32) -> (i32, i32) {
    %c0_i32 = arith.constant 0 : i32
    %c0_i32_0 = arith.constant 0 : i32
    return %arg0, %c0_i32 : i32, i32
  }
  func.func @transform_1(%arg0: i32, %arg1: i32) -> (i32, i32) {
    %c0_i32 = arith.constant 0 : i32
    %c0_i32_0 = arith.constant 0 : i32
    return %c0_i32, %arg1 : i32, i32
  }
  func.func @transform_2(%arg0: i32, %arg1: i32) -> (i32, i32) {
    %c0_i32 = arith.constant 0 : i32
    %c0_i32_0 = arith.constant 0 : i32
    return %c0_i32, %arg1 : i32, i32
  }
  func.func @transform_3(%arg0: i32, %arg1: i32) -> (i32, i32) {
    %c0_i32 = arith.constant 0 : i32
    %c0_i32_0 = arith.constant 0 : i32
    return %c0_i32, %arg1 : i32, i32
  }
  func.func @transform_4(%arg0: i32, %arg1: i32) -> (i32, i32) {
    %c0_i32 = arith.constant 0 : i32
    return %arg0, %arg1 : i32, i32
  }
  func.func @transform_5(%arg0: i32, %arg1: i32) -> (i32, i32) {
    %c0_i32 = arith.constant 0 : i32
    return %arg0, %arg1 : i32, i32
  }
}

module attributes {stable_mosaic.version = 11 : i64} {
  func.func @_gemm_kernel_single(%arg0: i32, %arg1: i32, %arg2: memref<2x1152xbf16, #tpu.memory_space<vmem>>, %arg3: memref<1152x128xbf16, #tpu.memory_space<vmem>>, %arg4: memref<1x128xf32, #tpu.memory_space<vmem>>, %arg5: memref<1x128xf32, #tpu.memory_space<vmem>>, %arg6: memref<2x128xbf16, #tpu.memory_space<vmem>>) attributes {dimension_semantics = [#tpu.dimension_semantics<parallel>, #tpu.dimension_semantics<parallel>], iteration_bounds = array<i64: 1, 2>, scalar_prefetch = 0 : i64, scratch_operands = 0 : i64, tpu.core_type = #tpu.core_type<tc>, window_params = [{transform_indices = @transform_0, window_bounds = array<i64: 2, 1152>}, {transform_indices = @transform_1, window_bounds = array<i64: 1152, 128>}, {transform_indices = @transform_2, window_bounds = array<i64: 1, 128>}, {transform_indices = @transform_3, window_bounds = array<i64: 1, 128>}, {transform_indices = @transform_4, window_bounds = array<i64: 2, 128>}]} {
    %c0 = arith.constant 0 : index
    %c0_0 = arith.constant 0 : index
    %0 = vector.load %arg2[%c0, %c0_0] : memref<2x1152xbf16, #tpu.memory_space<vmem>>, vector<2x1152xbf16>
    %c0_1 = arith.constant 0 : index
    %c0_2 = arith.constant 0 : index
    %1 = vector.load %arg3[%c0_1, %c0_2] : memref<1152x128xbf16, #tpu.memory_space<vmem>>, vector<1152x128xbf16>
    %cst = arith.constant dense<0.000000e+00> : vector<2x128xf32>
    %2 = tpu.matmul %0, %1, %cst {dimension_numbers = #tpu.dot_dimension_numbers<[1], [0], [0], [1], [0, 0, 1, 1], [], []>} : vector<2x1152xbf16>, vector<1152x128xbf16>, vector<2x128xf32> -> vector<2x128xf32>
    %c0_3 = arith.constant 0 : index
    %c0_4 = arith.constant 0 : index
    %3 = vector.load %arg4[%c0_3, %c0_4] : memref<1x128xf32, #tpu.memory_space<vmem>>, vector<1x128xf32>
    %4 = vector.broadcast %3 : vector<1x128xf32> to vector<2x128xf32>
    %5 = arith.mulf %2, %4 : vector<2x128xf32>
    %c0_5 = arith.constant 0 : index
    %c0_6 = arith.constant 0 : index
    %6 = vector.load %arg5[%c0_5, %c0_6] : memref<1x128xf32, #tpu.memory_space<vmem>>, vector<1x128xf32>
    %7 = vector.broadcast %6 : vector<1x128xf32> to vector<2x128xf32>
    %8 = arith.addf %5, %7 : vector<2x128xf32>
    %cst_7 = arith.constant 0.000000e+00 : f32
    %9 = vector.broadcast %cst_7 : f32 to vector<2x128xf32>
    %10 = arith.cmpf oge, %8, %9 : vector<2x128xf32>
    %cst_8 = arith.constant 0.00999999977 : f32
    %11 = vector.broadcast %cst_8 : f32 to vector<2x128xf32>
    %12 = arith.mulf %11, %8 : vector<2x128xf32>
    %13 = arith.select %10, %8, %12 : vector<2x128xi1>, vector<2x128xf32>
    %14 = arith.truncf %13 : vector<2x128xf32> to vector<2x128xbf16>
    %c0_9 = arith.constant 0 : index
    %c0_10 = arith.constant 0 : index
    %15 = vector.load %arg6[%c0_9, %c0_10] : memref<2x128xbf16, #tpu.memory_space<vmem>>, vector<2x128xbf16>
    tpu.vector_store %arg6[%c0_9, %c0_10], %14 {strides = array<i32>} : memref<2x128xbf16, #tpu.memory_space<vmem>>, vector<2x128xbf16>,
    return
  }
  func.func @transform_0(%arg0: i32, %arg1: i32) -> (i32, i32) {
    %c0_i32 = arith.constant 0 : i32
    %c0_i32_0 = arith.constant 0 : i32
    return %arg0, %c0_i32 : i32, i32
  }
  func.func @transform_1(%arg0: i32, %arg1: i32) -> (i32, i32) {
    %c0_i32 = arith.constant 0 : i32
    %c0_i32_0 = arith.constant 0 : i32
    return %c0_i32, %arg1 : i32, i32
  }
  func.func @transform_2(%arg0: i32, %arg1: i32) -> (i32, i32) {
    %c0_i32 = arith.constant 0 : i32
    %c0_i32_0 = arith.constant 0 : i32
    return %c0_i32, %arg1 : i32, i32
  }
  func.func @transform_3(%arg0: i32, %arg1: i32) -> (i32, i32) {
    %c0_i32 = arith.constant 0 : i32
    %c0_i32_0 = arith.constant 0 : i32
    return %c0_i32, %arg1 : i32, i32
  }
  func.func @transform_4(%arg0: i32, %arg1: i32) -> (i32, i32) {
    %c0_i32 = arith.constant 0 : i32
    return %arg0, %arg1 : i32, i32
  }
}

module attributes {stable_mosaic.version = 11 : i64} {
  func.func @_gemm_kernel_single(%arg0: i32, %arg1: i32, %arg2: memref<2x128xbf16, #tpu.memory_space<vmem>>, %arg3: memref<128x128xbf16, #tpu.memory_space<vmem>>, %arg4: memref<1x128xf32, #tpu.memory_space<vmem>>, %arg5: memref<1x128xf32, #tpu.memory_space<vmem>>, %arg6: memref<2x128xbf16, #tpu.memory_space<vmem>>) attributes {dimension_semantics = [#tpu.dimension_semantics<parallel>, #tpu.dimension_semantics<parallel>], iteration_bounds = array<i64: 1, 2>, scalar_prefetch = 0 : i64, scratch_operands = 0 : i64, tpu.core_type = #tpu.core_type<tc>, window_params = [{transform_indices = @transform_0, window_bounds = array<i64: 2, 128>}, {transform_indices = @transform_1, window_bounds = array<i64: 128, 128>}, {transform_indices = @transform_2, window_bounds = array<i64: 1, 128>}, {transform_indices = @transform_3, window_bounds = array<i64: 1, 128>}, {transform_indices = @transform_4, window_bounds = array<i64: 2, 128>}]} {
    %c0 = arith.constant 0 : index
    %c0_0 = arith.constant 0 : index
    %0 = vector.load %arg2[%c0, %c0_0] : memref<2x128xbf16, #tpu.memory_space<vmem>>, vector<2x128xbf16>
    %c0_1 = arith.constant 0 : index
    %c0_2 = arith.constant 0 : index
    %1 = vector.load %arg3[%c0_1, %c0_2] : memref<128x128xbf16, #tpu.memory_space<vmem>>, vector<128x128xbf16>
    %cst = arith.constant dense<0.000000e+00> : vector<2x128xf32>
    %2 = tpu.matmul %0, %1, %cst {dimension_numbers = #tpu.dot_dimension_numbers<[1], [0], [0], [1], [0, 0, 1, 1], [], []>} : vector<2x128xbf16>, vector<128x128xbf16>, vector<2x128xf32> -> vector<2x128xf32>
    %c0_3 = arith.constant 0 : index
    %c0_4 = arith.constant 0 : index
    %3 = vector.load %arg4[%c0_3, %c0_4] : memref<1x128xf32, #tpu.memory_space<vmem>>, vector<1x128xf32>
    %4 = vector.broadcast %3 : vector<1x128xf32> to vector<2x128xf32>
    %5 = arith.mulf %2, %4 : vector<2x128xf32>
    %c0_5 = arith.constant 0 : index
    %c0_6 = arith.constant 0 : index
    %6 = vector.load %arg5[%c0_5, %c0_6] : memref<1x128xf32, #tpu.memory_space<vmem>>, vector<1x128xf32>
    %7 = vector.broadcast %6 : vector<1x128xf32> to vector<2x128xf32>
    %8 = arith.addf %5, %7 : vector<2x128xf32>
    %9 = arith.truncf %8 : vector<2x128xf32> to vector<2x128xbf16>
    %c0_7 = arith.constant 0 : index
    %c0_8 = arith.constant 0 : index
    %10 = vector.load %arg6[%c0_7, %c0_8] : memref<2x128xbf16, #tpu.memory_space<vmem>>, vector<2x128xbf16>
    tpu.vector_store %arg6[%c0_7, %c0_8], %9 {strides = array<i32>} : memref<2x128xbf16, #tpu.memory_space<vmem>>, vector<2x128xbf16>,
    return
  }
  func.func @transform_0(%arg0: i32, %arg1: i32) -> (i32, i32) {
    %c0_i32 = arith.constant 0 : i32
    %c0_i32_0 = arith.constant 0 : i32
    return %arg0, %c0_i32 : i32, i32
  }
  func.func @transform_1(%arg0: i32, %arg1: i32) -> (i32, i32) {
    %c0_i32 = arith.constant 0 : i32
    %c0_i32_0 = arith.constant 0 : i32
    return %c0_i32, %arg1 : i32, i32
  }
  func.func @transform_2(%arg0: i32, %arg1: i32) -> (i32, i32) {
    %c0_i32 = arith.constant 0 : i32
    %c0_i32_0 = arith.constant 0 : i32
    return %c0_i32, %arg1 : i32, i32
  }
  func.func @transform_3(%arg0: i32, %arg1: i32) -> (i32, i32) {
    %c0_i32 = arith.constant 0 : i32
    %c0_i32_0 = arith.constant 0 : i32
    return %c0_i32, %arg1 : i32, i32
  }
  func.func @transform_4(%arg0: i32, %arg1: i32) -> (i32, i32) {
    %c0_i32 = arith.constant 0 : i32
    return %arg0, %arg1 : i32, i32
  }
}

module attributes {stable_mosaic.version = 11 : i64} {
  func.func @_gemm_kernel_single(%arg0: i32, %arg1: i32, %arg2: memref<2x2304xbf16, #tpu.memory_space<vmem>>, %arg3: memref<2304x128xbf16, #tpu.memory_space<vmem>>, %arg4: memref<1x128xf32, #tpu.memory_space<vmem>>, %arg5: memref<1x128xf32, #tpu.memory_space<vmem>>, %arg6: memref<2x128xbf16, #tpu.memory_space<vmem>>, %arg7: memref<2x128xbf16, #tpu.memory_space<vmem>>) attributes {dimension_semantics = [#tpu.dimension_semantics<parallel>, #tpu.dimension_semantics<parallel>], iteration_bounds = array<i64: 1, 2>, scalar_prefetch = 0 : i64, scratch_operands = 0 : i64, tpu.core_type = #tpu.core_type<tc>, window_params = [{transform_indices = @transform_0, window_bounds = array<i64: 2, 2304>}, {transform_indices = @transform_1, window_bounds = array<i64: 2304, 128>}, {transform_indices = @transform_2, window_bounds = array<i64: 1, 128>}, {transform_indices = @transform_3, window_bounds = array<i64: 1, 128>}, {transform_indices = @transform_4, window_bounds = array<i64: 2, 128>}, {transform_indices = @transform_5, window_bounds = array<i64: 2, 128>}]} {
    %c0 = arith.constant 0 : index
    %c0_0 = arith.constant 0 : index
    %0 = vector.load %arg2[%c0, %c0_0] : memref<2x2304xbf16, #tpu.memory_space<vmem>>, vector<2x2304xbf16>
    %c0_1 = arith.constant 0 : index
    %c0_2 = arith.constant 0 : index
    %1 = vector.load %arg3[%c0_1, %c0_2] : memref<2304x128xbf16, #tpu.memory_space<vmem>>, vector<2304x128xbf16>
    %cst = arith.constant dense<0.000000e+00> : vector<2x128xf32>
    %2 = tpu.matmul %0, %1, %cst {dimension_numbers = #tpu.dot_dimension_numbers<[1], [0], [0], [1], [0, 0, 1, 1], [], []>} : vector<2x2304xbf16>, vector<2304x128xbf16>, vector<2x128xf32> -> vector<2x128xf32>
    %c0_3 = arith.constant 0 : index
    %c0_4 = arith.constant 0 : index
    %3 = vector.load %arg4[%c0_3, %c0_4] : memref<1x128xf32, #tpu.memory_space<vmem>>, vector<1x128xf32>
    %4 = vector.broadcast %3 : vector<1x128xf32> to vector<2x128xf32>
    %5 = arith.mulf %2, %4 : vector<2x128xf32>
    %c0_5 = arith.constant 0 : index
    %c0_6 = arith.constant 0 : index
    %6 = vector.load %arg5[%c0_5, %c0_6] : memref<1x128xf32, #tpu.memory_space<vmem>>, vector<1x128xf32>
    %7 = vector.broadcast %6 : vector<1x128xf32> to vector<2x128xf32>
    %8 = arith.addf %5, %7 : vector<2x128xf32>
    %c0_7 = arith.constant 0 : index
    %c0_8 = arith.constant 0 : index
    %9 = vector.load %arg6[%c0_7, %c0_8] : memref<2x128xbf16, #tpu.memory_space<vmem>>, vector<2x128xbf16>
    %10 = arith.extf %9 : vector<2x128xbf16> to vector<2x128xf32>
    %11 = arith.addf %8, %10 : vector<2x128xf32>
    %cst_9 = arith.constant 0.000000e+00 : f32
    %12 = vector.broadcast %cst_9 : f32 to vector<2x128xf32>
    %13 = arith.cmpf oge, %11, %12 : vector<2x128xf32>
    %cst_10 = arith.constant 0.00999999977 : f32
    %14 = vector.broadcast %cst_10 : f32 to vector<2x128xf32>
    %15 = arith.mulf %14, %11 : vector<2x128xf32>
    %16 = arith.select %13, %11, %15 : vector<2x128xi1>, vector<2x128xf32>
    %17 = arith.truncf %16 : vector<2x128xf32> to vector<2x128xbf16>
    %c0_11 = arith.constant 0 : index
    %c0_12 = arith.constant 0 : index
    %18 = vector.load %arg7[%c0_11, %c0_12] : memref<2x128xbf16, #tpu.memory_space<vmem>>, vector<2x128xbf16>
    tpu.vector_store %arg7[%c0_11, %c0_12], %17 {strides = array<i32>} : memref<2x128xbf16, #tpu.memory_space<vmem>>, vector<2x128xbf16>,
    return
  }
  func.func @transform_0(%arg0: i32, %arg1: i32) -> (i32, i32) {
    %c0_i32 = arith.constant 0 : i32
    %c0_i32_0 = arith.constant 0 : i32
    return %arg0, %c0_i32 : i32, i32
  }
  func.func @transform_1(%arg0: i32, %arg1: i32) -> (i32, i32) {
    %c0_i32 = arith.constant 0 : i32
    %c0_i32_0 = arith.constant 0 : i32
    return %c0_i32, %arg1 : i32, i32
  }
  func.func @transform_2(%arg0: i32, %arg1: i32) -> (i32, i32) {
    %c0_i32 = arith.constant 0 : i32
    %c0_i32_0 = arith.constant 0 : i32
    return %c0_i32, %arg1 : i32, i32
  }
  func.func @transform_3(%arg0: i32, %arg1: i32) -> (i32, i32) {
    %c0_i32 = arith.constant 0 : i32
    %c0_i32_0 = arith.constant 0 : i32
    return %c0_i32, %arg1 : i32, i32
  }
  func.func @transform_4(%arg0: i32, %arg1: i32) -> (i32, i32) {
    %c0_i32 = arith.constant 0 : i32
    return %arg0, %arg1 : i32, i32
  }
  func.func @transform_5(%arg0: i32, %arg1: i32) -> (i32, i32) {
    %c0_i32 = arith.constant 0 : i32
    return %arg0, %arg1 : i32, i32
  }
}

module attributes {stable_mosaic.version = 11 : i64} {
  func.func @_head_kernel(%arg0: i32, %arg1: memref<2x1x256xf32, #tpu.memory_space<vmem>>, %arg2: memref<256x128xf32, #tpu.memory_space<vmem>>, %arg3: memref<1x128xf32, #tpu.memory_space<vmem>>, %arg4: memref<128x10xf32, #tpu.memory_space<vmem>>, %arg5: memref<1x10xf32, #tpu.memory_space<vmem>>, %arg6: memref<2x10xf32, #tpu.memory_space<vmem>>) attributes {dimension_semantics = [#tpu.dimension_semantics<arbitrary>], iteration_bounds = array<i64: 1>, scalar_prefetch = 0 : i64, scratch_operands = 0 : i64, tpu.core_type = #tpu.core_type<tc>, window_params = [{pipeline_mode = #tpu.pipeline_mode<synchronous>, transform_indices = @transform_0, window_bounds = array<i64: 2, 1, 256>}, {pipeline_mode = #tpu.pipeline_mode<synchronous>, transform_indices = @transform_1, window_bounds = array<i64: 256, 128>}, {pipeline_mode = #tpu.pipeline_mode<synchronous>, transform_indices = @transform_2, window_bounds = array<i64: 1, 128>}, {pipeline_mode = #tpu.pipeline_mode<synchronous>, transform_indices = @transform_3, window_bounds = array<i64: 128, 10>}, {pipeline_mode = #tpu.pipeline_mode<synchronous>, transform_indices = @transform_4, window_bounds = array<i64: 1, 10>}, {pipeline_mode = #tpu.pipeline_mode<synchronous>, transform_indices = @transform_5, window_bounds = array<i64: 2, 10>}]} {
    %c0 = arith.constant 0 : index
    %c0_0 = arith.constant 0 : index
    %c0_1 = arith.constant 0 : index
    %0 = vector.load %arg1[%c0, %c0_0, %c0_1] : memref<2x1x256xf32, #tpu.memory_space<vmem>>, vector<2x1x256xf32>
    %cst = arith.constant dense<0.000000e+00> : vector<2x256xf32>
    %1 = vector.multi_reduction <add>, %0, %cst [1] : vector<2x1x256xf32> to vector<2x256xf32>
    %cst_2 = arith.constant 1.000000e+00 : f32
    %2 = vector.broadcast %cst_2 : f32 to vector<2x256xf32>
    %3 = arith.mulf %1, %2 : vector<2x256xf32>
    %c0_3 = arith.constant 0 : index
    %c0_4 = arith.constant 0 : index
    %4 = vector.load %arg2[%c0_3, %c0_4] : memref<256x128xf32, #tpu.memory_space<vmem>>, vector<256x128xf32>
    %cst_5 = arith.constant dense<0.000000e+00> : vector<2x128xf32>
    %5 = tpu.matmul %3, %4, %cst_5 {dimension_numbers = #tpu.dot_dimension_numbers<[1], [0], [0], [1], [0, 0, 1, 1], [], []>} : vector<2x256xf32>, vector<256x128xf32>, vector<2x128xf32> -> vector<2x128xf32>
    %c0_6 = arith.constant 0 : index
    %c0_7 = arith.constant 0 : index
    %6 = vector.load %arg3[%c0_6, %c0_7] : memref<1x128xf32, #tpu.memory_space<vmem>>, vector<1x128xf32>
    %7 = vector.broadcast %6 : vector<1x128xf32> to vector<2x128xf32>
    %8 = arith.addf %5, %7 : vector<2x128xf32>
    %cst_8 = arith.constant 0.000000e+00 : f32
    %9 = vector.broadcast %cst_8 : f32 to vector<2x128xf32>
    %10 = arith.cmpf oge, %8, %9 : vector<2x128xf32>
    %cst_9 = arith.constant 0.00999999977 : f32
    %11 = vector.broadcast %cst_9 : f32 to vector<2x128xf32>
    %12 = arith.mulf %11, %8 : vector<2x128xf32>
    %13 = arith.select %10, %8, %12 : vector<2x128xi1>, vector<2x128xf32>
    %c0_10 = arith.constant 0 : index
    %c0_11 = arith.constant 0 : index
    %14 = vector.load %arg4[%c0_10, %c0_11] : memref<128x10xf32, #tpu.memory_space<vmem>>, vector<128x10xf32>
    %cst_12 = arith.constant dense<0.000000e+00> : vector<2x10xf32>
    %15 = tpu.matmul %13, %14, %cst_12 {dimension_numbers = #tpu.dot_dimension_numbers<[1], [0], [0], [1], [0, 0, 1, 1], [], []>} : vector<2x128xf32>, vector<128x10xf32>, vector<2x10xf32> -> vector<2x10xf32>
    %c0_13 = arith.constant 0 : index
    %c0_14 = arith.constant 0 : index
    %16 = vector.load %arg5[%c0_13, %c0_14] : memref<1x10xf32, #tpu.memory_space<vmem>>, vector<1x10xf32>
    %17 = vector.broadcast %16 : vector<1x10xf32> to vector<2x10xf32>
    %18 = arith.addf %15, %17 : vector<2x10xf32>
    %cst_15 = arith.constant dense<0xFF800000> : vector<2xf32>
    %19 = vector.multi_reduction <maximumf>, %18, %cst_15 [1] : vector<2x10xf32> to vector<2xf32>
    %20 = vector.shape_cast %19 : vector<2xf32> to vector<2x1xf32>
    %21 = vector.broadcast %20 : vector<2x1xf32> to vector<2x10xf32>
    %22 = arith.subf %18, %21 : vector<2x10xf32>
    %23 = math.exp %22 : vector<2x10xf32>
    %cst_16 = arith.constant dense<0.000000e+00> : vector<2xf32>
    %24 = vector.multi_reduction <add>, %23, %cst_16 [1] : vector<2x10xf32> to vector<2xf32>
    %25 = vector.shape_cast %24 : vector<2xf32> to vector<2x1xf32>
    %26 = tpu.reciprocal %25 : vector<2x1xf32> -> vector<2x1xf32>
    %27 = vector.broadcast %26 : vector<2x1xf32> to vector<2x10xf32>
    %28 = arith.mulf %23, %27 : vector<2x10xf32>
    %c0_17 = arith.constant 0 : index
    %c0_18 = arith.constant 0 : index
    %29 = vector.load %arg6[%c0_17, %c0_18] : memref<2x10xf32, #tpu.memory_space<vmem>>, vector<2x10xf32>
    tpu.vector_store %arg6[%c0_17, %c0_18], %28 {strides = array<i32>} : memref<2x10xf32, #tpu.memory_space<vmem>>, vector<2x10xf32>,
    return
  }
  func.func @transform_0(%arg0: i32) -> (i32, i32, i32) {
    %c0_i32 = arith.constant 0 : i32
    %c0_i32_0 = arith.constant 0 : i32
    %c0_i32_1 = arith.constant 0 : i32
    %c0_i32_2 = arith.constant 0 : i32
    return %c0_i32, %c0_i32_0, %c0_i32_1 : i32, i32, i32
  }
  func.func @transform_1(%arg0: i32) -> (i32, i32) {
    %c0_i32 = arith.constant 0 : i32
    %c0_i32_0 = arith.constant 0 : i32
    %c0_i32_1 = arith.constant 0 : i32
    return %c0_i32, %c0_i32_0 : i32, i32
  }
  func.func @transform_2(%arg0: i32) -> (i32, i32) {
    %c0_i32 = arith.constant 0 : i32
    %c0_i32_0 = arith.constant 0 : i32
    %c0_i32_1 = arith.constant 0 : i32
    return %c0_i32, %c0_i32_0 : i32, i32
  }
  func.func @transform_3(%arg0: i32) -> (i32, i32) {
    %c0_i32 = arith.constant 0 : i32
    %c0_i32_0 = arith.constant 0 : i32
    %c0_i32_1 = arith.constant 0 : i32
    return %c0_i32, %c0_i32_0 : i32, i32
  }
  func.func @transform_4(%arg0: i32) -> (i32, i32) {
    %c0_i32 = arith.constant 0 : i32
    %c0_i32_0 = arith.constant 0 : i32
    %c0_i32_1 = arith.constant 0 : i32
    return %c0_i32, %c0_i32_0 : i32, i32
  }
  func.func @transform_5(%arg0: i32) -> (i32, i32) {
    %c0_i32 = arith.constant 0 : i32
    %c0_i32_0 = arith.constant 0 : i32
    %c0_i32_1 = arith.constant 0 : i32
    return %c0_i32, %c0_i32_0 : i32, i32
  }
}

</mosaic_0001>

<bundles_post_ra>
// kernel: resnet_forward.16
= control target key start
LH: loop header
LB: loop body
LE: loop exit
PB: predicated region body
PF: predicated region fallthrough
CT: control target
= control target key end

     0   :  { %s912_s15 = smov 0   ;;  %s914_s16 = smov 0   ;;  %s1040_s0 = inlined_call_operand.vmem [shape: bf16[128,196], index: 0, kind: input, shape index: {}]   ;;  %s1041_s1 = inlined_call_operand.vmem [shape: bf16[196,128], index: 1, kind: input, shape index: {}]   ;;  %s1042_s2 = inlined_call_operand.vmem [shape: f32[1,128], index: 2, kind: input, shape index: {}]   ;;  %s1043_s3 = inlined_call_operand.vmem [shape: f32[1,128], index: 3, kind: input, shape index: {}]   ;;  %s1044_s4 = inlined_call_operand.vmem [shape: bf16[128,128], index: 4, kind: output, shape index: {}]  }
   0x1   :  { %s916_s17 = smov 0  }
   0x2 LB: > { %s26_s18 = sadd.s32 1, %s880_s16  ;;  %p711_p0 = scmp.ge.s32.totalorder %s884_s17, 1  ;;  %s884_s17 = sphi %s916_s17, %s14_s17   ;;  %s880_s16 = sphi %s914_s16, %s1046_s16   ;;  %s876_s15 = sphi %s912_s15, %s1045_s15  }
   0x3   : > { %p28_p1 = scmp.ge.s32.totalorder %s26_s18, 2  ;;  %p203_p2 = scmp.lt.s32.totalorder %s884_s17, 3 }
   0x5   : > { %s1048_s18 = smov (%p28_p1, %s26_s18), 0  ;;  %p204_p3 = pnand %p711_p0, %p203_p2 }
   0x6   : > { %v837_v0 = vld [vmem:[%s1041_s1] sm:$0xff] (!%p204_p3)   ;;  %v886_v1 = vmov (!%p204_p3), 0   ;;  %v838_v2 = vld [vmem:[%s1041_s1 + $0x8] sm:$0xff] (!%p204_p3)   ;;  %s712_s23 = sshll.u32 (!%p204_p3), %s876_s15, 3  ;;  %v839_v3 = vld [vmem:[%s1041_s1 + $0x10] sm:$0xff] (!%p204_p3)   ;;  %vm414_vm0 = vcmask (!%p204_p3), 556032  }
   0x7   : > { %207 = sbr.rel (%p204_p3) target bundleno = 292 (0x124), region = 36  ;;  %431 = vmatprep.subr.bf16.mxu0 (!%p204_p3), %v886_v1  ;;  %786 = vmatprep.subr.bf16.mxu1 (!%p204_p3), %v886_v1  ;;  %p244_p4 = scmp.lt.s32.totalorder (!%p204_p3), %s712_s23, 15  ;;  %v840_v4 = vld [vmem:[%s1041_s1 + $0x18] sm:$0xff] (!%p204_p3)   ;;  %v841_v6 = vld [vmem:[%s1041_s1 + $0x20] sm:$0xff] (!%p204_p3)   ;;  %v842_v8 = vld [vmem:[%s1041_s1 + $0x28] sm:$0xff] (!%p204_p3)   ;;  %vm427_vm1 = vcmask (!%p204_p3), 1041408  }
   0x8   : > { %432 = vmatpush1.bf16.msra.mxu0 (!%p204_p3), %v837_v0  ;;  %799 = vmatpush1.bf16.msra.mxu1 (!%p204_p3), %v837_v0  ;;  %v843_v9 = vld [vmem:[%s1041_s1 + $0x30] sm:$0xff] (!%p204_p3)   ;;  %v844_v10 = vld [vmem:[%s1041_s1 + $0x38] sm:$0xff] (!%p204_p3)   ;;  %v845_v11 = vld [vmem:[%s1041_s1 + $0x40] sm:$0xff] (!%p204_p3)  }
   0x9   : > { %433 = vmatprep.subr.bf16.mxu0 (!%p204_p3), %v886_v1  ;;  %787 = vmatprep.subr.bf16.mxu1 (!%p204_p3), %v886_v1  ;;  %v846_v12 = vld [vmem:[%s1041_s1 + $0x48] sm:$0xff] (!%p204_p3)   ;;  %v847_v13 = vld [vmem:[%s1041_s1 + $0x50] sm:$0xff] (!%p204_p3)   ;;  %v848_v14 = vld [vmem:[%s1041_s1 + $0x58] sm:$0xff] (!%p204_p3)  }
   0xa   : > { %v849_v15 = vld [vmem:[%s1041_s1 + $0x60] ss:$0 sps:$4 sm:$0x33] (!%p204_p3)  }
   0xb   : > { %v429_v16 = vsel (!%p204_p3), %vm427_vm1, %v849_v15, 0  ;;  %v742_v23 = vld [vmem:[%s1042_s2] ss:$0 sm:$0xff] (!%p204_p3) }
   0xc   : > { %434 = vmatpush1.bf16.msra.mxu0 (!%p204_p3), %v838_v2  ;;  %800 = vmatpush1.bf16.msra.mxu1 (!%p204_p3), %v838_v2  ;;  %v743_v25 = vld [vmem:[%s1043_s3] ss:$0 sm:$0xff] (!%p204_p3) }
   0xd   : > { %435 = vmatprep.subr.bf16.mxu0 (!%p204_p3), %v886_v1  ;;  %788 = vmatprep.subr.bf16.mxu1 (!%p204_p3), %v886_v1 }
   0xe   : > { %s1050_s23 = smov (!%p244_p4, %s712_s23), 15 }
   0xf   : > { %s754_s26 = sshll.u32 %s1050_s23, 3 }
  0x10   : > { %436 = vmatpush1.bf16.msra.mxu0 %v839_v3  ;;  %801 = vmatpush1.bf16.msra.mxu1 %v839_v3  ;;  %s954_s5 = scalar_lea.vmem %s1040_s0, %s754_s26 }
  0x11   : > { %437 = vmatprep.subr.bf16.mxu0 %v886_v1  ;;  %789 = vmatprep.subr.bf16.mxu1 %v886_v1  ;;  %v852_v5 = vld [vmem:[%s954_s5 + $0x4] ss:$8 sps:$4 sm:$0xff]   ;;  %v850_v17 = vld [vmem:[%s954_s5] ss:$8 sps:$4 sm:$0xff]   ;;  %v856_v19 = vld [vmem:[%s954_s5 + $0x14] ss:$8 sps:$4 sm:$0xff]  }
  0x12   : > { %v855_v7 = vld [vmem:[%s954_s5 + $0x24] ss:$8 sps:$4 sm:$0xff]   ;;  %738 = vmatprep.mubr.msk.bf16.mxu0 %vm414_vm0, %v852_v5  ;;  %v853_v18 = vld [vmem:[%s954_s5 + $0x20] ss:$8 sps:$4 sm:$0xff]   ;;  %v858_v20 = vld [vmem:[%s954_s5 + $0x34] ss:$8 sps:$4 sm:$0xff]  }
  0x13   : > { %740 = vmatprep.mubr.msk.bf16.mxu1 %vm414_vm0, %v855_v7  ;;  %v860_v21 = vld [vmem:[%s954_s5 + $0x10] ss:$8 sps:$4 sm:$0xff]  }
  0x14   : > { %438 = vmatpush1.bf16.msra.mxu0 %v840_v4  ;;  %802 = vmatpush1.bf16.msra.mxu1 %v840_v4  ;;  %v861_v22 = vld [vmem:[%s954_s5 + $0x30] ss:$8 sps:$4 sm:$0xff]   ;;  %s716_s5 = sshll.u32 %s1050_s23, 2 }
  0x15   : > { %439 = vmatprep.subr.bf16.mxu0 %v886_v1  ;;  %790 = vmatprep.subr.bf16.mxu1 %v886_v1  ;;  %s1025_s9 = scalar_lea.vmem %s1044_s4, %s716_s5 }
  0x18   : > { %440 = vmatpush1.bf16.msra.mxu0 %v841_v6  ;;  %803 = vmatpush1.bf16.msra.mxu1 %v841_v6 }
  0x19   : > { %441 = vmatprep.subr.bf16.mxu0 %v886_v1  ;;  %791 = vmatprep.subr.bf16.mxu1 %v886_v1 }
  0x1c   : > { %442 = vmatpush1.bf16.msra.mxu0 %v842_v8  ;;  %804 = vmatpush1.bf16.msra.mxu1 %v842_v8 }
  0x1d   : > { %443 = vmatprep.subr.bf16.mxu0 %v886_v1  ;;  %792 = vmatprep.subr.bf16.mxu1 %v886_v1 }
  0x20   : > { %444 = vmatpush1.bf16.msra.mxu0 %v843_v9  ;;  %805 = vmatpush1.bf16.msra.mxu1 %v843_v9 }
  0x21   : > { %445 = vmatprep.subr.bf16.mxu0 %v886_v1  ;;  %793 = vmatprep.subr.bf16.mxu1 %v886_v1 }
  0x24   : > { %446 = vmatpush1.bf16.msra.mxu0 %v844_v10  ;;  %806 = vmatpush1.bf16.msra.mxu1 %v844_v10 }
  0x25   : > { %447 = vmatprep.subr.bf16.mxu0 %v886_v1  ;;  %794 = vmatprep.subr.bf16.mxu1 %v886_v1 }
  0x28   : > { %448 = vmatpush1.bf16.msra.mxu0 %v845_v11  ;;  %807 = vmatpush1.bf16.msra.mxu1 %v845_v11 }
  0x29   : > { %449 = vmatprep.subr.bf16.mxu0 %v886_v1  ;;  %795 = vmatprep.subr.bf16.mxu1 %v886_v1 }
  0x2c   : > { %450 = vmatpush1.bf16.msra.mxu0 %v846_v12  ;;  %808 = vmatpush1.bf16.msra.mxu1 %v846_v12 }
  0x2d   : > { %451 = vmatprep.subr.bf16.mxu0 %v886_v1  ;;  %796 = vmatprep.subr.bf16.mxu1 %v886_v1 }
  0x30   : > { %452 = vmatpush1.bf16.msra.mxu0 %v847_v13  ;;  %809 = vmatpush1.bf16.msra.mxu1 %v847_v13 }
  0x31   : > { %453 = vmatprep.subr.bf16.mxu0 %v886_v1  ;;  %797 = vmatprep.subr.bf16.mxu1 %v886_v1 }
  0x34   : > { %454 = vmatpush1.bf16.msra.mxu0 %v848_v14  ;;  %810 = vmatpush1.bf16.msra.mxu1 %v848_v14 }
  0x35   : > { %455 = vmatprep.subr.bf16.mxu0 %v886_v1  ;;  %798 = vmatprep.subr.bf16.mxu1 %v886_v1 }
  0x38   : > { %456 = vmatpush1.bf16.msra.mxu0 %v429_v16  ;;  %811 = vmatpush1.bf16.msra.mxu1 %v429_v16 }
  0x3b   : > { %464 = vmatmul.mubr.bf16.vlgmr.msra.gmra.mrb[0].mxu0 %v850_v17  ;;  %480 = vmatmul.mubr.bf16.vlgmr.msra.gmra.mrb[0].mxu1 %v853_v18 }
  0x3c   : > { %739 = vmatprep.mubr.msk.bf16.mxu0 %vm414_vm0, %v856_v19  ;;  %741 = vmatprep.mubr.msk.bf16.mxu1 %vm414_vm0, %v858_v20 }
  0x43   : > { %472 = vmatmul.mubr.bf16.gmra.mrb[4].mxu0 %v860_v21  ;;  %488 = vmatmul.mubr.bf16.gmra.mrb[4].mxu1 %v861_v22 }
 0x10e   : > { %v465_v24 = vpop.f32.mrb[0].mxu0  ;;  %v481_v26 = vpop.f32.mrb[0].mxu1 }
 0x10f   : > { %v503_v27 = vmul.f32 %v742_v23, %v465_v24  ;;  %v507_v28 = vmul.f32 %v742_v23, %v481_v26  ;;  %v467_v29 = vpop.f32.mrb[1].mxu0  ;;  %v483_v30 = vpop.f32.mrb[1].mxu1 }
 0x110   : > { %v468_v31 = vpop.f32.mrb[2].mxu0  ;;  %v484_v32 = vpop.f32.mrb[2].mxu1 }
 0x111   : > { %v518_v33 = vadd.f32 %v743_v25, %v503_v27  ;;  %v522_v34 = vadd.f32 %v743_v25, %v507_v28  ;;  %v504_v35 = vmul.f32 %v742_v23, %v468_v31  ;;  %v508_v36 = vmul.f32 %v742_v23, %v484_v32  ;;  %v470_v37 = vpop.f32.mrb[3].mxu0  ;;  %v486_v38 = vpop.f32.mrb[3].mxu1 }
 0x113   : > { %v534_v39 = vmul.f32 0.01, %v518_v33  ;;  %v538_v40 = vmul.f32 0.01, %v522_v34  ;;  %vm526_vm2 = vcmp.ge.f32.partialorder %v518_v33, 0.0  ;;  %vm530_vm3 = vcmp.ge.f32.partialorder %v522_v34, 0.0 }
 0x114   : > { %v519_v41 = vadd.f32 %v743_v25, %v504_v35  ;;  %v523_v42 = vadd.f32 %v743_v25, %v508_v36 }
 0x115   : > { %v542_v45 = vsel %vm526_vm2, %v518_v33, %v534_v39  ;;  %v546_v46 = vsel %vm530_vm3, %v522_v34, %v538_v40 }
 0x116   : > { %vm527_vm4 = vcmp.ge.f32.partialorder %v519_v41, 0.0  ;;  %v535_v43 = vmul.f32 0.01, %v519_v41  ;;  %vm531_vm5 = vcmp.ge.f32.partialorder %v523_v42, 0.0  ;;  %v539_v44 = vmul.f32 0.01, %v523_v42 }
 0x117   : > { %v473_v47 = vpop.f32.mrb[4].mxu0  ;;  %v489_v48 = vpop.f32.mrb[4].mxu1 }
 0x118   : > { %v543_v49 = vsel %vm527_vm4, %v519_v41, %v535_v43  ;;  %v547_v50 = vsel %vm531_vm5, %v523_v42, %v539_v44  ;;  %v505_v51 = vmul.f32 %v742_v23, %v473_v47  ;;  %v509_v52 = vmul.f32 %v742_v23, %v489_v48  ;;  %v475_v53 = vpop.f32.mrb[5].mxu0  ;;  %v491_v54 = vpop.f32.mrb[5].mxu1 }
 0x119   : > { %v766_v55 = vpack.c.bf16 %v543_v49, %v542_v45  ;;  %v776_v56 = vpack.c.bf16 %v547_v50, %v546_v46  ;;  %v476_v57 = vpop.f32.mrb[6].mxu0  ;;  %v492_v58 = vpop.f32.mrb[6].mxu1 }
 0x11a   : > { %v520_v59 = vadd.f32 %v743_v25, %v505_v51  ;;  %v524_v60 = vadd.f32 %v743_v25, %v509_v52  ;;  %v506_v61 = vmul.f32 %v742_v23, %v476_v57  ;;  %v510_v62 = vmul.f32 %v742_v23, %v492_v58  ;;  %v478_v63 = vpop.f32.mrb[7].mxu0  ;;  %v494_v0 = vpop.f32.mrb[7].mxu1 }
 0x11b   : > { %767 = vst [vmem:[%s1025_s9] sm:$0xff] %v766_v55   ;;  %784 = vst [vmem:[%s1025_s9 + $0x10] sm:$0xff] %v776_v56  }
 0x11c   : > { %v536_v1 = vmul.f32 0.01, %v520_v59  ;;  %v540_v2 = vmul.f32 0.01, %v524_v60  ;;  %v521_v3 = vadd.f32 %v743_v25, %v506_v61  ;;  %v525_v4 = vadd.f32 %v743_v25, %v510_v62 }
 0x11d   : > { %vm528_vm6 = vcmp.ge.f32.partialorder %v520_v59, 0.0  ;;  %vm532_vm7 = vcmp.ge.f32.partialorder %v524_v60, 0.0 }
 0x11e   : > { %vm529_vm8 = vcmp.ge.f32.partialorder %v521_v3, 0.0  ;;  %v537_v5 = vmul.f32 0.01, %v521_v3  ;;  %vm533_vm9 = vcmp.ge.f32.partialorder %v525_v4, 0.0  ;;  %v541_v6 = vmul.f32 0.01, %v525_v4 }
 0x11f   : > { %v544_v7 = vsel %vm528_vm6, %v520_v59, %v536_v1  ;;  %v548_v8 = vsel %vm532_vm7, %v524_v60, %v540_v2 }
 0x120   : > { %v545_v9 = vsel %vm529_vm8, %v521_v3, %v537_v5  ;;  %v549_v10 = vsel %vm533_vm9, %v525_v4, %v541_v6 }
 0x121   : > { %v771_v11 = vpack.c.bf16 %v545_v9, %v544_v7  ;;  %v781_v12 = vpack.c.bf16 %v549_v10, %v548_v8 }
 0x123   : > { %783 = vst [vmem:[%s1025_s9 + $0x8] sm:$0xff] %v771_v11   ;;  %785 = vst [vmem:[%s1025_s9 + $0x18] sm:$0xff] %v781_v12  }
 0x124 PF: > { %s14_s17 = sadd.s32 1, %s884_s17   ;;  %s1045_s15 = smov %s880_s16 }
 0x125   : > { %p11_p5 = scmp.ge.s32.totalorder %s14_s17, 4   ;;  %s1046_s16 = smov %s1048_s18 }
 0x127   :  { %13 = sbr.rel (!%p11_p5) target bundleno = 2 (0x2), region = 75 }

// kernel: resnet_forward.17
= control target key start
LH: loop header
LB: loop body
LE: loop exit
PB: predicated region body
PF: predicated region fallthrough
CT: control target
= control target key end

     0   :  { %s134_s0 = inlined_call_operand.vmem [shape: bf16[8,128], index: 0, kind: input, shape index: {}]   ;;  %s135_s1 = inlined_call_operand.vmem [shape: bf16[8,128], index: 1, kind: input, shape index: {}]   ;;  %s136_s2 = inlined_call_operand.vmem [shape: bf16[8,128], index: 2, kind: input, shape index: {}]   ;;  %s137_s3 = inlined_call_operand.vmem [shape: bf16[8,128], index: 3, kind: input, shape index: {}]   ;;  %s138_s4 = inlined_call_operand.vmem [shape: bf16[8,128], index: 4, kind: input, shape index: {}]   ;;  %s139_s5 = inlined_call_operand.vmem [shape: bf16[8,128], index: 5, kind: input, shape index: {}]   ;;  %s140_s6 = inlined_call_operand.vmem [shape: bf16[8,128], index: 6, kind: input, shape index: {}]   ;;  %s141_s7 = inlined_call_operand.vmem [shape: bf16[8,128], index: 7, kind: input, shape index: {}]   ;;  %s142_s8 = inlined_call_operand.vmem [shape: bf16[8,128], index: 8, kind: input, shape index: {}]   ;;  %s143_s9 = inlined_call_operand.vmem [shape: bf16[8,128], index: 9, kind: output, shape index: {}]  }
   0x1   :  { %v32_v0 = vld [vmem:[%s134_s0] sm:$0xf] }
   0x2   :  { %v33_v1 = vld [vmem:[%s135_s1] sm:$0xf] }
   0x3   :  { %v35_v2 = vld [vmem:[%s136_s2] sm:$0xf]  ;;  %v34_v3 = vmax.bf16 %v33_v1, %v32_v0 }
   0x4   :  { %v37_v4 = vld [vmem:[%s137_s3] sm:$0xf] }
   0x5   :  { %v36_v5 = vmax.bf16 %v35_v2, %v34_v3  ;;  %v39_v6 = vld [vmem:[%s138_s4] sm:$0xf] }
   0x6   :  { %v41_v8 = vld [vmem:[%s139_s5] sm:$0xf] }
   0x7   :  { %v38_v7 = vmax.bf16 %v37_v4, %v36_v5  ;;  %v43_v10 = vld [vmem:[%s140_s6] sm:$0xf] }
   0x8   :  { %v45_v12 = vld [vmem:[%s141_s7] sm:$0xf] }
   0x9   :  { %v40_v9 = vmax.bf16 %v39_v6, %v38_v7  ;;  %v47_v14 = vld [vmem:[%s142_s8] sm:$0xf] }
   0xb   :  { %v42_v11 = vmax.bf16 %v41_v8, %v40_v9 }
   0xd   :  { %v44_v13 = vmax.bf16 %v43_v10, %v42_v11 }
   0xf   :  { %v46_v15 = vmax.bf16 %v45_v12, %v44_v13 }
  0x11   :  { %v48_v16 = vmax.bf16 %v47_v14, %v46_v15 }
  0x13   :  { %49 = vst [vmem:[%s143_s9] sm:$0xf] %v48_v16 }

// kernel: resnet_forward.18
= control target key start
LH: loop header
LB: loop body
LE: loop exit
PB: predicated region body
PF: predicated region fallthrough
CT: control target
= control target key end

     0   :  { %vm200_vm0 = vcmask 261120   ;;  %s585_s1 = inlined_call_operand.vmem [shape: bf16[288,128], index: 1, kind: input, shape index: {}]   ;;  %s586_s0 = inlined_call_operand.vmem [shape: bf16[32,288], index: 0, kind: input, shape index: {}]   ;;  %s587_s2 = inlined_call_operand.vmem [shape: f32[1,128], index: 2, kind: input, shape index: {}]   ;;  %s588_s3 = inlined_call_operand.vmem [shape: f32[1,128], index: 3, kind: input, shape index: {}]   ;;  %s589_s4 = inlined_call_operand.vmem [shape: bf16[32,128], index: 4, kind: output, shape index: {}]  }
   0x1   :  { %v450_v0 = vld [vmem:[%s585_s1 + $0x40] sm:$0xff]   ;;  %v452_v2 = vld [vmem:[%s585_s1 + $0x48] sm:$0xff]   ;;  %v454_v4 = vld [vmem:[%s585_s1 + $0x50] sm:$0xff]  }
   0x2   :  { %v451_v1 = vld [vmem:[%s585_s1] sm:$0xff]   ;;  %410 = vmatprep.subr.bf16.mxu0 %v450_v0  ;;  %v453_v3 = vld [vmem:[%s585_s1 + $0x8] sm:$0xff]   ;;  %v455_v5 = vld [vmem:[%s585_s1 + $0x10] sm:$0xff]  }
   0x3   :  { %411 = vmatpush3.bf16.msra.mxu0 %v451_v1  ;;  %v456_v6 = vld [vmem:[%s585_s1 + $0x58] sm:$0xff]   ;;  %v458_v8 = vld [vmem:[%s585_s1 + $0x60] sm:$0xff]   ;;  %v460_v11 = vld [vmem:[%s585_s1 + $0x68] sm:$0xff]  }
   0x4   :  { %412 = vmatprep.subr.bf16.mxu0 %v452_v2  ;;  %v457_v7 = vld [vmem:[%s585_s1 + $0x18] sm:$0xff]   ;;  %v464_v9 = vld [vmem:[%s585_s1 + $0x80] sm:$0xff]   ;;  %v461_v12 = vld [vmem:[%s585_s1 + $0x28] sm:$0xff]  }
   0x5   :  { %v459_v10 = vld [vmem:[%s585_s1 + $0x20] sm:$0xff]   ;;  %442 = vmatprep.subr.bf16.mxu1 %v464_v9  ;;  %v467_v13 = vld [vmem:[%s585_s1 + $0x88] sm:$0xff]   ;;  %v462_v14 = vld [vmem:[%s585_s1 + $0x70] sm:$0xff]  }
   0x6   :  { %443 = vmatpush3.bf16.msra.mxu1 %v464_v9  ;;  %v470_v15 = vld [vmem:[%s586_s0 + $0x4] ss:$12 sps:$4 sm:$0xff]   ;;  %v471_v16 = vld [vmem:[%s586_s0 + $0x8] ss:$12 sps:$4 sm:$0xff]   ;;  %v472_v17 = vld [vmem:[%s586_s0 + $0x20] ss:$12 sps:$4 sm:$0xff]  }
   0x7   :  { %413 = vmatpush3.bf16.msra.mxu0 %v453_v3  ;;  %444 = vmatprep.subr.bf16.mxu1 %v467_v13  ;;  %v463_v18 = vld [vmem:[%s585_s1 + $0x30] sm:$0xff]   ;;  %v465_v19 = vld [vmem:[%s585_s1 + $0x78] sm:$0xff]   ;;  %v468_v21 = vld [vmem:[%s586_s0] ss:$12 sps:$4 sm:$0xff]  }
   0x8   :  { %414 = vmatprep.subr.bf16.mxu0 %v454_v4  ;;  %239 = vmatprep.mubr.bf16.mxu0 %v470_v15  ;;  %v466_v20 = vld [vmem:[%s585_s1 + $0x38] sm:$0xff]   ;;  %v389_v33 = vld [vmem:[%s587_s2] ss:$0 sm:$0xff] }
   0x9   :  { %446 = vmatprep.mubr.msk.bf16.mxu1 %vm200_vm0, %v471_v16  ;;  %v473_v22 = vld [vmem:[%s586_s0 + $0x1c] ss:$12 sps:$4 sm:$0xff]   ;;  %v475_v23 = vld [vmem:[%s586_s0 + $0x18] ss:$12 sps:$4 sm:$0xff]   ;;  %v390_v36 = vld [vmem:[%s588_s3] ss:$0 sm:$0xff] }
   0xa   :  { %445 = vmatpush3.bf16.msra.mxu1 %v467_v13 }
   0xb   :  { %415 = vmatpush3.bf16.msra.mxu0 %v455_v5 }
   0xc   :  { %416 = vmatprep.subr.bf16.mxu0 %v456_v6 }
   0xd   :  { %447 = vmatmul.mubr.msk.bf16.vlgmr.msra.gmra.mrb[0].mxu1 %vm200_vm0, %v472_v17 }
   0xf   :  { %417 = vmatpush3.bf16.msra.mxu0 %v457_v7 }
  0x10   :  { %418 = vmatprep.subr.bf16.mxu0 %v458_v8 }
  0x13   :  { %419 = vmatpush3.bf16.msra.mxu0 %v459_v10 }
  0x14   :  { %420 = vmatprep.subr.bf16.mxu0 %v460_v11 }
  0x17   :  { %421 = vmatpush3.bf16.msra.mxu0 %v461_v12 }
  0x18   :  { %422 = vmatprep.subr.bf16.mxu0 %v462_v14 }
  0x1b   :  { %423 = vmatpush3.bf16.msra.mxu0 %v463_v18 }
  0x1c   :  { %424 = vmatprep.subr.bf16.mxu0 %v465_v19 }
  0x1f   :  { %425 = vmatpush3.bf16.msra.mxu0 %v466_v20 }
  0x22   :  { %240 = vmatmul.mubr.bf16.vlgmr.msra.gmra.mrb[0].mxu0 %v468_v21 }
  0x23   :  { %247 = vmatprep.mubr.bf16.mxu0 %v473_v22 }
  0x2a   :  { %248 = vmatmul.mubr.bf16.gmra.mrb[4].mxu0 %v475_v23 }
  0xe0   :  { %v448_v24 = vpop.f32.mrb[0].mxu1 }
  0xe1   :  { %v290_v25 = vpop.f32.mrb[1].mxu1 }
  0xe2   :  { %v449_v26 = vpop.f32.mrb[2].mxu1 }
  0xe3   :  { %v293_v27 = vpop.f32.mrb[3].mxu1 }
  0xf5   :  { %v426_v28 = vpop.f32.mrb[0].mxu0 }
  0xf6   :  { %v427_v29 = vpop.f32.mrb[1].mxu0 }
  0xf7   :  { %v428_v30 = vadd.f32 %v427_v29, %v426_v28  ;;  %v429_v31 = vpop.f32.mrb[2].mxu0 }
  0xf8   :  { %v430_v32 = vpop.f32.mrb[3].mxu0 }
  0xf9   :  { %v431_v34 = vadd.f32 %v430_v32, %v429_v31  ;;  %v291_v35 = vadd.f32 %v428_v30, %v290_v25 }
  0xfb   :  { %v312_v37 = vmul.f32 %v389_v33, %v291_v35  ;;  %v294_v38 = vadd.f32 %v431_v34, %v293_v27 }
  0xfd   :  { %v323_v39 = vadd.f32 %v390_v36, %v312_v37  ;;  %v313_v40 = vmul.f32 %v389_v33, %v294_v38  ;;  %v432_v41 = vpop.f32.mrb[4].mxu0 }
  0xfe   :  { %v433_v42 = vpop.f32.mrb[5].mxu0 }
  0xff   :  { %v331_v43 = vmul.f32 0.01, %v323_v39  ;;  %v324_v44 = vadd.f32 %v390_v36, %v313_v40  ;;  %v434_v45 = vadd.f32 %v433_v42, %v432_v41  ;;  %v435_v46 = vpop.f32.mrb[6].mxu0  ;;  %vm327_vm1 = vcmp.ge.f32.partialorder %v323_v39, 0.0 }
 0x100   :  { %v436_v47 = vpop.f32.mrb[7].mxu0 }
 0x101   :  { %vm328_vm2 = vcmp.ge.f32.partialorder %v324_v44, 0.0  ;;  %v332_v48 = vmul.f32 0.01, %v324_v44  ;;  %v299_v49 = vadd.f32 %v448_v24, %v434_v45  ;;  %v437_v50 = vadd.f32 %v436_v47, %v435_v46 }
 0x102   :  { %v335_v51 = vsel %vm327_vm1, %v323_v39, %v331_v43 }
 0x103   :  { %v336_v52 = vsel %vm328_vm2, %v324_v44, %v332_v48  ;;  %v314_v53 = vmul.f32 %v389_v33, %v299_v49  ;;  %v302_v55 = vadd.f32 %v449_v26, %v437_v50 }
 0x104   :  { %v402_v54 = vpack.c.bf16 %v336_v52, %v335_v51 }
 0x105   :  { %v325_v56 = vadd.f32 %v390_v36, %v314_v53  ;;  %v315_v57 = vmul.f32 %v389_v33, %v302_v55 }
 0x106   :  { %403 = vst [vmem:[%s589_s4] sm:$0xff] %v402_v54  }
 0x107   :  { %v333_v58 = vmul.f32 0.01, %v325_v56  ;;  %v326_v59 = vadd.f32 %v390_v36, %v315_v57  ;;  %vm329_vm3 = vcmp.ge.f32.partialorder %v325_v56, 0.0 }
 0x109   :  { %vm330_vm4 = vcmp.ge.f32.partialorder %v326_v59, 0.0  ;;  %v334_v60 = vmul.f32 0.01, %v326_v59  ;;  %v337_v61 = vsel %vm329_vm3, %v325_v56, %v333_v58 }
 0x10b   :  { %v338_v62 = vsel %vm330_vm4, %v326_v59, %v334_v60 }
 0x10c   :  { %v407_v63 = vpack.c.bf16 %v338_v62, %v337_v61 }
 0x10e   :  { %409 = vst [vmem:[%s589_s4 + $0x8] sm:$0xff] %v407_v63  }

// kernel: resnet_forward.19
= control target key start
LH: loop header
LB: loop body
LE: loop exit
PB: predicated region body
PF: predicated region fallthrough
CT: control target
= control target key end

     0   :  { %vm203_vm0 = vcmask 261120   ;;  %s620_s1 = inlined_call_operand.vmem [shape: bf16[288,128], index: 1, kind: input, shape index: {}]   ;;  %s621_s0 = inlined_call_operand.vmem [shape: bf16[32,288], index: 0, kind: input, shape index: {}]   ;;  %s622_s2 = inlined_call_operand.vmem [shape: f32[1,128], index: 2, kind: input, shape index: {}]   ;;  %s623_s4 = inlined_call_operand.vmem [shape: bf16[32,128], index: 4, kind: input, shape index: {}]   ;;  %s624_s3 = inlined_call_operand.vmem [shape: f32[1,128], index: 3, kind: input, shape index: {}]   ;;  %s625_s5 = inlined_call_operand.vmem [shape: bf16[32,128], index: 5, kind: output, shape index: {}]  }
   0x1   :  { %v474_v0 = vld [vmem:[%s620_s1 + $0x40] sm:$0xff]   ;;  %v476_v2 = vld [vmem:[%s620_s1 + $0x48] sm:$0xff]   ;;  %v478_v4 = vld [vmem:[%s620_s1 + $0x50] sm:$0xff]  }
   0x2   :  { %v475_v1 = vld [vmem:[%s620_s1] sm:$0xff]   ;;  %434 = vmatprep.subr.bf16.mxu0 %v474_v0  ;;  %v477_v3 = vld [vmem:[%s620_s1 + $0x8] sm:$0xff]   ;;  %v479_v5 = vld [vmem:[%s620_s1 + $0x10] sm:$0xff]  }
   0x3   :  { %435 = vmatpush3.bf16.msra.mxu0 %v475_v1  ;;  %v480_v6 = vld [vmem:[%s620_s1 + $0x58] sm:$0xff]   ;;  %v482_v8 = vld [vmem:[%s620_s1 + $0x60] sm:$0xff]   ;;  %v484_v11 = vld [vmem:[%s620_s1 + $0x68] sm:$0xff]  }
   0x4   :  { %436 = vmatprep.subr.bf16.mxu0 %v476_v2  ;;  %v481_v7 = vld [vmem:[%s620_s1 + $0x18] sm:$0xff]   ;;  %v488_v9 = vld [vmem:[%s620_s1 + $0x80] sm:$0xff]   ;;  %v485_v12 = vld [vmem:[%s620_s1 + $0x28] sm:$0xff]  }
   0x5   :  { %v483_v10 = vld [vmem:[%s620_s1 + $0x20] sm:$0xff]   ;;  %466 = vmatprep.subr.bf16.mxu1 %v488_v9  ;;  %v491_v13 = vld [vmem:[%s620_s1 + $0x88] sm:$0xff]   ;;  %v486_v14 = vld [vmem:[%s620_s1 + $0x70] sm:$0xff]  }
   0x6   :  { %467 = vmatpush3.bf16.msra.mxu1 %v488_v9  ;;  %v494_v15 = vld [vmem:[%s621_s0 + $0x4] ss:$12 sps:$4 sm:$0xff]   ;;  %v495_v16 = vld [vmem:[%s621_s0 + $0x8] ss:$12 sps:$4 sm:$0xff]   ;;  %v496_v17 = vld [vmem:[%s621_s0 + $0x20] ss:$12 sps:$4 sm:$0xff]  }
   0x7   :  { %437 = vmatpush3.bf16.msra.mxu0 %v477_v3  ;;  %468 = vmatprep.subr.bf16.mxu1 %v491_v13  ;;  %v487_v18 = vld [vmem:[%s620_s1 + $0x30] sm:$0xff]   ;;  %v489_v19 = vld [vmem:[%s620_s1 + $0x78] sm:$0xff]   ;;  %v492_v21 = vld [vmem:[%s621_s0] ss:$12 sps:$4 sm:$0xff]  }
   0x8   :  { %438 = vmatprep.subr.bf16.mxu0 %v478_v4  ;;  %242 = vmatprep.mubr.bf16.mxu0 %v494_v15  ;;  %v490_v20 = vld [vmem:[%s620_s1 + $0x38] sm:$0xff]   ;;  %v404_v33 = vld [vmem:[%s622_s2] ss:$0 sm:$0xff]  ;;  %v432_v50 = vld [vmem:[%s623_s4 + $0x8] sm:$0xff]  }
   0x9   :  { %470 = vmatprep.mubr.msk.bf16.mxu1 %vm203_vm0, %v495_v16  ;;  %v497_v22 = vld [vmem:[%s621_s0 + $0x1c] ss:$12 sps:$4 sm:$0xff]   ;;  %v499_v23 = vld [vmem:[%s621_s0 + $0x18] ss:$12 sps:$4 sm:$0xff]   ;;  %v405_v37 = vld [vmem:[%s624_s3] ss:$0 sm:$0xff]  ;;  %v420_v58 = vunpack.c.l.bf16 %v432_v50  ;;  %v421_v1 = vunpack.c.h.bf16 %v432_v50 }
   0xa   :  { %469 = vmatpush3.bf16.msra.mxu1 %v491_v13  ;;  %v415_v34 = vld [vmem:[%s623_s4] sm:$0xff]  }
   0xb   :  { %439 = vmatpush3.bf16.msra.mxu0 %v479_v5  ;;  %v416_v39 = vunpack.c.l.bf16 %v415_v34  ;;  %v417_v43 = vunpack.c.h.bf16 %v415_v34 }
   0xc   :  { %440 = vmatprep.subr.bf16.mxu0 %v480_v6 }
   0xd   :  { %471 = vmatmul.mubr.msk.bf16.vlgmr.msra.gmra.mrb[0].mxu1 %vm203_vm0, %v496_v17 }
   0xf   :  { %441 = vmatpush3.bf16.msra.mxu0 %v481_v7 }
  0x10   :  { %442 = vmatprep.subr.bf16.mxu0 %v482_v8 }
  0x13   :  { %443 = vmatpush3.bf16.msra.mxu0 %v483_v10 }
  0x14   :  { %444 = vmatprep.subr.bf16.mxu0 %v484_v11 }
  0x17   :  { %445 = vmatpush3.bf16.msra.mxu0 %v485_v12 }
  0x18   :  { %446 = vmatprep.subr.bf16.mxu0 %v486_v14 }
  0x1b   :  { %447 = vmatpush3.bf16.msra.mxu0 %v487_v18 }
  0x1c   :  { %448 = vmatprep.subr.bf16.mxu0 %v489_v19 }
  0x1f   :  { %449 = vmatpush3.bf16.msra.mxu0 %v490_v20 }
  0x22   :  { %243 = vmatmul.mubr.bf16.vlgmr.msra.gmra.mrb[0].mxu0 %v492_v21 }
  0x23   :  { %250 = vmatprep.mubr.bf16.mxu0 %v497_v22 }
  0x2a   :  { %251 = vmatmul.mubr.bf16.gmra.mrb[4].mxu0 %v499_v23 }
  0xe0   :  { %v472_v24 = vpop.f32.mrb[0].mxu1 }
  0xe1   :  { %v293_v25 = vpop.f32.mrb[1].mxu1 }
  0xe2   :  { %v473_v26 = vpop.f32.mrb[2].mxu1 }
  0xe3   :  { %v296_v27 = vpop.f32.mrb[3].mxu1 }
  0xf5   :  { %v450_v28 = vpop.f32.mrb[0].mxu0 }
  0xf6   :  { %v451_v29 = vpop.f32.mrb[1].mxu0 }
  0xf7   :  { %v452_v30 = vadd.f32 %v451_v29, %v450_v28  ;;  %v453_v31 = vpop.f32.mrb[2].mxu0 }
  0xf8   :  { %v454_v32 = vpop.f32.mrb[3].mxu0 }
  0xf9   :  { %v455_v35 = vadd.f32 %v454_v32, %v453_v31  ;;  %v294_v36 = vadd.f32 %v452_v30, %v293_v25 }
  0xfb   :  { %v315_v38 = vmul.f32 %v404_v33, %v294_v36  ;;  %v297_v40 = vadd.f32 %v455_v35, %v296_v27 }
  0xfd   :  { %v326_v41 = vadd.f32 %v405_v37, %v315_v38  ;;  %v316_v42 = vmul.f32 %v404_v33, %v297_v40  ;;  %v456_v44 = vpop.f32.mrb[4].mxu0 }
  0xfe   :  { %v457_v45 = vpop.f32.mrb[5].mxu0 }
  0xff   :  { %v338_v46 = vadd.f32 %v416_v39, %v326_v41  ;;  %v327_v47 = vadd.f32 %v405_v37, %v316_v42  ;;  %v458_v48 = vadd.f32 %v457_v45, %v456_v44  ;;  %v459_v49 = vpop.f32.mrb[6].mxu0 }
 0x100   :  { %v460_v51 = vpop.f32.mrb[7].mxu0 }
 0x101   :  { %v346_v52 = vmul.f32 0.01, %v338_v46  ;;  %v339_v53 = vadd.f32 %v417_v43, %v327_v47  ;;  %v302_v54 = vadd.f32 %v472_v24, %v458_v48  ;;  %vm342_vm1 = vcmp.ge.f32.partialorder %v338_v46, 0.0 }
 0x102   :  { %v461_v55 = vadd.f32 %v460_v51, %v459_v49 }
 0x103   :  { %vm343_vm2 = vcmp.ge.f32.partialorder %v339_v53, 0.0  ;;  %v347_v56 = vmul.f32 0.01, %v339_v53  ;;  %v317_v57 = vmul.f32 %v404_v33, %v302_v54  ;;  %v350_v60 = vsel %vm342_vm1, %v338_v46, %v346_v52 }
 0x104   :  { %v305_v59 = vadd.f32 %v473_v26, %v461_v55 }
 0x105   :  { %v351_v61 = vsel %vm343_vm2, %v339_v53, %v347_v56  ;;  %v328_v62 = vadd.f32 %v405_v37, %v317_v57 }
 0x106   :  { %v425_v63 = vpack.c.bf16 %v351_v61, %v350_v60  ;;  %v318_v0 = vmul.f32 %v404_v33, %v305_v59 }
 0x107   :  { %v340_v2 = vadd.f32 %v420_v58, %v328_v62 }
 0x108   :  { %426 = vst [vmem:[%s625_s5] sm:$0xff] %v425_v63   ;;  %v329_v3 = vadd.f32 %v405_v37, %v318_v0 }
 0x109   :  { %v348_v4 = vmul.f32 0.01, %v340_v2  ;;  %vm344_vm3 = vcmp.ge.f32.partialorder %v340_v2, 0.0 }
 0x10a   :  { %v341_v5 = vadd.f32 %v421_v1, %v329_v3 }
 0x10b   :  { %v352_v7 = vsel %vm344_vm3, %v340_v2, %v348_v4 }
 0x10c   :  { %vm345_vm4 = vcmp.ge.f32.partialorder %v341_v5, 0.0  ;;  %v349_v6 = vmul.f32 0.01, %v341_v5 }
 0x10e   :  { %v353_v8 = vsel %vm345_vm4, %v341_v5, %v349_v6 }
 0x10f   :  { %v430_v9 = vpack.c.bf16 %v353_v8, %v352_v7 }
 0x111   :  { %433 = vst [vmem:[%s625_s5 + $0x8] sm:$0xff] %v430_v9  }

// kernel: resnet_forward.21
= control target key start
LH: loop header
LB: loop body
LE: loop exit
PB: predicated region body
PF: predicated region fallthrough
CT: control target
= control target key end

     0   :  { %v363_v1 = vmov 0.0   ;;  %vm364_vm0 = vmmov 0   ;;  %vm174_vm1 = vcmask 261120   ;;  %s459_s1 = inlined_call_operand.vmem [shape: bf16[288,128], index: 1, kind: input, shape index: {}]   ;;  %s460_s0 = inlined_call_operand.vmem [shape: bf16[8,288], index: 0, kind: input, shape index: {}]   ;;  %s461_s2 = inlined_call_operand.vmem [shape: f32[1,128], index: 2, kind: input, shape index: {}]   ;;  %s462_s3 = inlined_call_operand.vmem [shape: f32[1,128], index: 3, kind: input, shape index: {}]   ;;  %s463_s4 = inlined_call_operand.vmem [shape: bf16[8,128], index: 4, kind: output, shape index: {}]  }
   0x1   :  { %v342_v0 = vld [vmem:[%s459_s1 + $0x40] sm:$0xff]   ;;  %332 = vmatprep.subr.bf16.mxu1 %v363_v1  ;;  %336 = vmatprep.mubr.msk.bf16.mxu1 %vm364_vm0, %v363_v1  ;;  %v344_v3 = vld [vmem:[%s459_s1 + $0x48] sm:$0xff]   ;;  %v346_v5 = vld [vmem:[%s459_s1 + $0x50] sm:$0xff]  }
   0x2   :  { %v343_v2 = vld [vmem:[%s459_s1] sm:$0xff]   ;;  %307 = vmatprep.subr.bf16.mxu0 %v342_v0  ;;  %v345_v4 = vld [vmem:[%s459_s1 + $0x8] sm:$0xff]   ;;  %v347_v6 = vld [vmem:[%s459_s1 + $0x10] sm:$0xff]  }
   0x3   :  { %308 = vmatpush3.bf16.msra.mxu0 %v343_v2  ;;  %v348_v7 = vld [vmem:[%s459_s1 + $0x58] sm:$0xff]   ;;  %v350_v9 = vld [vmem:[%s459_s1 + $0x60] sm:$0xff]   ;;  %v352_v12 = vld [vmem:[%s459_s1 + $0x68] sm:$0xff]  }
   0x4   :  { %309 = vmatprep.subr.bf16.mxu0 %v344_v3  ;;  %v349_v8 = vld [vmem:[%s459_s1 + $0x18] sm:$0xff]   ;;  %v356_v10 = vld [vmem:[%s459_s1 + $0x80] sm:$0xff]   ;;  %v359_v13 = vld [vmem:[%s459_s1 + $0x88] sm:$0xff]  }
   0x5   :  { %v351_v11 = vld [vmem:[%s459_s1 + $0x20] sm:$0xff]   ;;  %333 = vmatpush3.bf16.msra.mxu1 %v356_v10  ;;  %v353_v15 = vld [vmem:[%s459_s1 + $0x28] sm:$0xff]   ;;  %v354_v18 = vld [vmem:[%s459_s1 + $0x70] sm:$0xff]  }
   0x6   :  { %334 = vmatprep.subr.bf16.mxu1 %v363_v1  ;;  %v18_v14 = vld [vmem:[%s460_s0] sm:$0xff]  ;;  %v362_v17 = vld [vmem:[%s460_s0 + $0x8] ss:$0 sps:$4 sm:$0xff]   ;;  %v355_v19 = vld [vmem:[%s459_s1 + $0x30] sm:$0xff]  }
   0x7   :  { %310 = vmatpush3.bf16.msra.mxu0 %v345_v4  ;;  %v284_v16 = vcombine.high %v18_v14, %v18_v14  ;;  %v357_v20 = vld [vmem:[%s459_s1 + $0x78] sm:$0xff]   ;;  %v283_v22 = vcombine.low %v18_v14, %v18_v14  ;;  %v305_v31 = vld [vmem:[%s461_s2] ss:$0 sm:$0xff] }
   0x8   :  { %311 = vmatprep.subr.bf16.mxu0 %v346_v5  ;;  %v358_v21 = vld [vmem:[%s459_s1 + $0x38] sm:$0xff]   ;;  %v306_v34 = vld [vmem:[%s462_s3] ss:$0 sm:$0xff] }
   0x9   :  { %335 = vmatpush3.bf16.msra.mxu1 %v359_v13  ;;  %210 = vmatprep.mubr.bf16.mxu0 %v284_v16 }
   0xb   :  { %312 = vmatpush3.bf16.msra.mxu0 %v347_v6 }
   0xc   :  { %313 = vmatprep.subr.bf16.mxu0 %v348_v7  ;;  %337 = vmatmul.mubr.msk.bf16.vlgmr.msra.gmra.mrb[0].mxu1 %vm174_vm1, %v362_v17 }
   0xf   :  { %314 = vmatpush3.bf16.msra.mxu0 %v349_v8 }
  0x10   :  { %315 = vmatprep.subr.bf16.mxu0 %v350_v9 }
  0x13   :  { %316 = vmatpush3.bf16.msra.mxu0 %v351_v11 }
  0x14   :  { %317 = vmatprep.subr.bf16.mxu0 %v352_v12 }
  0x17   :  { %318 = vmatpush3.bf16.msra.mxu0 %v353_v15 }
  0x18   :  { %319 = vmatprep.subr.bf16.mxu0 %v354_v18 }
  0x1b   :  { %320 = vmatpush3.bf16.msra.mxu0 %v355_v19 }
  0x1c   :  { %321 = vmatprep.subr.bf16.mxu0 %v357_v20 }
  0x1f   :  { %322 = vmatpush3.bf16.msra.mxu0 %v358_v21 }
  0x22   :  { %211 = vmatmul.mubr.bf16.vlgmr.msra.gmra.mrb[0].mxu0 %v283_v22 }
  0xdf   :  { %v252_v23 = vpop.f32.mrb[0].mxu1 }
  0xe0   :  { %v338_v24 = vpop.f32.mrb[1].mxu1 }
  0xe1   :  { %v255_v25 = vpop.f32.mrb[2].mxu1 }
  0xe2   :  { %v339_v26 = vpop.f32.mrb[3].mxu1 }
  0xf5   :  { %v323_v27 = vpop.f32.mrb[0].mxu0 }
  0xf6   :  { %v324_v28 = vpop.f32.mrb[1].mxu0 }
  0xf7   :  { %v325_v29 = vadd.f32 %v324_v28, %v323_v27  ;;  %v326_v30 = vpop.f32.mrb[2].mxu0 }
  0xf8   :  { %v327_v32 = vpop.f32.mrb[3].mxu0 }
  0xf9   :  { %v253_v33 = vadd.f32 %v325_v29, %v252_v23 }
  0xfb   :  { %v265_v35 = vmul.f32 %v305_v31, %v253_v33 }
  0xfd   :  { %v273_v36 = vadd.f32 %v306_v34, %v265_v35 }
  0xff   :  { %vm274_vm2 = vcmp.ge.f32.partialorder %v273_v36, 0.0  ;;  %v275_v37 = vmul.f32 0.01, %v273_v36 }
 0x101   :  { %v276_v38 = vsel %vm274_vm2, %v273_v36, %v275_v37 }
 0x102   :  { %v277_v39 = vpack.c.bf16 %v276_v38, %v276_v38 }
 0x104   :  { %278 = vst [vmem:[%s463_s4] sm:$0xf] %v277_v39 }

// kernel: resnet_forward.20
= control target key start
LH: loop header
LB: loop body
LE: loop exit
PB: predicated region body
PF: predicated region fallthrough
CT: control target
= control target key end

     0   :  { %v121_v0 = vmov 0.0   ;;  %vm122_vm0 = vmmov 0   ;;  %vm35_vm1 = vcmask 261120   ;;  %s166_s1 = inlined_call_operand.vmem [shape: bf16[32,128], index: 1, kind: input, shape index: {}]   ;;  %s167_s0 = inlined_call_operand.vmem [shape: bf16[8,32], index: 0, kind: input, shape index: {}]   ;;  %s168_s2 = inlined_call_operand.vmem [shape: f32[1,128], index: 2, kind: input, shape index: {}]   ;;  %s169_s3 = inlined_call_operand.vmem [shape: f32[1,128], index: 3, kind: input, shape index: {}]   ;;  %s170_s4 = inlined_call_operand.vmem [shape: bf16[8,128], index: 4, kind: output, shape index: {}]  }
   0x1   :  { %109 = vmatprep.subr.bf16.mxu0 %v121_v0  ;;  %v119_v1 = vld [vmem:[%s166_s1] sm:$0xff]   ;;  %113 = vmatprep.mubr.msk.bf16.mxu0 %vm122_vm0, %v121_v0  ;;  %v120_v2 = vld [vmem:[%s166_s1 + $0x8] sm:$0xff]  }
   0x2   :  { %110 = vmatpush3.bf16.msra.mxu0 %v119_v1  ;;  %v18_v3 = vld [vmem:[%s167_s0] sm:$0xf] }
   0x3   :  { %111 = vmatprep.subr.bf16.mxu0 %v121_v0  ;;  %v104_v4 = vld [vmem:[%s168_s2] ss:$0 sm:$0xff] }
   0x4   :  { %v105_v6 = vld [vmem:[%s169_s3] ss:$0 sm:$0xff] }
   0x6   :  { %112 = vmatpush3.bf16.msra.mxu0 %v120_v2 }
   0x9   :  { %114 = vmatmul.mubr.msk.bf16.vlgmr.msra.gmra.mrb[0].mxu0 %vm35_vm1, %v18_v3 }
  0xdc   :  { %v73_v5 = vpop.f32.mrb[0].mxu0 }
  0xdd   :  { %v86_v7 = vmul.f32 %v104_v4, %v73_v5  ;;  %v115_v8 = vpop.f32.mrb[1].mxu0 }
  0xde   :  { %v76_v9 = vpop.f32.mrb[2].mxu0 }
  0xdf   :  { %v94_v10 = vadd.f32 %v105_v6, %v86_v7  ;;  %v116_v11 = vpop.f32.mrb[3].mxu0 }
  0xe1   :  { %v95_v12 = vpack.c.bf16 %v94_v10, %v94_v10 }
  0xe3   :  { %96 = vst [vmem:[%s170_s4] sm:$0xf] %v95_v12 }

// kernel: resnet_forward.22
= control target key start
LH: loop header
LB: loop body
LE: loop exit
PB: predicated region body
PF: predicated region fallthrough
CT: control target
= control target key end

     0   :  { %v629_v36 = vmov 0.0   ;;  %vm630_vm0 = vmmov 0   ;;  %vm329_vm1 = vcmask 523264   ;;  %s790_s1 = inlined_call_operand.vmem [shape: bf16[576,128], index: 1, kind: input, shape index: {}]   ;;  %s791_s0 = inlined_call_operand.vmem [shape: bf16[8,576], index: 0, kind: input, shape index: {}]   ;;  %s792_s2 = inlined_call_operand.vmem [shape: f32[1,128], index: 2, kind: input, shape index: {}]   ;;  %s793_s4 = inlined_call_operand.vmem [shape: bf16[8,128], index: 4, kind: input, shape index: {}]   ;;  %s794_s3 = inlined_call_operand.vmem [shape: f32[1,128], index: 3, kind: input, shape index: {}]   ;;  %s795_s5 = inlined_call_operand.vmem [shape: bf16[8,128], index: 5, kind: output, shape index: {}]  }
   0x1   :  { %v588_v0 = vld [vmem:[%s790_s1 + $0x40] sm:$0xff]   ;;  %v592_v4 = vld [vmem:[%s790_s1 + $0x48] sm:$0xff]   ;;  %v596_v8 = vld [vmem:[%s790_s1 + $0x50] sm:$0xff]  }
   0x2   :  { %v589_v1 = vld [vmem:[%s790_s1 + $0xc0] sm:$0xff]   ;;  %525 = vmatprep.subr.bf16.mxu0 %v588_v0  ;;  %v593_v5 = vld [vmem:[%s790_s1 + $0xc8] sm:$0xff]   ;;  %v597_v9 = vld [vmem:[%s790_s1 + $0xd0] sm:$0xff]  }
   0x3   :  { %v590_v2 = vld [vmem:[%s790_s1] sm:$0xff]   ;;  %547 = vmatprep.subr.bf16.mxu1 %v589_v1  ;;  %v594_v6 = vld [vmem:[%s790_s1 + $0x8] sm:$0xff]   ;;  %v598_v10 = vld [vmem:[%s790_s1 + $0x10] sm:$0xff]  }
   0x4   :  { %v591_v3 = vld [vmem:[%s790_s1 + $0x80] sm:$0xff]   ;;  %526 = vmatpush3.bf16.msra.mxu0 %v590_v2  ;;  %v595_v7 = vld [vmem:[%s790_s1 + $0x88] sm:$0xff]   ;;  %v599_v11 = vld [vmem:[%s790_s1 + $0x90] sm:$0xff]  }
   0x5   :  { %548 = vmatpush3.bf16.msra.mxu1 %v591_v3  ;;  %527 = vmatprep.subr.bf16.mxu0 %v592_v4  ;;  %v600_v12 = vld [vmem:[%s790_s1 + $0x58] sm:$0xff]   ;;  %v604_v16 = vld [vmem:[%s790_s1 + $0x60] sm:$0xff]   ;;  %v608_v20 = vld [vmem:[%s790_s1 + $0x68] sm:$0xff]  }
   0x6   :  { %549 = vmatprep.subr.bf16.mxu1 %v593_v5  ;;  %v601_v13 = vld [vmem:[%s790_s1 + $0xd8] sm:$0xff]   ;;  %v605_v17 = vld [vmem:[%s790_s1 + $0xe0] sm:$0xff]   ;;  %v609_v21 = vld [vmem:[%s790_s1 + $0xe8] sm:$0xff]  }
   0x7   :  { %v602_v14 = vld [vmem:[%s790_s1 + $0x18] sm:$0xff]   ;;  %v606_v18 = vld [vmem:[%s790_s1 + $0x20] sm:$0xff]   ;;  %v610_v22 = vld [vmem:[%s790_s1 + $0x28] sm:$0xff]  }
   0x8   :  { %528 = vmatpush3.bf16.msra.mxu0 %v594_v6  ;;  %v603_v15 = vld [vmem:[%s790_s1 + $0x98] sm:$0xff]   ;;  %v607_v19 = vld [vmem:[%s790_s1 + $0xa0] sm:$0xff]   ;;  %v611_v23 = vld [vmem:[%s790_s1 + $0xa8] sm:$0xff]  }
   0x9   :  { %550 = vmatpush3.bf16.msra.mxu1 %v595_v7  ;;  %529 = vmatprep.subr.bf16.mxu0 %v596_v8  ;;  %v612_v24 = vld [vmem:[%s790_s1 + $0x70] sm:$0xff]   ;;  %v616_v28 = vld [vmem:[%s790_s1 + $0x78] sm:$0xff]   ;;  %v21_v32 = vld [vmem:[%s791_s0] sm:$0xff] }
   0xa   :  { %551 = vmatprep.subr.bf16.mxu1 %v597_v9  ;;  %v613_v25 = vld [vmem:[%s790_s1 + $0xf0] sm:$0xff]   ;;  %v617_v29 = vld [vmem:[%s790_s1 + $0xf8] sm:$0xff]   ;;  %v481_v33 = vcombine.low %v21_v32, %v21_v32  ;;  %v482_v34 = vcombine.high %v21_v32, %v21_v32  ;;  %v22_v35 = vld [vmem:[%s791_s0 + $0x8] sm:$0xff] }
   0xb   :  { %v614_v26 = vld [vmem:[%s790_s1 + $0x30] sm:$0xff]   ;;  %v618_v30 = vld [vmem:[%s790_s1 + $0x38] sm:$0xff]   ;;  %v483_v37 = vcombine.low %v22_v35, %v22_v35  ;;  %v484_v38 = vcombine.high %v22_v35, %v22_v35  ;;  %v625_v39 = vld [vmem:[%s790_s1 + $0x100] sm:$0xff]  }
   0xc   :  { %530 = vmatpush3.bf16.msra.mxu0 %v598_v10  ;;  %v615_v27 = vld [vmem:[%s790_s1 + $0xb0] sm:$0xff]   ;;  %v619_v31 = vld [vmem:[%s790_s1 + $0xb8] sm:$0xff]   ;;  %365 = vmatprep.mubr.bf16.mxu0 %v482_v34  ;;  %v626_v40 = vld [vmem:[%s790_s1 + $0x108] sm:$0xff]  }
   0xd   :  { %552 = vmatpush3.bf16.msra.mxu1 %v599_v11  ;;  %531 = vmatprep.subr.bf16.mxu0 %v600_v12  ;;  %v627_v41 = vld [vmem:[%s790_s1 + $0x110] sm:$0xff]   ;;  %v628_v42 = vld [vmem:[%s790_s1 + $0x118] sm:$0xff]   ;;  %v523_v56 = vld [vmem:[%s792_s2] ss:$0 sm:$0xff] }
   0xe   :  { %553 = vmatprep.subr.bf16.mxu1 %v601_v13  ;;  %405 = vmatprep.mubr.bf16.mxu1 %v484_v38  ;;  %v622_v43 = vld [vmem:[%s791_s0 + $0x10] ss:$0 sps:$4 sm:$0xff]   ;;  %v469_v57 = vld [vmem:[%s793_s4] sm:$0xf] }
   0xf   :  { %v524_v60 = vld [vmem:[%s794_s3] ss:$0 sm:$0xff]  ;;  %v470_v63 = vunpack.c.l.bf16 %v469_v57 }
  0x10   :  { %532 = vmatpush3.bf16.msra.mxu0 %v602_v14 }
  0x11   :  { %554 = vmatpush3.bf16.msra.mxu1 %v603_v15  ;;  %533 = vmatprep.subr.bf16.mxu0 %v604_v16 }
  0x12   :  { %555 = vmatprep.subr.bf16.mxu1 %v605_v17 }
  0x14   :  { %534 = vmatpush3.bf16.msra.mxu0 %v606_v18 }
  0x15   :  { %556 = vmatpush3.bf16.msra.mxu1 %v607_v19  ;;  %535 = vmatprep.subr.bf16.mxu0 %v608_v20 }
  0x16   :  { %557 = vmatprep.subr.bf16.mxu1 %v609_v21 }
  0x18   :  { %536 = vmatpush3.bf16.msra.mxu0 %v610_v22 }
  0x19   :  { %558 = vmatpush3.bf16.msra.mxu1 %v611_v23  ;;  %537 = vmatprep.subr.bf16.mxu0 %v612_v24 }
  0x1a   :  { %559 = vmatprep.subr.bf16.mxu1 %v613_v25 }
  0x1c   :  { %538 = vmatpush3.bf16.msra.mxu0 %v614_v26 }
  0x1d   :  { %560 = vmatpush3.bf16.msra.mxu1 %v615_v27  ;;  %539 = vmatprep.subr.bf16.mxu0 %v616_v28 }
  0x1e   :  { %561 = vmatprep.subr.bf16.mxu1 %v617_v29 }
  0x20   :  { %540 = vmatpush3.bf16.msra.mxu0 %v618_v30 }
  0x21   :  { %562 = vmatpush3.bf16.msra.mxu1 %v619_v31  ;;  %574 = vmatprep.subr.bf16.mxu0 %v629_v36 }
  0x23   :  { %366 = vmatmul.mubr.bf16.vlgmr.msra.gmra.mrb[0].mxu0 %v481_v33 }
  0x24   :  { %406 = vmatmul.mubr.bf16.vlgmr.msra.gmra.mrb[0].mxu1 %v483_v37  ;;  %575 = vmatpush3.bf16.msra.mxu0 %v625_v39 }
  0x25   :  { %576 = vmatprep.subr.bf16.mxu0 %v629_v36  ;;  %582 = vmatprep.mubr.msk.bf16.mxu0 %vm630_vm0, %v629_v36 }
  0x28   :  { %577 = vmatpush3.bf16.msra.mxu0 %v626_v40 }
  0x29   :  { %578 = vmatprep.subr.bf16.mxu0 %v629_v36 }
  0x2c   :  { %579 = vmatpush3.bf16.msra.mxu0 %v627_v41 }
  0x2d   :  { %580 = vmatprep.subr.bf16.mxu0 %v629_v36 }
  0x30   :  { %581 = vmatpush3.bf16.msra.mxu0 %v628_v42 }
  0x33   :  { %583 = vmatmul.mubr.msk.bf16.vlgmr.msra.gmra.mrb[4].mxu0 %vm329_vm1, %v622_v43 }
  0xf6   :  { %v541_v44 = vpop.f32.mrb[0].mxu0 }
  0xf7   :  { %v563_v45 = vpop.f32.mrb[0].mxu1  ;;  %v542_v46 = vpop.f32.mrb[1].mxu0 }
  0xf8   :  { %v543_v47 = vadd.f32 %v542_v46, %v541_v44  ;;  %v564_v48 = vpop.f32.mrb[1].mxu1  ;;  %v544_v49 = vpop.f32.mrb[2].mxu0 }
  0xf9   :  { %v565_v50 = vadd.f32 %v564_v48, %v563_v45  ;;  %v545_v51 = vpop.f32.mrb[3].mxu0  ;;  %v566_v52 = vpop.f32.mrb[2].mxu1 }
  0xfa   :  { %v567_v53 = vpop.f32.mrb[3].mxu1 }
  0xfb   :  { %v408_v54 = vadd.f32 %v565_v50, %v543_v47 }
 0x106   :  { %v447_v55 = vpop.f32.mrb[4].mxu0 }
 0x107   :  { %v448_v58 = vadd.f32 %v447_v55, %v408_v54  ;;  %v584_v59 = vpop.f32.mrb[5].mxu0 }
 0x108   :  { %v450_v61 = vpop.f32.mrb[6].mxu0 }
 0x109   :  { %v460_v62 = vmul.f32 %v523_v56, %v448_v58  ;;  %v585_v0 = vpop.f32.mrb[7].mxu0 }
 0x10b   :  { %v468_v1 = vadd.f32 %v524_v60, %v460_v62 }
 0x10d   :  { %v471_v2 = vadd.f32 %v470_v63, %v468_v1 }
 0x10f   :  { %vm472_vm2 = vcmp.ge.f32.partialorder %v471_v2, 0.0  ;;  %v473_v3 = vmul.f32 0.01, %v471_v2 }
 0x111   :  { %v474_v4 = vsel %vm472_vm2, %v471_v2, %v473_v3 }
 0x112   :  { %v475_v5 = vpack.c.bf16 %v474_v4, %v474_v4 }
 0x114   :  { %476 = vst [vmem:[%s795_s5] sm:$0xf] %v475_v5 }

// kernel: resnet_forward.23
= control target key start
LH: loop header
LB: loop body
LE: loop exit
PB: predicated region body
PF: predicated region fallthrough
CT: control target
= control target key end

     0   :  { %v147_v0 = vmov 0.0   ;;  %vm148_vm0 = vmmov 0   ;;  %vm51_vm1 = vcmask 523264   ;;  %s198_s1 = inlined_call_operand.vmem [shape: bf16[64,128], index: 1, kind: input, shape index: {}]   ;;  %s199_s0 = inlined_call_operand.vmem [shape: bf16[2,64], index: 0, kind: input, shape index: {}]   ;;  %s200_s2 = inlined_call_operand.vmem [shape: f32[1,128], index: 2, kind: input, shape index: {}]   ;;  %s201_s3 = inlined_call_operand.vmem [shape: f32[1,128], index: 3, kind: input, shape index: {}]   ;;  %s202_s4 = inlined_call_operand.vmem [shape: bf16[2,128], index: 4, kind: output, shape index: {}]  }
   0x1   :  { %129 = vmatprep.subr.bf16.mxu0 %v147_v0  ;;  %v143_v1 = vld [vmem:[%s198_s1] sm:$0xff]   ;;  %137 = vmatprep.mubr.msk.bf16.mxu0 %vm148_vm0, %v147_v0  ;;  %v144_v2 = vld [vmem:[%s198_s1 + $0x8] sm:$0xff]   ;;  %v145_v3 = vld [vmem:[%s198_s1 + $0x10] sm:$0xff]  }
   0x2   :  { %130 = vmatpush3.bf16.msra.mxu0 %v143_v1  ;;  %v146_v4 = vld [vmem:[%s198_s1 + $0x18] sm:$0xff]   ;;  %v18_v5 = vld [vmem:[%s199_s0] sm:$0x1] }
   0x3   :  { %131 = vmatprep.subr.bf16.mxu0 %v147_v0  ;;  %v122_v6 = vld [vmem:[%s200_s2] ss:$0 sm:$0xff] }
   0x4   :  { %v123_v8 = vld [vmem:[%s201_s3] ss:$0 sm:$0xff] }
   0x6   :  { %132 = vmatpush3.bf16.msra.mxu0 %v144_v2 }
   0x7   :  { %133 = vmatprep.subr.bf16.mxu0 %v147_v0 }
   0xa   :  { %134 = vmatpush3.bf16.msra.mxu0 %v145_v3 }
   0xb   :  { %135 = vmatprep.subr.bf16.mxu0 %v147_v0 }
   0xe   :  { %136 = vmatpush3.bf16.msra.mxu0 %v146_v4 }
  0x11   :  { %138 = vmatmul.mubr.msk.bf16.vlgmr.msra.gmra.mrb[0].mxu0 %vm51_vm1, %v18_v5 }
  0xe4   :  { %v89_v7 = vpop.f32.mrb[0].mxu0 }
  0xe5   :  { %v102_v9 = vmul.f32 %v122_v6, %v89_v7  ;;  %v139_v10 = vpop.f32.mrb[1].mxu0 }
  0xe6   :  { %v92_v11 = vpop.f32.mrb[2].mxu0 }
  0xe7   :  { %v110_v12 = vadd.f32 %v123_v8, %v102_v9  ;;  %v140_v13 = vpop.f32.mrb[3].mxu0 }
  0xe9   :  { %v111_v14 = vpack.c.bf16 %v110_v12, %v110_v12 }
  0xeb   :  { %112 = vst [vmem:[%s202_s4] sm:$0x1] %v111_v14 }

// kernel: resnet_forward.28
= control target key start
LH: loop header
LB: loop body
LE: loop exit
PB: predicated region body
PF: predicated region fallthrough
CT: control target
= control target key end

     0   :  { %v98_v30 = vlaneseq  ;;  %v678_v33 = vmov 1966171168   ;;  %v679_v36 = vmov 0.0   ;;  %vm680_vm0 = vmmov 0   ;;  %s831_s0 = inlined_call_operand.vmem [shape: bf16[2,1,1,9,128], index: 0, kind: input, shape index: {}, may-alias: {0,5}]   ;;  %s832_s1 = inlined_call_operand.vmem [shape: bf16[2,576], index: 1, kind: input, shape index: {}]   ;;  %s833_s2 = inlined_call_operand.vmem [shape: bf16[576,128], index: 2, kind: input, shape index: {}]   ;;  %s834_s3 = inlined_call_operand.vmem [shape: f32[1,128], index: 3, kind: input, shape index: {}]   ;;  %s835_s4 = inlined_call_operand.vmem [shape: f32[1,128], index: 4, kind: input, shape index: {}]   ;;  %s836_s5 = inlined_call_operand.vmem [shape: bf16[2,1,1,9,128], index: 5, kind: output, shape index: {}, may-alias: {0,5}]  }
   0x1   :  { %v641_v0 = vld [vmem:[%s833_s2 + $0x40] sm:$0xff]   ;;  %v645_v4 = vld [vmem:[%s833_s2 + $0x48] sm:$0xff]   ;;  %v649_v8 = vld [vmem:[%s833_s2 + $0x50] sm:$0xff]   ;;  %v96_v34 = vunpack.c.l.s4 %v678_v33  ;;  %vm353_vm1 = vcmask 523264  }
   0x2   :  { %v642_v1 = vld [vmem:[%s833_s2 + $0xc0] sm:$0xff]   ;;  %577 = vmatprep.subr.bf16.mxu0 %v641_v0  ;;  %v646_v5 = vld [vmem:[%s833_s2 + $0xc8] sm:$0xff]   ;;  %v650_v9 = vld [vmem:[%s833_s2 + $0xd0] sm:$0xff]   ;;  %v99_v35 = vshrl.u32 %v98_v30, 7 }
   0x3   :  { %v643_v2 = vld [vmem:[%s833_s2] sm:$0xff]   ;;  %599 = vmatprep.subr.bf16.mxu1 %v642_v1  ;;  %v647_v6 = vld [vmem:[%s833_s2 + $0x8] sm:$0xff]   ;;  %v651_v10 = vld [vmem:[%s833_s2 + $0x10] sm:$0xff]   ;;  %v97_v37 = vunpack.c.0.s8 %v96_v34 }
   0x4   :  { %v644_v3 = vld [vmem:[%s833_s2 + $0x80] sm:$0xff]   ;;  %578 = vmatpush3.bf16.msra.mxu0 %v643_v2  ;;  %v648_v7 = vld [vmem:[%s833_s2 + $0x88] sm:$0xff]   ;;  %v652_v11 = vld [vmem:[%s833_s2 + $0x90] sm:$0xff]  }
   0x5   :  { %600 = vmatpush3.bf16.msra.mxu1 %v644_v3  ;;  %579 = vmatprep.subr.bf16.mxu0 %v645_v4  ;;  %v653_v12 = vld [vmem:[%s833_s2 + $0x58] sm:$0xff]   ;;  %v657_v16 = vld [vmem:[%s833_s2 + $0x60] sm:$0xff]   ;;  %v661_v20 = vld [vmem:[%s833_s2 + $0x68] sm:$0xff]   ;;  %v100_v39 = vsub.s32 %v97_v37, %v99_v35 }
   0x6   :  { %601 = vmatprep.subr.bf16.mxu1 %v646_v5  ;;  %v654_v13 = vld [vmem:[%s833_s2 + $0xd8] sm:$0xff]   ;;  %v658_v17 = vld [vmem:[%s833_s2 + $0xe0] sm:$0xff]   ;;  %v662_v21 = vld [vmem:[%s833_s2 + $0xe8] sm:$0xff]  }
   0x7   :  { %v655_v14 = vld [vmem:[%s833_s2 + $0x18] sm:$0xff]   ;;  %v659_v18 = vld [vmem:[%s833_s2 + $0x20] sm:$0xff]   ;;  %v663_v22 = vld [vmem:[%s833_s2 + $0x28] sm:$0xff]  }
   0x8   :  { %580 = vmatpush3.bf16.msra.mxu0 %v647_v6  ;;  %v656_v15 = vld [vmem:[%s833_s2 + $0x98] sm:$0xff]   ;;  %v660_v19 = vld [vmem:[%s833_s2 + $0xa0] sm:$0xff]   ;;  %v664_v23 = vld [vmem:[%s833_s2 + $0xa8] sm:$0xff]  }
   0x9   :  { %602 = vmatpush3.bf16.msra.mxu1 %v648_v7  ;;  %581 = vmatprep.subr.bf16.mxu0 %v649_v8  ;;  %v665_v24 = vld [vmem:[%s833_s2 + $0x70] sm:$0xff]   ;;  %v669_v28 = vld [vmem:[%s833_s2 + $0x78] sm:$0xff]   ;;  %v20_v38 = vld [vmem:[%s832_s1] sm:$0x1f] }
   0xa   :  { %603 = vmatprep.subr.bf16.mxu1 %v650_v9  ;;  %v666_v25 = vld [vmem:[%s833_s2 + $0xf0] sm:$0xff]   ;;  %v670_v29 = vld [vmem:[%s833_s2 + $0xf8] sm:$0xff]   ;;  %v101_v40 = vrot.slane %v20_v38, %v100_v39  ;;  %v674_v44 = vld [vmem:[%s833_s2 + $0x100] sm:$0xff]   ;;  %v94_v48 = vcombine.high %v20_v38, %v20_v38 }
   0xb   :  { %v667_v26 = vld [vmem:[%s833_s2 + $0x30] sm:$0xff]   ;;  %v671_v31 = vld [vmem:[%s833_s2 + $0x38] sm:$0xff]   ;;  %v675_v47 = vld [vmem:[%s833_s2 + $0x108] sm:$0xff]  }
   0xc   :  { %582 = vmatpush3.bf16.msra.mxu0 %v651_v10  ;;  %v668_v27 = vld [vmem:[%s833_s2 + $0xb0] sm:$0xff]   ;;  %v672_v32 = vld [vmem:[%s833_s2 + $0xb8] sm:$0xff]   ;;  %v109_v41 = vcombine.high %v101_v40, %v101_v40  ;;  %v116_v42 = vrot.slane %v101_v40, %v100_v39  ;;  %v108_v50 = vrot.slane %v94_v48, %v100_v39  ;;  %v574_v1 = vld [vmem:[%s834_s3] ss:$0 sm:$0xff] }
   0xd   :  { %604 = vmatpush3.bf16.msra.mxu1 %v652_v11  ;;  %583 = vmatprep.subr.bf16.mxu0 %v653_v12  ;;  %v676_v49 = vld [vmem:[%s833_s2 + $0x110] sm:$0xff]   ;;  %v677_v51 = vld [vmem:[%s833_s2 + $0x118] sm:$0xff]   ;;  %v575_v4 = vld [vmem:[%s835_s4] ss:$0 sm:$0xff] }
   0xe   :  { %605 = vmatprep.subr.bf16.mxu1 %v654_v13  ;;  %v130_v43 = vrot.slane %v109_v41, %v100_v39  ;;  %v131_v45 = vcombine.high %v116_v42, %v116_v42  ;;  %v123_v52 = vrot.slane %v108_v50, %v100_v39 }
  0x10   :  { %584 = vmatpush3.bf16.msra.mxu0 %v655_v14  ;;  %389 = vmatprep.mubr.bf16.mxu0 %v130_v43  ;;  %v132_v46 = vcombine.high %v130_v43, %v130_v43 }
  0x11   :  { %606 = vmatpush3.bf16.msra.mxu1 %v656_v15  ;;  %585 = vmatprep.subr.bf16.mxu0 %v657_v16 }
  0x12   :  { %607 = vmatprep.subr.bf16.mxu1 %v658_v17  ;;  %429 = vmatprep.mubr.bf16.mxu1 %v132_v46 }
  0x14   :  { %586 = vmatpush3.bf16.msra.mxu0 %v659_v18 }
  0x15   :  { %608 = vmatpush3.bf16.msra.mxu1 %v660_v19  ;;  %587 = vmatprep.subr.bf16.mxu0 %v661_v20 }
  0x16   :  { %609 = vmatprep.subr.bf16.mxu1 %v662_v21 }
  0x18   :  { %588 = vmatpush3.bf16.msra.mxu0 %v663_v22 }
  0x19   :  { %610 = vmatpush3.bf16.msra.mxu1 %v664_v23  ;;  %589 = vmatprep.subr.bf16.mxu0 %v665_v24 }
  0x1a   :  { %611 = vmatprep.subr.bf16.mxu1 %v666_v25 }
  0x1c   :  { %590 = vmatpush3.bf16.msra.mxu0 %v667_v26 }
  0x1d   :  { %612 = vmatpush3.bf16.msra.mxu1 %v668_v27  ;;  %591 = vmatprep.subr.bf16.mxu0 %v669_v28 }
  0x1e   :  { %613 = vmatprep.subr.bf16.mxu1 %v670_v29 }
  0x20   :  { %592 = vmatpush3.bf16.msra.mxu0 %v671_v31 }
  0x21   :  { %614 = vmatpush3.bf16.msra.mxu1 %v672_v32  ;;  %626 = vmatprep.subr.bf16.mxu0 %v679_v36 }
  0x23   :  { %390 = vmatmul.mubr.bf16.vlgmr.msra.gmra.mrb[0].mxu0 %v116_v42 }
  0x24   :  { %627 = vmatpush3.bf16.msra.mxu0 %v674_v44  ;;  %430 = vmatmul.mubr.bf16.vlgmr.msra.gmra.mrb[0].mxu1 %v131_v45 }
  0x25   :  { %628 = vmatprep.subr.bf16.mxu0 %v679_v36  ;;  %634 = vmatprep.mubr.msk.bf16.mxu0 %vm680_vm0, %v679_v36 }
  0x28   :  { %629 = vmatpush3.bf16.msra.mxu0 %v675_v47 }
  0x29   :  { %630 = vmatprep.subr.bf16.mxu0 %v679_v36 }
  0x2c   :  { %631 = vmatpush3.bf16.msra.mxu0 %v676_v49 }
  0x2d   :  { %632 = vmatprep.subr.bf16.mxu0 %v679_v36 }
  0x30   :  { %633 = vmatpush3.bf16.msra.mxu0 %v677_v51 }
  0x33   :  { %635 = vmatmul.mubr.msk.bf16.vlgmr.msra.gmra.mrb[4].mxu0 %vm353_vm1, %v123_v52 }
  0xf6   :  { %v593_v53 = vpop.f32.mrb[0].mxu0 }
  0xf7   :  { %v594_v54 = vpop.f32.mrb[1].mxu0  ;;  %v615_v55 = vpop.f32.mrb[0].mxu1 }
  0xf8   :  { %v595_v56 = vadd.f32 %v594_v54, %v593_v53  ;;  %v596_v57 = vpop.f32.mrb[2].mxu0  ;;  %v616_v58 = vpop.f32.mrb[1].mxu1 }
  0xf9   :  { %v597_v59 = vpop.f32.mrb[3].mxu0  ;;  %v617_v60 = vadd.f32 %v616_v58, %v615_v55  ;;  %v618_v61 = vpop.f32.mrb[2].mxu1 }
  0xfa   :  { %v619_v62 = vpop.f32.mrb[3].mxu1 }
  0xfb   :  { %v432_v63 = vadd.f32 %v617_v60, %v595_v56 }
 0x106   :  { %v471_v0 = vpop.f32.mrb[4].mxu0 }
 0x107   :  { %v472_v2 = vadd.f32 %v471_v0, %v432_v63  ;;  %v636_v3 = vpop.f32.mrb[5].mxu0 }
 0x108   :  { %v474_v5 = vpop.f32.mrb[6].mxu0 }
 0x109   :  { %v484_v6 = vmul.f32 %v574_v1, %v472_v2  ;;  %v637_v7 = vpop.f32.mrb[7].mxu0 }
 0x10b   :  { %v492_v8 = vadd.f32 %v575_v4, %v484_v6 }
 0x10d   :  { %vm493_vm2 = vcmp.ge.f32.partialorder %v492_v8, 0.0  ;;  %v494_v9 = vmul.f32 0.01, %v492_v8 }
 0x10f   :  { %v495_v10 = vsel %vm493_vm2, %v492_v8, %v494_v9 }
 0x110   :  { %v496_v11 = vpack.c.bf16 %v495_v10, %v495_v10 }
 0x112   :  { %497 = vst [vmem:[#allocation2] sm:$0x1] %v496_v11 }
 0x119   :  { %v515_v12 = vld [vmem:[#allocation2] sm:$0x1] }
 0x11a   :  { %576 = vst [vmem:[%s836_s5 + $0x4] sm:$0x1] %v515_v12 }

// kernel: resnet_forward.24
= control target key start
LH: loop header
LB: loop body
LE: loop exit
PB: predicated region body
PF: predicated region fallthrough
CT: control target
= control target key end

     0   :  { %v1169_v22 = vmov 1966171168   ;;  %v173_v24 = vlaneseq  ;;  %vm1171_vm0 = vmmov 0   ;;  %s1450_s1 = inlined_call_operand.vmem [shape: bf16[1152,128], index: 1, kind: input, shape index: {}]   ;;  %s1451_s0 = inlined_call_operand.vmem [shape: bf16[2,1152], index: 0, kind: input, shape index: {}]   ;;  %s1452_s2 = inlined_call_operand.vmem [shape: f32[1,128], index: 2, kind: input, shape index: {}]   ;;  %s1453_s4 = inlined_call_operand.vmem [shape: bf16[2,128], index: 4, kind: input, shape index: {}]   ;;  %s1454_s3 = inlined_call_operand.vmem [shape: f32[1,128], index: 3, kind: input, shape index: {}]   ;;  %s1455_s5 = inlined_call_operand.vmem [shape: bf16[2,128], index: 5, kind: output, shape index: {}]  }
   0x1   :  { %v1096_v0 = vld [vmem:[%s1450_s1 + $0x40] sm:$0xff]   ;;  %v1100_v4 = vld [vmem:[%s1450_s1 + $0x48] sm:$0xff]   ;;  %v1104_v8 = vld [vmem:[%s1450_s1 + $0x50] sm:$0xff]   ;;  %v171_v23 = vunpack.c.l.s4 %v1169_v22 }
   0x2   :  { %v1097_v1 = vld [vmem:[%s1450_s1 + $0xc0] sm:$0xff]   ;;  %976 = vmatprep.subr.bf16.mxu0 %v1096_v0  ;;  %v1101_v5 = vld [vmem:[%s1450_s1 + $0xc8] sm:$0xff]   ;;  %v1105_v9 = vld [vmem:[%s1450_s1 + $0xd0] sm:$0xff]   ;;  %v174_v30 = vshrl.u32 %v173_v24, 7 }
   0x3   :  { %v1098_v2 = vld [vmem:[%s1450_s1] sm:$0xff]   ;;  %998 = vmatprep.subr.bf16.mxu1 %v1097_v1  ;;  %v1102_v6 = vld [vmem:[%s1450_s1 + $0x8] sm:$0xff]   ;;  %v1106_v10 = vld [vmem:[%s1450_s1 + $0x10] sm:$0xff]   ;;  %v172_v29 = vunpack.c.0.s8 %v171_v23 }
   0x4   :  { %v1099_v3 = vld [vmem:[%s1450_s1 + $0x80] sm:$0xff]   ;;  %977 = vmatpush3.bf16.msra.mxu0 %v1098_v2  ;;  %v1103_v7 = vld [vmem:[%s1450_s1 + $0x88] sm:$0xff]   ;;  %v1107_v11 = vld [vmem:[%s1450_s1 + $0x90] sm:$0xff]  }
   0x5   :  { %999 = vmatpush3.bf16.msra.mxu1 %v1099_v3  ;;  %978 = vmatprep.subr.bf16.mxu0 %v1100_v4  ;;  %v1108_v12 = vld [vmem:[%s1450_s1 + $0x58] sm:$0xff]   ;;  %v1112_v16 = vld [vmem:[%s1450_s1 + $0x60] sm:$0xff]   ;;  %v1116_v20 = vld [vmem:[%s1450_s1 + $0x68] sm:$0xff]   ;;  %v1292_v35 = vsub.s32 %v172_v29, %v174_v30 }
   0x6   :  { %1000 = vmatprep.subr.bf16.mxu1 %v1101_v5  ;;  %v1109_v13 = vld [vmem:[%s1450_s1 + $0xd8] sm:$0xff]   ;;  %v1113_v17 = vld [vmem:[%s1450_s1 + $0xe0] sm:$0xff]   ;;  %v1117_v21 = vld [vmem:[%s1450_s1 + $0xe8] sm:$0xff]  }
   0x7   :  { %v1110_v14 = vld [vmem:[%s1450_s1 + $0x18] sm:$0xff]   ;;  %v1114_v18 = vld [vmem:[%s1450_s1 + $0x20] sm:$0xff]   ;;  %v1118_v25 = vld [vmem:[%s1450_s1 + $0x28] sm:$0xff]  }
   0x8   :  { %979 = vmatpush3.bf16.msra.mxu0 %v1102_v6  ;;  %v1111_v15 = vld [vmem:[%s1450_s1 + $0x98] sm:$0xff]   ;;  %v1115_v19 = vld [vmem:[%s1450_s1 + $0xa0] sm:$0xff]   ;;  %v1119_v26 = vld [vmem:[%s1450_s1 + $0xa8] sm:$0xff]  }
   0x9   :  { %1001 = vmatpush3.bf16.msra.mxu1 %v1103_v7  ;;  %980 = vmatprep.subr.bf16.mxu0 %v1104_v8  ;;  %v1120_v27 = vld [vmem:[%s1450_s1 + $0x70] sm:$0xff]   ;;  %v1124_v33 = vld [vmem:[%s1450_s1 + $0x78] sm:$0xff]   ;;  %v21_v38 = vld [vmem:[%s1451_s0] sm:$0xff] }
   0xa   :  { %1002 = vmatprep.subr.bf16.mxu1 %v1105_v9  ;;  %v1121_v28 = vld [vmem:[%s1450_s1 + $0xf0] sm:$0xff]   ;;  %v1125_v34 = vld [vmem:[%s1450_s1 + $0xf8] sm:$0xff]   ;;  %v169_v39 = vcombine.high %v21_v38, %v21_v38  ;;  %v176_v40 = vrot.slane %v21_v38, %v1292_v35  ;;  %v1129_v41 = vld [vmem:[%s1450_s1 + $0x140] sm:$0xff]  }
   0xb   :  { %v1122_v31 = vld [vmem:[%s1450_s1 + $0x30] sm:$0xff]   ;;  %v1126_v36 = vld [vmem:[%s1450_s1 + $0x38] sm:$0xff]   ;;  %v1131_v44 = vld [vmem:[%s1450_s1 + $0x1c0] sm:$0xff]  }
   0xc   :  { %981 = vmatpush3.bf16.msra.mxu0 %v1106_v10  ;;  %v1123_v32 = vld [vmem:[%s1450_s1 + $0xb0] sm:$0xff]   ;;  %v1127_v37 = vld [vmem:[%s1450_s1 + $0xb8] sm:$0xff]   ;;  %v184_v42 = vcombine.high %v176_v40, %v176_v40  ;;  %v192_v43 = vrot.slane %v176_v40, %v1292_v35  ;;  %v1312_v45 = vrot.slane %v169_v39, %v1292_v35  ;;  %v1130_v47 = vld [vmem:[%s1450_s1 + $0x100] sm:$0xff]  }
   0xd   :  { %1003 = vmatpush3.bf16.msra.mxu1 %v1107_v11  ;;  %982 = vmatprep.subr.bf16.mxu0 %v1108_v12  ;;  %v1133_v50 = vld [vmem:[%s1450_s1 + $0x148] sm:$0xff]   ;;  %v1132_v52 = vld [vmem:[%s1450_s1 + $0x180] sm:$0xff]   ;;  %v1137_v57 = vld [vmem:[%s1450_s1 + $0x150] sm:$0xff]  }
   0xe   :  { %1004 = vmatprep.subr.bf16.mxu1 %v1109_v13  ;;  %v206_v46 = vrot.slane %v184_v42, %v1292_v35  ;;  %v185_v48 = vcombine.high %v1312_v45, %v1312_v45  ;;  %v214_v49 = vcombine.high %v192_v43, %v192_v43  ;;  %v1135_v54 = vld [vmem:[%s1450_s1 + $0x1c8] sm:$0xff]   ;;  %v1139_v59 = vld [vmem:[%s1450_s1 + $0x1d0] sm:$0xff]   ;;  %v1141_v61 = vld [vmem:[%s1450_s1 + $0x158] sm:$0xff]  }
   0xf   :  { %v1134_v55 = vld [vmem:[%s1450_s1 + $0x108] sm:$0xff]   ;;  %v1138_v60 = vld [vmem:[%s1450_s1 + $0x110] sm:$0xff]   ;;  %v1143_v63 = vld [vmem:[%s1450_s1 + $0x1d8] sm:$0xff]  }
  0x10   :  { %983 = vmatpush3.bf16.msra.mxu0 %v1110_v14  ;;  %705 = vmatprep.mubr.bf16.mxu0 %v206_v46  ;;  %v216_v51 = vcombine.high %v206_v46, %v206_v46  ;;  %v213_v53 = vrot.slane %v185_v48, %v1292_v35  ;;  %v1136_v58 = vld [vmem:[%s1450_s1 + $0x188] sm:$0xff]   ;;  %v1140_v62 = vld [vmem:[%s1450_s1 + $0x190] sm:$0xff]   ;;  %v1142_v0 = vld [vmem:[%s1450_s1 + $0x118] sm:$0xff]  }
  0x11   :  { %1005 = vmatpush3.bf16.msra.mxu1 %v1111_v15  ;;  %984 = vmatprep.subr.bf16.mxu0 %v1112_v16  ;;  %v1145_v1 = vld [vmem:[%s1450_s1 + $0x160] sm:$0xff]   ;;  %v1144_v2 = vld [vmem:[%s1450_s1 + $0x198] sm:$0xff]   ;;  %v1149_v5 = vld [vmem:[%s1450_s1 + $0x168] sm:$0xff]  }
  0x12   :  { %1006 = vmatprep.subr.bf16.mxu1 %v1113_v17  ;;  %745 = vmatprep.mubr.bf16.mxu1 %v216_v51  ;;  %v217_v56 = vcombine.high %v213_v53, %v213_v53  ;;  %v1147_v3 = vld [vmem:[%s1450_s1 + $0x1e0] sm:$0xff]   ;;  %v1151_v7 = vld [vmem:[%s1450_s1 + $0x1e8] sm:$0xff]   ;;  %v1153_v9 = vld [vmem:[%s1450_s1 + $0x170] sm:$0xff]   ;;  %v199_v17 = vrot.slane %v1312_v45, %v1292_v35 }
  0x13   :  { %v1146_v4 = vld [vmem:[%s1450_s1 + $0x120] sm:$0xff]   ;;  %v1150_v8 = vld [vmem:[%s1450_s1 + $0x128] sm:$0xff]   ;;  %v1155_v11 = vld [vmem:[%s1450_s1 + $0x1f0] sm:$0xff]  }
  0x14   :  { %985 = vmatpush3.bf16.msra.mxu0 %v1114_v18  ;;  %v1148_v6 = vld [vmem:[%s1450_s1 + $0x1a0] sm:$0xff]   ;;  %v1152_v10 = vld [vmem:[%s1450_s1 + $0x1a8] sm:$0xff]   ;;  %v1154_v12 = vld [vmem:[%s1450_s1 + $0x130] sm:$0xff]  }
  0x15   :  { %1007 = vmatpush3.bf16.msra.mxu1 %v1115_v19  ;;  %986 = vmatprep.subr.bf16.mxu0 %v1116_v20  ;;  %v1157_v13 = vld [vmem:[%s1450_s1 + $0x178] sm:$0xff]   ;;  %v1156_v14 = vld [vmem:[%s1450_s1 + $0x1b0] sm:$0xff]   ;;  %v1161_v19 = vld [vmem:[%s1450_s1 + $0x200] sm:$0xff]   ;;  %v1170_v20 = vmov 0.0  }
  0x16   :  { %1008 = vmatprep.subr.bf16.mxu1 %v1117_v21  ;;  %v1159_v15 = vld [vmem:[%s1450_s1 + $0x1f8] sm:$0xff]   ;;  %v215_v21 = vcombine.high %v199_v17, %v199_v17  ;;  %v901_v22 = vld.sshfl [vmem:[%s1451_s0 + $0x8] sm:$0x1 pattern:$0x75316420]  ;;  %v1167_v29 = vld [vmem:[%s1450_s1 + $0x230] sm:$0xff]  }
  0x17   :  { %v1158_v16 = vld [vmem:[%s1450_s1 + $0x138] sm:$0xff]   ;;  %v1162_v23 = vld [vmem:[%s1450_s1 + $0x208] sm:$0xff]   ;;  %v231_v24 = vrot.slane %v901_v22, %v1292_v35 }
  0x18   :  { %987 = vmatpush3.bf16.msra.mxu0 %v1118_v25  ;;  %v1160_v18 = vld [vmem:[%s1450_s1 + $0x1b8] sm:$0xff]   ;;  %v1163_v25 = vld [vmem:[%s1450_s1 + $0x210] sm:$0xff]  }
  0x19   :  { %1009 = vmatpush3.bf16.msra.mxu1 %v1119_v26  ;;  %988 = vmatprep.subr.bf16.mxu0 %v1120_v27  ;;  %v1164_v26 = vld [vmem:[%s1450_s1 + $0x218] sm:$0xff]   ;;  %v1165_v27 = vld [vmem:[%s1450_s1 + $0x220] sm:$0xff]  }
  0x1a   :  { %1010 = vmatprep.subr.bf16.mxu1 %v1121_v28  ;;  %v1166_v28 = vld [vmem:[%s1450_s1 + $0x228] sm:$0xff]   ;;  %v1168_v30 = vld [vmem:[%s1450_s1 + $0x238] sm:$0xff]  }
  0x1c   :  { %989 = vmatpush3.bf16.msra.mxu0 %v1122_v31 }
  0x1d   :  { %1011 = vmatpush3.bf16.msra.mxu1 %v1123_v32  ;;  %990 = vmatprep.subr.bf16.mxu0 %v1124_v33 }
  0x1e   :  { %1012 = vmatprep.subr.bf16.mxu1 %v1125_v34 }
  0x20   :  { %991 = vmatpush3.bf16.msra.mxu0 %v1126_v36 }
  0x21   :  { %1013 = vmatpush3.bf16.msra.mxu1 %v1127_v37  ;;  %1020 = vmatprep.subr.bf16.mxu0 %v1129_v41 }
  0x22   :  { %1042 = vmatprep.subr.bf16.mxu1 %v1131_v44 }
  0x23   :  { %706 = vmatmul.mubr.bf16.vlgmr.msra.gmra.mrb[0].mxu0 %v192_v43 }
  0x24   :  { %1021 = vmatpush3.bf16.msra.mxu0 %v1130_v47  ;;  %746 = vmatmul.mubr.bf16.vlgmr.msra.gmra.mrb[0].mxu1 %v214_v49 }
  0x25   :  { %1022 = vmatprep.subr.bf16.mxu0 %v1133_v50  ;;  %1043 = vmatpush3.bf16.msra.mxu1 %v1132_v52 }
  0x26   :  { %785 = vmatprep.mubr.bf16.mxu0 %v213_v53  ;;  %1044 = vmatprep.subr.bf16.mxu1 %v1135_v54 }
  0x27   :  { %825 = vmatprep.mubr.bf16.mxu1 %v217_v56  ;;  %v889_v56 = vld [vmem:[%s1453_s4] sm:$0x1] }
  0x28   :  { %1023 = vmatpush3.bf16.msra.mxu0 %v1134_v55  ;;  %v974_v55 = vld [vmem:[%s1452_s2] ss:$0 sm:$0xff] }
  0x29   :  { %1024 = vmatprep.subr.bf16.mxu0 %v1137_v57  ;;  %1045 = vmatpush3.bf16.msra.mxu1 %v1136_v58 }
  0x2a   :  { %1046 = vmatprep.subr.bf16.mxu1 %v1139_v59  ;;  %v975_v59 = vld [vmem:[%s1454_s3] ss:$0 sm:$0xff] }
  0x2c   :  { %1025 = vmatpush3.bf16.msra.mxu0 %v1138_v60 }
  0x2d   :  { %1026 = vmatprep.subr.bf16.mxu0 %v1141_v61  ;;  %1047 = vmatpush3.bf16.msra.mxu1 %v1140_v62  ;;  %v890_v62 = vunpack.c.l.bf16 %v889_v56 }
  0x2e   :  { %1048 = vmatprep.subr.bf16.mxu1 %v1143_v63 }
  0x30   :  { %1027 = vmatpush3.bf16.msra.mxu0 %v1142_v0 }
  0x31   :  { %1028 = vmatprep.subr.bf16.mxu0 %v1145_v1  ;;  %1049 = vmatpush3.bf16.msra.mxu1 %v1144_v2 }
  0x32   :  { %1050 = vmatprep.subr.bf16.mxu1 %v1147_v3 }
  0x34   :  { %1029 = vmatpush3.bf16.msra.mxu0 %v1146_v4 }
  0x35   :  { %1030 = vmatprep.subr.bf16.mxu0 %v1149_v5  ;;  %1051 = vmatpush3.bf16.msra.mxu1 %v1148_v6 }
  0x36   :  { %1052 = vmatprep.subr.bf16.mxu1 %v1151_v7 }
  0x38   :  { %1031 = vmatpush3.bf16.msra.mxu0 %v1150_v8 }
  0x39   :  { %1032 = vmatprep.subr.bf16.mxu0 %v1153_v9  ;;  %1053 = vmatpush3.bf16.msra.mxu1 %v1152_v10 }
  0x3a   :  { %1054 = vmatprep.subr.bf16.mxu1 %v1155_v11 }
  0x3c   :  { %1033 = vmatpush3.bf16.msra.mxu0 %v1154_v12 }
  0x3d   :  { %1034 = vmatprep.subr.bf16.mxu0 %v1157_v13  ;;  %1055 = vmatpush3.bf16.msra.mxu1 %v1156_v14 }
  0x3e   :  { %1056 = vmatprep.subr.bf16.mxu1 %v1159_v15 }
  0x40   :  { %1035 = vmatpush3.bf16.msra.mxu0 %v1158_v16 }
  0x41   :  { %1073 = vmatprep.subr.bf16.mxu0 %v1170_v20  ;;  %1057 = vmatpush3.bf16.msra.mxu1 %v1160_v18 }
  0x43   :  { %786 = vmatmul.mubr.bf16.vlgmr.msra.gmra.mrb[4].mxu0 %v199_v17 }
  0x44   :  { %1074 = vmatpush3.bf16.msra.mxu0 %v1161_v19  ;;  %1089 = vmatprep.mubr.msk.bf16.mxu0 %vm1171_vm0, %v1170_v20 }
  0x45   :  { %826 = vmatmul.mubr.bf16.vlgmr.msra.gmra.mrb[4].mxu1 %v215_v21  ;;  %1075 = vmatprep.subr.bf16.mxu0 %v1170_v20 }
  0x48   :  { %1076 = vmatpush3.bf16.msra.mxu0 %v1162_v23 }
  0x49   :  { %1077 = vmatprep.subr.bf16.mxu0 %v1170_v20 }
  0x4c   :  { %1078 = vmatpush3.bf16.msra.mxu0 %v1163_v25 }
  0x4d   :  { %1079 = vmatprep.subr.bf16.mxu0 %v1170_v20 }
  0x50   :  { %1080 = vmatpush3.bf16.msra.mxu0 %v1164_v26 }
  0x51   :  { %1081 = vmatprep.subr.bf16.mxu0 %v1170_v20 }
  0x54   :  { %1082 = vmatpush3.bf16.msra.mxu0 %v1165_v27 }
  0x55   :  { %1083 = vmatprep.subr.bf16.mxu0 %v1170_v20 }
  0x58   :  { %1084 = vmatpush3.bf16.msra.mxu0 %v1166_v28 }
  0x59   :  { %1085 = vmatprep.subr.bf16.mxu0 %v1170_v20 }
  0x5c   :  { %1086 = vmatpush3.bf16.msra.mxu0 %v1167_v29 }
  0x5d   :  { %1087 = vmatprep.subr.bf16.mxu0 %v1170_v20 }
  0x60   :  { %1088 = vmatpush3.bf16.msra.mxu0 %v1168_v30 }
  0x63   :  { %1090 = vmatmul.mubr.bf16.vlgmr.msra.gmra.mrb[8].mxu0 %v231_v24 }
  0xf6   :  { %v992_v31 = vpop.f32.mrb[0].mxu0 }
  0xf7   :  { %v993_v32 = vpop.f32.mrb[1].mxu0  ;;  %v1014_v33 = vpop.f32.mrb[0].mxu1 }
  0xf8   :  { %v994_v34 = vadd.f32 %v993_v32, %v992_v31  ;;  %v995_v35 = vpop.f32.mrb[2].mxu0  ;;  %v1015_v36 = vpop.f32.mrb[1].mxu1 }
  0xf9   :  { %v996_v37 = vpop.f32.mrb[3].mxu0  ;;  %v1016_v38 = vadd.f32 %v1015_v36, %v1014_v33  ;;  %v1017_v39 = vpop.f32.mrb[2].mxu1 }
  0xfa   :  { %v1018_v40 = vpop.f32.mrb[3].mxu1 }
  0xfb   :  { %v748_v41 = vadd.f32 %v1016_v38, %v994_v34 }
 0x116   :  { %v1036_v42 = vpop.f32.mrb[4].mxu0 }
 0x117   :  { %v1037_v43 = vpop.f32.mrb[5].mxu0 }
 0x118   :  { %v1038_v44 = vadd.f32 %v1037_v43, %v1036_v42  ;;  %v1039_v45 = vpop.f32.mrb[6].mxu0  ;;  %v1058_v46 = vpop.f32.mrb[4].mxu1 }
 0x119   :  { %v1040_v47 = vpop.f32.mrb[7].mxu0  ;;  %v1059_v48 = vpop.f32.mrb[5].mxu1 }
 0x11a   :  { %v788_v49 = vadd.f32 %v1038_v44, %v748_v41  ;;  %v1060_v50 = vadd.f32 %v1059_v48, %v1058_v46  ;;  %v1061_v51 = vpop.f32.mrb[6].mxu1 }
 0x11b   :  { %v1062_v52 = vpop.f32.mrb[7].mxu1 }
 0x11c   :  { %v828_v53 = vadd.f32 %v1060_v50, %v788_v49 }
 0x136   :  { %v867_v54 = vpop.f32.mrb[8].mxu0 }
 0x137   :  { %v868_v57 = vadd.f32 %v867_v54, %v828_v53  ;;  %v1091_v58 = vpop.f32.mrb[9].mxu0 }
 0x138   :  { %v870_v60 = vpop.f32.mrb[10].mxu0 }
 0x139   :  { %v880_v61 = vmul.f32 %v974_v55, %v868_v57  ;;  %v1092_v63 = vpop.f32.mrb[11].mxu0 }
 0x13b   :  { %v888_v0 = vadd.f32 %v975_v59, %v880_v61 }
 0x13d   :  { %v891_v1 = vadd.f32 %v890_v62, %v888_v0 }
 0x13f   :  { %vm892_vm1 = vcmp.ge.f32.partialorder %v891_v1, 0.0  ;;  %v893_v2 = vmul.f32 0.01, %v891_v1 }
 0x141   :  { %v894_v3 = vsel %vm892_vm1, %v891_v1, %v893_v2 }
 0x142   :  { %v895_v4 = vpack.c.bf16 %v894_v3, %v894_v3 }
 0x144   :  { %896 = vst [vmem:[%s1455_s5] sm:$0x1] %v895_v4 }

// kernel: resnet_forward.25
= control target key start
LH: loop header
LB: loop body
LE: loop exit
PB: predicated region body
PF: predicated region fallthrough
CT: control target
= control target key end

     0   :  { %s758_s15 = smov 0   ;;  %s760_s16 = smov 0   ;;  %s851_s0 = inlined_call_operand.vmem [shape: bf16[2,128], index: 0, kind: input, shape index: {}]   ;;  %s852_s1 = inlined_call_operand.vmem [shape: bf16[128,256], index: 1, kind: input, shape index: {}]   ;;  %s853_s2 = inlined_call_operand.vmem [shape: f32[1,256], index: 2, kind: input, shape index: {}]   ;;  %s854_s3 = inlined_call_operand.vmem [shape: f32[1,256], index: 3, kind: input, shape index: {}]   ;;  %s855_s4 = inlined_call_operand.vmem [shape: bf16[2,256], index: 4, kind: output, shape index: {}]  }
   0x1   :  { %s762_s17 = smov 0   ;;  %s764_s18 = smov 0  }
   0x2   :  { %s766_s19 = smov 0  }
   0x3 LB: > { %s23_s20 = sadd.s32 1, %s725_s18  ;;  %p66_p1 = scmp.ne.s32.totalorder %s717_s16, %s713_s15  ;;  %s729_s19 = sphi %s766_s19, %s14_s19   ;;  %s725_s18 = sphi %s764_s18, %s859_s18   ;;  %s721_s17 = sphi %s762_s17, %s858_s17   ;;  %s717_s16 = sphi %s760_s16, %s857_s16   ;;  %s713_s15 = sphi %s758_s15, %s856_s15  }
   0x4   : > { %p24_p0 = scmp.ge.s32.totalorder %s23_s20, 2  ;;  %p67_p2 = scmp.eq.s32.totalorder %s729_s19, 0 }
   0x5   : > { %s59_s22 = sadd.s32 1, %s717_s16  ;;  %p595_p5 = scmp.ge.s32.totalorder %s729_s19, 2 }
   0x6   : > { %s861_s20 = smov (%p24_p0, %s23_s20), 0  ;;  %p68_p3 = por %p67_p2, %p66_p1 }
   0x7   : > { %s56_s21 = ssub.s32 %s725_s18, %s861_s20  ;;  %178 = sbr.rel (%p595_p5) target bundleno = 28 (0x1c), region = 20 }
   0x8   : > { %p57_p4 = scmp.eq.s32.totalorder %s56_s21, 0 }
   0xa   : > { %s793_s23 = scalar_select %p57_p4, %s717_s16, %s59_s22  }
   0xe   : > { %181 = sbr.rel (!%p68_p3) target bundleno = 28 (0x1c), region = 24  ;;  %s183_s24 = sand.u32 (%p68_p3), 1, %s717_s16  }
   0xf   : > { %s597_s25 = sshll.u32 (%p68_p3), %s725_s18, 2  ;;  %s596_s26 = sshll.u32 (%p68_p3), %s183_s24, 6 }
  0x10   : > { %s801_s29 = scalar_lea.vmem (%p68_p3), %s852_s1, %s597_s25  ;;  %s185_s30 = scalar_lea.vmem (%p68_p3), [#allocation2], %s596_s26 }
  0x11   : > { %v203_v0 = vld [vmem:[%s801_s29] sm:$0xf] (%p68_p3)  ;;  %v205_v1 = vld [vmem:[%s801_s29 + $0x8] sm:$0xf] (%p68_p3)  ;;  %v207_v2 = vld [vmem:[%s801_s29 + $0x10] sm:$0xf] (%p68_p3) }
  0x12   : > { %204 = vst [vmem:[%s185_s30] sm:$0xf] (%p68_p3), %v203_v0  ;;  %206 = vst [vmem:[%s185_s30 + $0x4] sm:$0xf] (%p68_p3), %v205_v1  ;;  %v209_v3 = vld [vmem:[%s801_s29 + $0x18] sm:$0xf] (%p68_p3) }
  0x13   : > { %v211_v4 = vld [vmem:[%s801_s29 + $0x20] sm:$0xf] (%p68_p3)  ;;  %208 = vst [vmem:[%s185_s30 + $0x8] sm:$0xf] (%p68_p3), %v207_v2  ;;  %210 = vst [vmem:[%s185_s30 + $0xc] sm:$0xf] (%p68_p3), %v209_v3 }
  0x14   : > { %212 = vst [vmem:[%s185_s30 + $0x10] sm:$0xf] (%p68_p3), %v211_v4  ;;  %v213_v5 = vld [vmem:[%s801_s29 + $0x28] sm:$0xf] (%p68_p3)  ;;  %v215_v6 = vld [vmem:[%s801_s29 + $0x30] sm:$0xf] (%p68_p3) }
  0x15   : > { %v217_v7 = vld [vmem:[%s801_s29 + $0x38] sm:$0xf]  ;;  %214 = vst [vmem:[%s185_s30 + $0x14] sm:$0xf] %v213_v5  ;;  %216 = vst [vmem:[%s185_s30 + $0x18] sm:$0xf] %v215_v6 }
  0x16   : > { %218 = vst [vmem:[%s185_s30 + $0x1c] sm:$0xf] %v217_v7  ;;  %v219_v8 = vld [vmem:[%s801_s29 + $0x40] sm:$0xf]  ;;  %v221_v9 = vld [vmem:[%s801_s29 + $0x48] sm:$0xf] }
  0x17   : > { %v223_v10 = vld [vmem:[%s801_s29 + $0x50] sm:$0xf]  ;;  %220 = vst [vmem:[%s185_s30 + $0x20] sm:$0xf] %v219_v8  ;;  %222 = vst [vmem:[%s185_s30 + $0x24] sm:$0xf] %v221_v9 }
  0x18   : > { %224 = vst [vmem:[%s185_s30 + $0x28] sm:$0xf] %v223_v10  ;;  %v225_v11 = vld [vmem:[%s801_s29 + $0x58] sm:$0xf]  ;;  %v227_v12 = vld [vmem:[%s801_s29 + $0x60] sm:$0xf] }
  0x19   : > { %v229_v13 = vld [vmem:[%s801_s29 + $0x68] sm:$0xf]  ;;  %226 = vst [vmem:[%s185_s30 + $0x2c] sm:$0xf] %v225_v11  ;;  %228 = vst [vmem:[%s185_s30 + $0x30] sm:$0xf] %v227_v12 }
  0x1a   : > { %230 = vst [vmem:[%s185_s30 + $0x34] sm:$0xf] %v229_v13  ;;  %v231_v14 = vld [vmem:[%s801_s29 + $0x70] sm:$0xf]  ;;  %v233_v15 = vld [vmem:[%s801_s29 + $0x78] sm:$0xf] }
  0x1b   : > { %232 = vst [vmem:[%s185_s30 + $0x38] sm:$0xf] %v231_v14  ;;  %234 = vst [vmem:[%s185_s30 + $0x3c] sm:$0xf] %v233_v15 }
  0x1c PF: > { %p598_p6 = scmp.ge.s32.totalorder %s729_s19, 1  ;;  %p300_p7 = scmp.lt.s32.totalorder %s729_s19, 3 }
  0x1e   : > { %p301_p8 = pnand %p598_p6, %p300_p7 }
  0x1f   : > { %s307_s5 = sand.u32 (!%p301_p8), 1, %s713_s15   ;;  %v731_v16 = vmov (!%p301_p8), 0.0   ;;  %vm732_vm0 = vmmov (!%p301_p8), 0   ;;  %v360_v25 = vld [vmem:[%s851_s0] sm:$0x1] (!%p301_p8)  ;;  %p346_p9 = scmp.lt.s32.totalorder (!%p301_p8), %s721_s17, 1 }
  0x20   : > { %304 = sbr.rel (%p301_p8) target bundleno = 285 (0x11d), region = 73  ;;  %621 = vmatprep.subr.bf16.mxu0 (!%p301_p8), %v731_v16  ;;  %s599_s6 = sshll.u32 (!%p301_p8), %s307_s5, 6  ;;  %637 = vmatprep.mubr.msk.bf16.mxu0 (!%p301_p8), %vm732_vm0, %v731_v16 }
  0x21   : > { %s309_s7 = scalar_lea.vmem (!%p301_p8), [#allocation2], %s599_s6 }
  0x22   : > { %v683_v17 = vld [vmem:[%s309_s7] sm:$0xff] (!%p301_p8)   ;;  %v684_v18 = vld [vmem:[%s309_s7 + $0x8] sm:$0xff] (!%p301_p8)   ;;  %v685_v19 = vld [vmem:[%s309_s7 + $0x10] sm:$0xff] (!%p301_p8)  }
  0x23   : > { %622 = vmatpush3.bf16.msra.mxu0 (!%p301_p8), %v683_v17  ;;  %v686_v20 = vld [vmem:[%s309_s7 + $0x18] sm:$0xff] (!%p301_p8)   ;;  %v687_v21 = vld [vmem:[%s309_s7 + $0x20] sm:$0xff] (!%p301_p8)   ;;  %v688_v22 = vld [vmem:[%s309_s7 + $0x28] sm:$0xff] (!%p301_p8)  }
  0x24   : > { %623 = vmatprep.subr.bf16.mxu0 (!%p301_p8), %v731_v16  ;;  %v689_v23 = vld [vmem:[%s309_s7 + $0x30] sm:$0xff] (!%p301_p8)   ;;  %v690_v24 = vld [vmem:[%s309_s7 + $0x38] sm:$0xff] (!%p301_p8)  }
  0x27   : > { %624 = vmatpush3.bf16.msra.mxu0 %v684_v18  ;;  %s863_s17 = smov (!%p346_p9, %s721_s17), 1 }
  0x28   : > { %625 = vmatprep.subr.bf16.mxu0 %v731_v16  ;;  %s348_s12 = scalar_lea.vmem %s853_s2, %s863_s17  ;;  %s351_s15 = scalar_lea.vmem %s854_s3, %s863_s17 }
  0x29   : > { %v608_v26 = vld [vmem:[%s348_s12] ss:$0 sm:$0xff]  ;;  %s358_s24 = scalar_lea.vmem %s855_s4, %s863_s17 }
  0x2a   : > { %v609_v28 = vld [vmem:[%s351_s15] ss:$0 sm:$0xff] }
  0x2b   : > { %626 = vmatpush3.bf16.msra.mxu0 %v685_v19 }
  0x2c   : > { %627 = vmatprep.subr.bf16.mxu0 %v731_v16 }
  0x2f   : > { %628 = vmatpush3.bf16.msra.mxu0 %v686_v20 }
  0x30   : > { %629 = vmatprep.subr.bf16.mxu0 %v731_v16 }
  0x33   : > { %630 = vmatpush3.bf16.msra.mxu0 %v687_v21 }
  0x34   : > { %631 = vmatprep.subr.bf16.mxu0 %v731_v16 }
  0x37   : > { %632 = vmatpush3.bf16.msra.mxu0 %v688_v22 }
  0x38   : > { %633 = vmatprep.subr.bf16.mxu0 %v731_v16 }
  0x3b   : > { %634 = vmatpush3.bf16.msra.mxu0 %v689_v23 }
  0x3c   : > { %635 = vmatprep.subr.bf16.mxu0 %v731_v16 }
  0x3f   : > { %636 = vmatpush3.bf16.msra.mxu0 %v690_v24 }
  0x42   : > { %638 = vmatmul.mubr.bf16.vlgmr.msra.gmra.mrb[0].mxu0 %v360_v25 }
 0x115   : > { %v459_v27 = vpop.f32.mrb[0].mxu0 }
 0x116   : > { %v472_v29 = vmul.f32 %v608_v26, %v459_v27  ;;  %v639_v30 = vpop.f32.mrb[1].mxu0 }
 0x117   : > { %v462_v31 = vpop.f32.mrb[2].mxu0 }
 0x118   : > { %v480_v32 = vadd.f32 %v609_v28, %v472_v29  ;;  %v640_v33 = vpop.f32.mrb[3].mxu0 }
 0x11a   : > { %v481_v34 = vpack.c.bf16 %v480_v32, %v480_v32 }
 0x11c   : > { %482 = vst [vmem:[%s358_s24] sm:$0x1] %v481_v34 }
 0x11d PF: > { %s14_s19 = sadd.s32 1, %s729_s19   ;;  %s856_s15 = smov %s717_s16 }
 0x11e   : > { %p11_p10 = scmp.ge.s32.totalorder %s14_s19, 4   ;;  %s857_s16 = smov %s793_s23 }
 0x11f   : > { %s858_s17 = smov %s725_s18  ;;  %s859_s18 = smov %s861_s20 }
 0x120   :  { %13 = sbr.rel (!%p11_p10) target bundleno = 3 (0x3), region = 121 }

// kernel: resnet_forward.29
= control target key start
LH: loop header
LB: loop body
LE: loop exit
PB: predicated region body
PF: predicated region fallthrough
CT: control target
= control target key end

     0   :  { %s2268_s18 = smov 0   ;;  %s2270_s19 = smov 0   ;;  %s2738_s0 = inlined_call_operand.vmem [shape: bf16[2,1,1,9,256], index: 0, kind: input, shape index: {}, may-alias: {0,5}]   ;;  %s2739_s1 = inlined_call_operand.vmem [shape: bf16[2,1152], index: 1, kind: input, shape index: {}]   ;;  %s2740_s2 = inlined_call_operand.vmem [shape: bf16[1152,256], index: 2, kind: input, shape index: {}]   ;;  %s2741_s3 = inlined_call_operand.vmem [shape: f32[1,256], index: 3, kind: input, shape index: {}]   ;;  %s2742_s4 = inlined_call_operand.vmem [shape: f32[1,256], index: 4, kind: input, shape index: {}]   ;;  %s2743_s5 = inlined_call_operand.vmem [shape: bf16[2,1,1,9,256], index: 5, kind: output, shape index: {}, may-alias: {0,5}]  }
   0x1   :  { %s2272_s0 = smov 0   ;;  %s2274_s20 = smov 0  }
   0x2   :  { %s2276_s21 = smov 0  }
   0x3 LB: > { %s25_s22 = sadd.s32 1, %s2229_s20  ;;  %s1875_s23 = sadd.s32 4294967295, %s2233_s21   ;;  %s2233_s21 = sphi %s2276_s21, %s16_s21   ;;  %s2229_s20 = sphi %s2274_s20, %s2748_s20   ;;  %s2225_s0 = sphi %s2272_s0, %s2747_s0   ;;  %s2221_s19 = sphi %s2270_s19, %s2746_s19   ;;  %s2217_s18 = sphi %s2268_s18, %s2745_s18  }
   0x4   : > { %p26_p0 = scmp.ge.s32.totalorder %s25_s22, 2  ;;  %p68_p1 = scmp.ne.s32.totalorder %s2221_s19, %s2217_s18 }
   0x5   : > { %p69_p2 = scmp.eq.s32.totalorder %s2233_s21, 0  ;;  %p152_p4 = scmp.eq.s32.totalorder %s1875_s23, 1 }
   0x6   : > { %s2750_s22 = smov (%p26_p0, %s25_s22), 0  ;;  %s61_s25 = sadd.s32 1, %s2221_s19 }
   0x7   : > { %p70_p3 = por %p69_p2, %p68_p1  ;;  %s58_s24 = ssub.s32 %s2229_s20, %s2750_s22 }
   0x8   : > { %p59_p5 = scmp.eq.s32.totalorder %s58_s24, 0  ;;  %p2303_p6 = por %p152_p4, %p68_p1 }
   0x9   : > { %p1879_p7 = scmp.ge.s32.totalorder %s2233_s21, 2 }
   0xa   : > { %s2308_s27 = scalar_select %p59_p5, %s2221_s19, %s61_s25  }
   0xb   : > { %181 = sbr.rel (%p1879_p7) target bundleno = 118 (0x76), region = 20 }
  0x12   : > { %184 = sbr.rel (!%p70_p3) target bundleno = 118 (0x76), region = 24  ;;  %s186_s28 = sand.u32 (%p70_p3), 1, %s2221_s19  }
  0x13   : > { %s1880_s29 = sshll.u32 (%p70_p3), %s2229_s20, 2  ;;  %s2077_s30 = smul.u32 (%p70_p3), 576, %s186_s28 }
  0x14   : > { %s2316_s8 = scalar_lea.vmem (%p70_p3), %s2740_s2, %s1880_s29 }
  0x15   : > { %v206_v0 = vld [vmem:[%s2316_s8] sm:$0xf] (%p70_p3)  ;;  %v208_v1 = vld [vmem:[%s2316_s8 + $0x8] sm:$0xf] (%p70_p3)  ;;  %v210_v2 = vld [vmem:[%s2316_s8 + $0x10] sm:$0xf] (%p70_p3) }
  0x16   : > { %v212_v3 = vld [vmem:[%s2316_s8 + $0x18] sm:$0xf] (%p70_p3)  ;;  %v214_v4 = vld [vmem:[%s2316_s8 + $0x20] sm:$0xf] (%p70_p3)  ;;  %s2323_s9 = scalar_lea.vmem (%p70_p3), [#allocation2], %s2077_s30 }
  0x17   : > { %207 = vst [vmem:[%s2323_s9] sm:$0xf] (%p70_p3), %v206_v0  ;;  %209 = vst [vmem:[%s2323_s9 + $0x4] sm:$0xf] (%p70_p3), %v208_v1  ;;  %v216_v5 = vld [vmem:[%s2316_s8 + $0x28] sm:$0xf] (%p70_p3) }
  0x18   : > { %211 = vst [vmem:[%s2323_s9 + $0x8] sm:$0xf] (%p70_p3), %v210_v2  ;;  %213 = vst [vmem:[%s2323_s9 + $0xc] sm:$0xf] (%p70_p3), %v212_v3  ;;  %v218_v6 = vld [vmem:[%s2316_s8 + $0x30] sm:$0xf] (%p70_p3) }
  0x19   : > { %215 = vst [vmem:[%s2323_s9 + $0x10] sm:$0xf] %v214_v4  ;;  %v220_v7 = vld [vmem:[%s2316_s8 + $0x38] sm:$0xf]  ;;  %217 = vst [vmem:[%s2323_s9 + $0x14] sm:$0xf] %v216_v5 }
  0x1a   : > { %219 = vst [vmem:[%s2323_s9 + $0x18] sm:$0xf] %v218_v6  ;;  %221 = vst [vmem:[%s2323_s9 + $0x1c] sm:$0xf] %v220_v7  ;;  %v222_v8 = vld [vmem:[%s2316_s8 + $0x40] sm:$0xf] }
  0x1b   : > { %v224_v9 = vld [vmem:[%s2316_s8 + $0x48] sm:$0xf]  ;;  %v226_v10 = vld [vmem:[%s2316_s8 + $0x50] sm:$0xf]  ;;  %223 = vst [vmem:[%s2323_s9 + $0x20] sm:$0xf] %v222_v8 }
  0x1c   : > { %225 = vst [vmem:[%s2323_s9 + $0x24] sm:$0xf] %v224_v9  ;;  %227 = vst [vmem:[%s2323_s9 + $0x28] sm:$0xf] %v226_v10  ;;  %v228_v11 = vld [vmem:[%s2316_s8 + $0x58] sm:$0xf] }
  0x1d   : > { %v230_v12 = vld [vmem:[%s2316_s8 + $0x60] sm:$0xf]  ;;  %v232_v13 = vld [vmem:[%s2316_s8 + $0x68] sm:$0xf]  ;;  %229 = vst [vmem:[%s2323_s9 + $0x2c] sm:$0xf] %v228_v11 }
  0x1e   : > { %231 = vst [vmem:[%s2323_s9 + $0x30] sm:$0xf] %v230_v12  ;;  %233 = vst [vmem:[%s2323_s9 + $0x34] sm:$0xf] %v232_v13  ;;  %v234_v14 = vld [vmem:[%s2316_s8 + $0x70] sm:$0xf] }
  0x1f   : > { %v236_v15 = vld [vmem:[%s2316_s8 + $0x78] sm:$0xf]  ;;  %v238_v16 = vld [vmem:[%s2316_s8 + $0x80] sm:$0xf]  ;;  %235 = vst [vmem:[%s2323_s9 + $0x38] sm:$0xf] %v234_v14 }
  0x20   : > { %237 = vst [vmem:[%s2323_s9 + $0x3c] sm:$0xf] %v236_v15  ;;  %239 = vst [vmem:[%s2323_s9 + $0x40] sm:$0xf] %v238_v16  ;;  %v240_v17 = vld [vmem:[%s2316_s8 + $0x88] sm:$0xf] }
  0x21   : > { %v242_v18 = vld [vmem:[%s2316_s8 + $0x90] sm:$0xf]  ;;  %v244_v19 = vld [vmem:[%s2316_s8 + $0x98] sm:$0xf]  ;;  %241 = vst [vmem:[%s2323_s9 + $0x44] sm:$0xf] %v240_v17 }
  0x22   : > { %243 = vst [vmem:[%s2323_s9 + $0x48] sm:$0xf] %v242_v18  ;;  %245 = vst [vmem:[%s2323_s9 + $0x4c] sm:$0xf] %v244_v19  ;;  %v246_v20 = vld [vmem:[%s2316_s8 + $0xa0] sm:$0xf] }
  0x23   : > { %v248_v21 = vld [vmem:[%s2316_s8 + $0xa8] sm:$0xf]  ;;  %v250_v22 = vld [vmem:[%s2316_s8 + $0xb0] sm:$0xf]  ;;  %247 = vst [vmem:[%s2323_s9 + $0x50] sm:$0xf] %v246_v20 }
  0x24   : > { %249 = vst [vmem:[%s2323_s9 + $0x54] sm:$0xf] %v248_v21  ;;  %251 = vst [vmem:[%s2323_s9 + $0x58] sm:$0xf] %v250_v22  ;;  %v252_v23 = vld [vmem:[%s2316_s8 + $0xb8] sm:$0xf] }
  0x25   : > { %v254_v24 = vld [vmem:[%s2316_s8 + $0xc0] sm:$0xf]  ;;  %v256_v25 = vld [vmem:[%s2316_s8 + $0xc8] sm:$0xf]  ;;  %253 = vst [vmem:[%s2323_s9 + $0x5c] sm:$0xf] %v252_v23 }
  0x26   : > { %255 = vst [vmem:[%s2323_s9 + $0x60] sm:$0xf] %v254_v24  ;;  %257 = vst [vmem:[%s2323_s9 + $0x64] sm:$0xf] %v256_v25  ;;  %v258_v26 = vld [vmem:[%s2316_s8 + $0xd0] sm:$0xf] }
  0x27   : > { %v260_v27 = vld [vmem:[%s2316_s8 + $0xd8] sm:$0xf]  ;;  %v262_v28 = vld [vmem:[%s2316_s8 + $0xe0] sm:$0xf]  ;;  %259 = vst [vmem:[%s2323_s9 + $0x68] sm:$0xf] %v258_v26 }
  0x28   : > { %261 = vst [vmem:[%s2323_s9 + $0x6c] sm:$0xf] %v260_v27  ;;  %263 = vst [vmem:[%s2323_s9 + $0x70] sm:$0xf] %v262_v28  ;;  %v264_v29 = vld [vmem:[%s2316_s8 + $0xe8] sm:$0xf] }
  0x29   : > { %v266_v30 = vld [vmem:[%s2316_s8 + $0xf0] sm:$0xf]  ;;  %v268_v31 = vld [vmem:[%s2316_s8 + $0xf8] sm:$0xf]  ;;  %265 = vst [vmem:[%s2323_s9 + $0x74] sm:$0xf] %v264_v29 }
  0x2a   : > { %267 = vst [vmem:[%s2323_s9 + $0x78] sm:$0xf] %v266_v30  ;;  %269 = vst [vmem:[%s2323_s9 + $0x7c] sm:$0xf] %v268_v31  ;;  %v270_v32 = vld [vmem:[%s2316_s8 + $0x100] sm:$0xf] }
  0x2b   : > { %v272_v33 = vld [vmem:[%s2316_s8 + $0x108] sm:$0xf]  ;;  %v274_v34 = vld [vmem:[%s2316_s8 + $0x110] sm:$0xf]  ;;  %271 = vst [vmem:[%s2323_s9 + $0x80] sm:$0xf] %v270_v32 }
  0x2c   : > { %273 = vst [vmem:[%s2323_s9 + $0x84] sm:$0xf] %v272_v33  ;;  %275 = vst [vmem:[%s2323_s9 + $0x88] sm:$0xf] %v274_v34  ;;  %v276_v35 = vld [vmem:[%s2316_s8 + $0x118] sm:$0xf] }
  0x2d   : > { %v278_v36 = vld [vmem:[%s2316_s8 + $0x120] sm:$0xf]  ;;  %v280_v37 = vld [vmem:[%s2316_s8 + $0x128] sm:$0xf]  ;;  %277 = vst [vmem:[%s2323_s9 + $0x8c] sm:$0xf] %v276_v35 }
  0x2e   : > { %279 = vst [vmem:[%s2323_s9 + $0x90] sm:$0xf] %v278_v36  ;;  %281 = vst [vmem:[%s2323_s9 + $0x94] sm:$0xf] %v280_v37  ;;  %v282_v38 = vld [vmem:[%s2316_s8 + $0x130] sm:$0xf] }
  0x2f   : > { %v284_v39 = vld [vmem:[%s2316_s8 + $0x138] sm:$0xf]  ;;  %v286_v40 = vld [vmem:[%s2316_s8 + $0x140] sm:$0xf]  ;;  %283 = vst [vmem:[%s2323_s9 + $0x98] sm:$0xf] %v282_v38 }
  0x30   : > { %285 = vst [vmem:[%s2323_s9 + $0x9c] sm:$0xf] %v284_v39  ;;  %287 = vst [vmem:[%s2323_s9 + $0xa0] sm:$0xf] %v286_v40  ;;  %v288_v41 = vld [vmem:[%s2316_s8 + $0x148] sm:$0xf] }
  0x31   : > { %v290_v42 = vld [vmem:[%s2316_s8 + $0x150] sm:$0xf]  ;;  %v292_v43 = vld [vmem:[%s2316_s8 + $0x158] sm:$0xf]  ;;  %289 = vst [vmem:[%s2323_s9 + $0xa4] sm:$0xf] %v288_v41 }
  0x32   : > { %291 = vst [vmem:[%s2323_s9 + $0xa8] sm:$0xf] %v290_v42  ;;  %293 = vst [vmem:[%s2323_s9 + $0xac] sm:$0xf] %v292_v43  ;;  %v294_v44 = vld [vmem:[%s2316_s8 + $0x160] sm:$0xf] }
  0x33   : > { %v296_v45 = vld [vmem:[%s2316_s8 + $0x168] sm:$0xf]  ;;  %v298_v46 = vld [vmem:[%s2316_s8 + $0x170] sm:$0xf]  ;;  %295 = vst [vmem:[%s2323_s9 + $0xb0] sm:$0xf] %v294_v44 }
  0x34   : > { %297 = vst [vmem:[%s2323_s9 + $0xb4] sm:$0xf] %v296_v45  ;;  %299 = vst [vmem:[%s2323_s9 + $0xb8] sm:$0xf] %v298_v46  ;;  %v300_v47 = vld [vmem:[%s2316_s8 + $0x178] sm:$0xf] }
  0x35   : > { %v302_v48 = vld [vmem:[%s2316_s8 + $0x180] sm:$0xf]  ;;  %v304_v49 = vld [vmem:[%s2316_s8 + $0x188] sm:$0xf]  ;;  %301 = vst [vmem:[%s2323_s9 + $0xbc] sm:$0xf] %v300_v47 }
  0x36   : > { %303 = vst [vmem:[%s2323_s9 + $0xc0] sm:$0xf] %v302_v48  ;;  %305 = vst [vmem:[%s2323_s9 + $0xc4] sm:$0xf] %v304_v49  ;;  %v306_v50 = vld [vmem:[%s2316_s8 + $0x190] sm:$0xf] }
  0x37   : > { %v308_v51 = vld [vmem:[%s2316_s8 + $0x198] sm:$0xf]  ;;  %v310_v52 = vld [vmem:[%s2316_s8 + $0x1a0] sm:$0xf]  ;;  %307 = vst [vmem:[%s2323_s9 + $0xc8] sm:$0xf] %v306_v50 }
  0x38   : > { %309 = vst [vmem:[%s2323_s9 + $0xcc] sm:$0xf] %v308_v51  ;;  %311 = vst [vmem:[%s2323_s9 + $0xd0] sm:$0xf] %v310_v52  ;;  %v312_v53 = vld [vmem:[%s2316_s8 + $0x1a8] sm:$0xf] }
  0x39   : > { %v314_v54 = vld [vmem:[%s2316_s8 + $0x1b0] sm:$0xf]  ;;  %v316_v55 = vld [vmem:[%s2316_s8 + $0x1b8] sm:$0xf]  ;;  %313 = vst [vmem:[%s2323_s9 + $0xd4] sm:$0xf] %v312_v53 }
  0x3a   : > { %315 = vst [vmem:[%s2323_s9 + $0xd8] sm:$0xf] %v314_v54  ;;  %317 = vst [vmem:[%s2323_s9 + $0xdc] sm:$0xf] %v316_v55  ;;  %v318_v56 = vld [vmem:[%s2316_s8 + $0x1c0] sm:$0xf] }
  0x3b   : > { %v320_v57 = vld [vmem:[%s2316_s8 + $0x1c8] sm:$0xf]  ;;  %v322_v58 = vld [vmem:[%s2316_s8 + $0x1d0] sm:$0xf]  ;;  %319 = vst [vmem:[%s2323_s9 + $0xe0] sm:$0xf] %v318_v56 }
  0x3c   : > { %321 = vst [vmem:[%s2323_s9 + $0xe4] sm:$0xf] %v320_v57  ;;  %323 = vst [vmem:[%s2323_s9 + $0xe8] sm:$0xf] %v322_v58  ;;  %v324_v59 = vld [vmem:[%s2316_s8 + $0x1d8] sm:$0xf] }
  0x3d   : > { %v326_v60 = vld [vmem:[%s2316_s8 + $0x1e0] sm:$0xf]  ;;  %v328_v61 = vld [vmem:[%s2316_s8 + $0x1e8] sm:$0xf]  ;;  %325 = vst [vmem:[%s2323_s9 + $0xec] sm:$0xf] %v324_v59 }
  0x3e   : > { %327 = vst [vmem:[%s2323_s9 + $0xf0] sm:$0xf] %v326_v60  ;;  %329 = vst [vmem:[%s2323_s9 + $0xf4] sm:$0xf] %v328_v61  ;;  %v330_v62 = vld [vmem:[%s2316_s8 + $0x1f0] sm:$0xf] }
  0x3f   : > { %v332_v63 = vld [vmem:[%s2316_s8 + $0x1f8] sm:$0xf]  ;;  %v334_v0 = vld [vmem:[%s2316_s8 + $0x200] sm:$0xf]  ;;  %331 = vst [vmem:[%s2323_s9 + $0xf8] sm:$0xf] %v330_v62 }
  0x40   : > { %333 = vst [vmem:[%s2323_s9 + $0xfc] sm:$0xf] %v332_v63  ;;  %335 = vst [vmem:[%s2323_s9 + $0x100] sm:$0xf] %v334_v0  ;;  %v336_v1 = vld [vmem:[%s2316_s8 + $0x208] sm:$0xf] }
  0x41   : > { %v338_v2 = vld [vmem:[%s2316_s8 + $0x210] sm:$0xf]  ;;  %v340_v3 = vld [vmem:[%s2316_s8 + $0x218] sm:$0xf]  ;;  %337 = vst [vmem:[%s2323_s9 + $0x104] sm:$0xf] %v336_v1 }
  0x42   : > { %339 = vst [vmem:[%s2323_s9 + $0x108] sm:$0xf] %v338_v2  ;;  %341 = vst [vmem:[%s2323_s9 + $0x10c] sm:$0xf] %v340_v3  ;;  %v342_v4 = vld [vmem:[%s2316_s8 + $0x220] sm:$0xf] }
  0x43   : > { %v344_v5 = vld [vmem:[%s2316_s8 + $0x228] sm:$0xf]  ;;  %v346_v6 = vld [vmem:[%s2316_s8 + $0x230] sm:$0xf]  ;;  %343 = vst [vmem:[%s2323_s9 + $0x110] sm:$0xf] %v342_v4 }
  0x44   : > { %345 = vst [vmem:[%s2323_s9 + $0x114] sm:$0xf] %v344_v5  ;;  %347 = vst [vmem:[%s2323_s9 + $0x118] sm:$0xf] %v346_v6  ;;  %v348_v7 = vld [vmem:[%s2316_s8 + $0x238] sm:$0xf] }
  0x45   : > { %v350_v8 = vld [vmem:[%s2316_s8 + $0x240] sm:$0xf]  ;;  %v352_v9 = vld [vmem:[%s2316_s8 + $0x248] sm:$0xf]  ;;  %349 = vst [vmem:[%s2323_s9 + $0x11c] sm:$0xf] %v348_v7 }
  0x46   : > { %351 = vst [vmem:[%s2323_s9 + $0x120] sm:$0xf] %v350_v8  ;;  %353 = vst [vmem:[%s2323_s9 + $0x124] sm:$0xf] %v352_v9  ;;  %v354_v10 = vld [vmem:[%s2316_s8 + $0x250] sm:$0xf] }
  0x47   : > { %v356_v11 = vld [vmem:[%s2316_s8 + $0x258] sm:$0xf]  ;;  %v358_v12 = vld [vmem:[%s2316_s8 + $0x260] sm:$0xf]  ;;  %355 = vst [vmem:[%s2323_s9 + $0x128] sm:$0xf] %v354_v10 }
  0x48   : > { %357 = vst [vmem:[%s2323_s9 + $0x12c] sm:$0xf] %v356_v11  ;;  %359 = vst [vmem:[%s2323_s9 + $0x130] sm:$0xf] %v358_v12  ;;  %v360_v13 = vld [vmem:[%s2316_s8 + $0x268] sm:$0xf] }
  0x49   : > { %v362_v14 = vld [vmem:[%s2316_s8 + $0x270] sm:$0xf]  ;;  %v364_v15 = vld [vmem:[%s2316_s8 + $0x278] sm:$0xf]  ;;  %361 = vst [vmem:[%s2323_s9 + $0x134] sm:$0xf] %v360_v13 }
  0x4a   : > { %363 = vst [vmem:[%s2323_s9 + $0x138] sm:$0xf] %v362_v14  ;;  %365 = vst [vmem:[%s2323_s9 + $0x13c] sm:$0xf] %v364_v15  ;;  %v366_v16 = vld [vmem:[%s2316_s8 + $0x280] sm:$0xf] }
  0x4b   : > { %v368_v17 = vld [vmem:[%s2316_s8 + $0x288] sm:$0xf]  ;;  %v370_v18 = vld [vmem:[%s2316_s8 + $0x290] sm:$0xf]  ;;  %367 = vst [vmem:[%s2323_s9 + $0x140] sm:$0xf] %v366_v16 }
  0x4c   : > { %369 = vst [vmem:[%s2323_s9 + $0x144] sm:$0xf] %v368_v17  ;;  %371 = vst [vmem:[%s2323_s9 + $0x148] sm:$0xf] %v370_v18  ;;  %v372_v19 = vld [vmem:[%s2316_s8 + $0x298] sm:$0xf] }
  0x4d   : > { %v374_v20 = vld [vmem:[%s2316_s8 + $0x2a0] sm:$0xf]  ;;  %v376_v21 = vld [vmem:[%s2316_s8 + $0x2a8] sm:$0xf]  ;;  %373 = vst [vmem:[%s2323_s9 + $0x14c] sm:$0xf] %v372_v19 }
  0x4e   : > { %375 = vst [vmem:[%s2323_s9 + $0x150] sm:$0xf] %v374_v20  ;;  %377 = vst [vmem:[%s2323_s9 + $0x154] sm:$0xf] %v376_v21  ;;  %v378_v22 = vld [vmem:[%s2316_s8 + $0x2b0] sm:$0xf] }
  0x4f   : > { %v380_v23 = vld [vmem:[%s2316_s8 + $0x2b8] sm:$0xf]  ;;  %v382_v24 = vld [vmem:[%s2316_s8 + $0x2c0] sm:$0xf]  ;;  %379 = vst [vmem:[%s2323_s9 + $0x158] sm:$0xf] %v378_v22 }
  0x50   : > { %381 = vst [vmem:[%s2323_s9 + $0x15c] sm:$0xf] %v380_v23  ;;  %383 = vst [vmem:[%s2323_s9 + $0x160] sm:$0xf] %v382_v24  ;;  %v384_v25 = vld [vmem:[%s2316_s8 + $0x2c8] sm:$0xf] }
  0x51   : > { %v386_v26 = vld [vmem:[%s2316_s8 + $0x2d0] sm:$0xf]  ;;  %v388_v27 = vld [vmem:[%s2316_s8 + $0x2d8] sm:$0xf]  ;;  %385 = vst [vmem:[%s2323_s9 + $0x164] sm:$0xf] %v384_v25 }
  0x52   : > { %387 = vst [vmem:[%s2323_s9 + $0x168] sm:$0xf] %v386_v26  ;;  %389 = vst [vmem:[%s2323_s9 + $0x16c] sm:$0xf] %v388_v27  ;;  %v390_v28 = vld [vmem:[%s2316_s8 + $0x2e0] sm:$0xf] }
  0x53   : > { %v392_v29 = vld [vmem:[%s2316_s8 + $0x2e8] sm:$0xf]  ;;  %v394_v30 = vld [vmem:[%s2316_s8 + $0x2f0] sm:$0xf]  ;;  %391 = vst [vmem:[%s2323_s9 + $0x170] sm:$0xf] %v390_v28 }
  0x54   : > { %393 = vst [vmem:[%s2323_s9 + $0x174] sm:$0xf] %v392_v29  ;;  %395 = vst [vmem:[%s2323_s9 + $0x178] sm:$0xf] %v394_v30  ;;  %v396_v31 = vld [vmem:[%s2316_s8 + $0x2f8] sm:$0xf] }
  0x55   : > { %v398_v32 = vld [vmem:[%s2316_s8 + $0x300] sm:$0xf]  ;;  %v400_v33 = vld [vmem:[%s2316_s8 + $0x308] sm:$0xf]  ;;  %397 = vst [vmem:[%s2323_s9 + $0x17c] sm:$0xf] %v396_v31 }
  0x56   : > { %399 = vst [vmem:[%s2323_s9 + $0x180] sm:$0xf] %v398_v32  ;;  %401 = vst [vmem:[%s2323_s9 + $0x184] sm:$0xf] %v400_v33  ;;  %v402_v34 = vld [vmem:[%s2316_s8 + $0x310] sm:$0xf] }
  0x57   : > { %v404_v35 = vld [vmem:[%s2316_s8 + $0x318] sm:$0xf]  ;;  %v406_v36 = vld [vmem:[%s2316_s8 + $0x320] sm:$0xf]  ;;  %403 = vst [vmem:[%s2323_s9 + $0x188] sm:$0xf] %v402_v34 }
  0x58   : > { %405 = vst [vmem:[%s2323_s9 + $0x18c] sm:$0xf] %v404_v35  ;;  %407 = vst [vmem:[%s2323_s9 + $0x190] sm:$0xf] %v406_v36  ;;  %v408_v37 = vld [vmem:[%s2316_s8 + $0x328] sm:$0xf] }
  0x59   : > { %v410_v38 = vld [vmem:[%s2316_s8 + $0x330] sm:$0xf]  ;;  %v412_v39 = vld [vmem:[%s2316_s8 + $0x338] sm:$0xf]  ;;  %409 = vst [vmem:[%s2323_s9 + $0x194] sm:$0xf] %v408_v37 }
  0x5a   : > { %411 = vst [vmem:[%s2323_s9 + $0x198] sm:$0xf] %v410_v38  ;;  %413 = vst [vmem:[%s2323_s9 + $0x19c] sm:$0xf] %v412_v39  ;;  %v414_v40 = vld [vmem:[%s2316_s8 + $0x340] sm:$0xf] }
  0x5b   : > { %v416_v41 = vld [vmem:[%s2316_s8 + $0x348] sm:$0xf]  ;;  %v418_v42 = vld [vmem:[%s2316_s8 + $0x350] sm:$0xf]  ;;  %415 = vst [vmem:[%s2323_s9 + $0x1a0] sm:$0xf] %v414_v40 }
  0x5c   : > { %417 = vst [vmem:[%s2323_s9 + $0x1a4] sm:$0xf] %v416_v41  ;;  %419 = vst [vmem:[%s2323_s9 + $0x1a8] sm:$0xf] %v418_v42  ;;  %v420_v43 = vld [vmem:[%s2316_s8 + $0x358] sm:$0xf] }
  0x5d   : > { %v422_v44 = vld [vmem:[%s2316_s8 + $0x360] sm:$0xf]  ;;  %v424_v45 = vld [vmem:[%s2316_s8 + $0x368] sm:$0xf]  ;;  %421 = vst [vmem:[%s2323_s9 + $0x1ac] sm:$0xf] %v420_v43 }
  0x5e   : > { %423 = vst [vmem:[%s2323_s9 + $0x1b0] sm:$0xf] %v422_v44  ;;  %425 = vst [vmem:[%s2323_s9 + $0x1b4] sm:$0xf] %v424_v45  ;;  %v426_v46 = vld [vmem:[%s2316_s8 + $0x370] sm:$0xf] }
  0x5f   : > { %v428_v47 = vld [vmem:[%s2316_s8 + $0x378] sm:$0xf]  ;;  %v430_v48 = vld [vmem:[%s2316_s8 + $0x380] sm:$0xf]  ;;  %427 = vst [vmem:[%s2323_s9 + $0x1b8] sm:$0xf] %v426_v46 }
  0x60   : > { %429 = vst [vmem:[%s2323_s9 + $0x1bc] sm:$0xf] %v428_v47  ;;  %431 = vst [vmem:[%s2323_s9 + $0x1c0] sm:$0xf] %v430_v48  ;;  %v432_v49 = vld [vmem:[%s2316_s8 + $0x388] sm:$0xf] }
  0x61   : > { %v434_v50 = vld [vmem:[%s2316_s8 + $0x390] sm:$0xf]  ;;  %v436_v51 = vld [vmem:[%s2316_s8 + $0x398] sm:$0xf]  ;;  %433 = vst [vmem:[%s2323_s9 + $0x1c4] sm:$0xf] %v432_v49 }
  0x62   : > { %435 = vst [vmem:[%s2323_s9 + $0x1c8] sm:$0xf] %v434_v50  ;;  %437 = vst [vmem:[%s2323_s9 + $0x1cc] sm:$0xf] %v436_v51  ;;  %v438_v52 = vld [vmem:[%s2316_s8 + $0x3a0] sm:$0xf] }
  0x63   : > { %v440_v53 = vld [vmem:[%s2316_s8 + $0x3a8] sm:$0xf]  ;;  %v442_v54 = vld [vmem:[%s2316_s8 + $0x3b0] sm:$0xf]  ;;  %439 = vst [vmem:[%s2323_s9 + $0x1d0] sm:$0xf] %v438_v52 }
  0x64   : > { %441 = vst [vmem:[%s2323_s9 + $0x1d4] sm:$0xf] %v440_v53  ;;  %443 = vst [vmem:[%s2323_s9 + $0x1d8] sm:$0xf] %v442_v54  ;;  %v444_v55 = vld [vmem:[%s2316_s8 + $0x3b8] sm:$0xf] }
  0x65   : > { %v446_v56 = vld [vmem:[%s2316_s8 + $0x3c0] sm:$0xf]  ;;  %v448_v57 = vld [vmem:[%s2316_s8 + $0x3c8] sm:$0xf]  ;;  %445 = vst [vmem:[%s2323_s9 + $0x1dc] sm:$0xf] %v444_v55 }
  0x66   : > { %447 = vst [vmem:[%s2323_s9 + $0x1e0] sm:$0xf] %v446_v56  ;;  %449 = vst [vmem:[%s2323_s9 + $0x1e4] sm:$0xf] %v448_v57  ;;  %v450_v58 = vld [vmem:[%s2316_s8 + $0x3d0] sm:$0xf] }
  0x67   : > { %v452_v59 = vld [vmem:[%s2316_s8 + $0x3d8] sm:$0xf]  ;;  %v454_v60 = vld [vmem:[%s2316_s8 + $0x3e0] sm:$0xf]  ;;  %451 = vst [vmem:[%s2323_s9 + $0x1e8] sm:$0xf] %v450_v58 }
  0x68   : > { %453 = vst [vmem:[%s2323_s9 + $0x1ec] sm:$0xf] %v452_v59  ;;  %455 = vst [vmem:[%s2323_s9 + $0x1f0] sm:$0xf] %v454_v60  ;;  %v456_v61 = vld [vmem:[%s2316_s8 + $0x3e8] sm:$0xf] }
  0x69   : > { %v458_v62 = vld [vmem:[%s2316_s8 + $0x3f0] sm:$0xf]  ;;  %v460_v63 = vld [vmem:[%s2316_s8 + $0x3f8] sm:$0xf]  ;;  %457 = vst [vmem:[%s2323_s9 + $0x1f4] sm:$0xf] %v456_v61 }
  0x6a   : > { %459 = vst [vmem:[%s2323_s9 + $0x1f8] sm:$0xf] %v458_v62  ;;  %461 = vst [vmem:[%s2323_s9 + $0x1fc] sm:$0xf] %v460_v63  ;;  %v462_v0 = vld [vmem:[%s2316_s8 + $0x400] sm:$0xf] }
  0x6b   : > { %v464_v1 = vld [vmem:[%s2316_s8 + $0x408] sm:$0xf]  ;;  %v466_v2 = vld [vmem:[%s2316_s8 + $0x410] sm:$0xf]  ;;  %463 = vst [vmem:[%s2323_s9 + $0x200] sm:$0xf] %v462_v0 }
  0x6c   : > { %465 = vst [vmem:[%s2323_s9 + $0x204] sm:$0xf] %v464_v1  ;;  %467 = vst [vmem:[%s2323_s9 + $0x208] sm:$0xf] %v466_v2  ;;  %v468_v3 = vld [vmem:[%s2316_s8 + $0x418] sm:$0xf] }
  0x6d   : > { %v470_v4 = vld [vmem:[%s2316_s8 + $0x420] sm:$0xf]  ;;  %v472_v5 = vld [vmem:[%s2316_s8 + $0x428] sm:$0xf]  ;;  %469 = vst [vmem:[%s2323_s9 + $0x20c] sm:$0xf] %v468_v3 }
  0x6e   : > { %471 = vst [vmem:[%s2323_s9 + $0x210] sm:$0xf] %v470_v4  ;;  %473 = vst [vmem:[%s2323_s9 + $0x214] sm:$0xf] %v472_v5  ;;  %v474_v6 = vld [vmem:[%s2316_s8 + $0x430] sm:$0xf] }
  0x6f   : > { %v476_v7 = vld [vmem:[%s2316_s8 + $0x438] sm:$0xf]  ;;  %v478_v8 = vld [vmem:[%s2316_s8 + $0x440] sm:$0xf]  ;;  %475 = vst [vmem:[%s2323_s9 + $0x218] sm:$0xf] %v474_v6 }
  0x70   : > { %477 = vst [vmem:[%s2323_s9 + $0x21c] sm:$0xf] %v476_v7  ;;  %479 = vst [vmem:[%s2323_s9 + $0x220] sm:$0xf] %v478_v8  ;;  %v480_v9 = vld [vmem:[%s2316_s8 + $0x448] sm:$0xf] }
  0x71   : > { %v482_v10 = vld [vmem:[%s2316_s8 + $0x450] sm:$0xf]  ;;  %v484_v11 = vld [vmem:[%s2316_s8 + $0x458] sm:$0xf]  ;;  %481 = vst [vmem:[%s2323_s9 + $0x224] sm:$0xf] %v480_v9 }
  0x72   : > { %483 = vst [vmem:[%s2323_s9 + $0x228] sm:$0xf] %v482_v10  ;;  %485 = vst [vmem:[%s2323_s9 + $0x22c] sm:$0xf] %v484_v11  ;;  %v486_v12 = vld [vmem:[%s2316_s8 + $0x460] sm:$0xf] }
  0x73   : > { %v488_v13 = vld [vmem:[%s2316_s8 + $0x468] sm:$0xf]  ;;  %v490_v14 = vld [vmem:[%s2316_s8 + $0x470] sm:$0xf]  ;;  %487 = vst [vmem:[%s2323_s9 + $0x230] sm:$0xf] %v486_v12 }
  0x74   : > { %489 = vst [vmem:[%s2323_s9 + $0x234] sm:$0xf] %v488_v13  ;;  %491 = vst [vmem:[%s2323_s9 + $0x238] sm:$0xf] %v490_v14  ;;  %v492_v15 = vld [vmem:[%s2316_s8 + $0x478] sm:$0xf] }
  0x75   : > { %493 = vst [vmem:[%s2323_s9 + $0x23c] sm:$0xf] %v492_v15 }
  0x76 PF: > { %p1881_p8 = scmp.ge.s32.totalorder %s2233_s21, 1  ;;  %p815_p9 = scmp.lt.s32.totalorder %s2233_s21, 3 }
  0x78   : > { %p816_p10 = pnand %p1881_p8, %p815_p9 }
  0x79   : > { %s822_s10 = sand.u32 (!%p816_p10), 1, %s2217_s18   ;;  %v1018_v16 = vlaneseq (!%p816_p10)  ;;  %v2235_v17 = vmov (!%p816_p10), 1966171168   ;;  %v866_v20 = vld [vmem:[%s2739_s1] sm:$0xff] (!%p816_p10)  ;;  %vm2237_vm0 = vmmov (!%p816_p10), 0   ;;  %p859_p11 = scmp.lt.s32.totalorder (!%p816_p10), %s2225_s0, 1 }
  0x7a   : > { %819 = sbr.rel (%p816_p10) target bundleno = 456 (0x1c8), region = 73  ;;  %v1016_v18 = vunpack.c.l.s4 (!%p816_p10), %v2235_v17  ;;  %v1014_v47 = vcombine.high (!%p816_p10), %v866_v20, %v866_v20  ;;  %s854_s6 = scalar_lea.vmem (!%p816_p10), [#allocation3], %s822_s10 }
  0x7b   : > { %s2078_s11 = smul.u32 (!%p816_p10), 576, %s822_s10  ;;  %v1019_v19 = vshrl.u32 (!%p816_p10), %v1018_v16, 7 }
  0x7c   : > { %v1017_v21 = vunpack.c.0.s8 (!%p816_p10), %v1016_v18 }
  0x7d   : > { %s2616_s14 = scalar_lea.vmem (!%p816_p10), [#allocation2], %s2078_s11 }
  0x7e   : > { %v2122_v22 = vld [vmem:[%s2616_s14 + $0x40] sm:$0xff] (!%p816_p10)   ;;  %v2620_v24 = vsub.s32 (!%p816_p10), %v1017_v21, %v1019_v19  ;;  %v2126_v28 = vld [vmem:[%s2616_s14 + $0x48] sm:$0xff] (!%p816_p10)   ;;  %v2130_v34 = vld [vmem:[%s2616_s14 + $0x50] sm:$0xff] (!%p816_p10)  }
  0x7f   : > { %v2123_v23 = vld [vmem:[%s2616_s14 + $0xc0] sm:$0xff] (!%p816_p10)   ;;  %1960 = vmatprep.subr.bf16.mxu0 (!%p816_p10), %v2122_v22  ;;  %v2127_v29 = vld [vmem:[%s2616_s14 + $0xc8] sm:$0xff] (!%p816_p10)   ;;  %v2131_v35 = vld [vmem:[%s2616_s14 + $0xd0] sm:$0xff] (!%p816_p10)  }
  0x80   : > { %v2124_v25 = vld [vmem:[%s2616_s14] sm:$0xff] (!%p816_p10)   ;;  %1982 = vmatprep.subr.bf16.mxu1 (!%p816_p10), %v2123_v23  ;;  %v1021_v27 = vrot.slane (!%p816_p10), %v866_v20, %v2620_v24  ;;  %v2128_v31 = vld [vmem:[%s2616_s14 + $0x8] sm:$0xff] (!%p816_p10)   ;;  %v2132_v37 = vld [vmem:[%s2616_s14 + $0x10] sm:$0xff] (!%p816_p10)   ;;  %v2647_v52 = vrot.slane (!%p816_p10), %v1014_v47, %v2620_v24 }
  0x81   : > { %v2125_v26 = vld [vmem:[%s2616_s14 + $0x80] sm:$0xff]   ;;  %1961 = vmatpush3.bf16.msra.mxu0 %v2124_v25  ;;  %v2129_v32 = vld [vmem:[%s2616_s14 + $0x88] sm:$0xff]   ;;  %v2133_v38 = vld [vmem:[%s2616_s14 + $0x90] sm:$0xff]   ;;  %s860_s17 = scalar_select %p859_p11, %s2225_s0, 1 }
  0x82   : > { %1983 = vmatpush3.bf16.msra.mxu1 %v2125_v26  ;;  %v1029_v30 = vcombine.high %v1021_v27, %v1021_v27  ;;  %1962 = vmatprep.subr.bf16.mxu0 %v2126_v28  ;;  %v2134_v39 = vld [vmem:[%s2616_s14 + $0x58] sm:$0xff]   ;;  %v2138_v43 = vld [vmem:[%s2616_s14 + $0x60] sm:$0xff]   ;;  %v2142_v48 = vld [vmem:[%s2616_s14 + $0x68] sm:$0xff]   ;;  %v1030_v57 = vcombine.high %v2647_v52, %v2647_v52  ;;  %v1037_v59 = vrot.slane %v1021_v27, %v2620_v24  ;;  %s1814_s9 = scalar_lea.vmem (%p2303_p6), %s2743_s5, %s2225_s0 }
  0x83   : > { %1984 = vmatprep.subr.bf16.mxu1 %v2127_v29  ;;  %v2135_v40 = vld [vmem:[%s2616_s14 + $0xd8] sm:$0xff]   ;;  %v2139_v44 = vld [vmem:[%s2616_s14 + $0xe0] sm:$0xff]   ;;  %v2143_v49 = vld [vmem:[%s2616_s14 + $0xe8] sm:$0xff]   ;;  %s861_s25 = scalar_lea.vmem %s2741_s3, %s860_s17  ;;  %s864_s30 = scalar_lea.vmem %s2742_s4, %s860_s17 }
  0x84   : > { %v1051_v33 = vrot.slane %v1029_v30, %v2620_v24  ;;  %v2136_v41 = vld [vmem:[%s2616_s14 + $0x18] sm:$0xff]   ;;  %v2140_v45 = vld [vmem:[%s2616_s14 + $0x20] sm:$0xff]   ;;  %v2144_v50 = vld [vmem:[%s2616_s14 + $0x28] sm:$0xff]   ;;  %v1058_v63 = vrot.slane %v1030_v57, %v2620_v24  ;;  %v1059_v0 = vcombine.high %v1037_v59, %v1037_v59 }
  0x85   : > { %1963 = vmatpush3.bf16.msra.mxu0 %v2128_v31  ;;  %v2137_v42 = vld [vmem:[%s2616_s14 + $0x98] sm:$0xff]   ;;  %v2141_v46 = vld [vmem:[%s2616_s14 + $0xa0] sm:$0xff]   ;;  %v2145_v51 = vld [vmem:[%s2616_s14 + $0xa8] sm:$0xff]  }
  0x86   : > { %1985 = vmatpush3.bf16.msra.mxu1 %v2129_v32  ;;  %1550 = vmatprep.mubr.bf16.mxu0 %v1051_v33  ;;  %v1061_v36 = vcombine.high %v1051_v33, %v1051_v33  ;;  %v2146_v53 = vld [vmem:[%s2616_s14 + $0x70] sm:$0xff]   ;;  %v2150_v58 = vld [vmem:[%s2616_s14 + $0x78] sm:$0xff]   ;;  %v2155_v1 = vld [vmem:[%s2616_s14 + $0x140] sm:$0xff]   ;;  %v1062_v5 = vcombine.high %v1058_v63, %v1058_v63  ;;  %v1044_v33 = vrot.slane %v2647_v52, %v2620_v24 }
  0x87   : > { %1964 = vmatprep.subr.bf16.mxu0 %v2130_v34  ;;  %1986 = vmatprep.subr.bf16.mxu1 %v2131_v35  ;;  %v2147_v54 = vld [vmem:[%s2616_s14 + $0xf0] sm:$0xff]   ;;  %v2151_v60 = vld [vmem:[%s2616_s14 + $0xf8] sm:$0xff]   ;;  %v2156_v2 = vld [vmem:[%s2616_s14 + $0x100] sm:$0xff]  }
  0x88   : > { %1590 = vmatprep.mubr.bf16.mxu1 %v1061_v36  ;;  %v2148_v55 = vld [vmem:[%s2616_s14 + $0x30] sm:$0xff]   ;;  %v2152_v61 = vld [vmem:[%s2616_s14 + $0x38] sm:$0xff]   ;;  %v2157_v3 = vld [vmem:[%s2616_s14 + $0x1c0] sm:$0xff]  }
  0x89   : > { %1965 = vmatpush3.bf16.msra.mxu0 %v2132_v37  ;;  %v2149_v56 = vld [vmem:[%s2616_s14 + $0xb0] sm:$0xff]   ;;  %v2153_v62 = vld [vmem:[%s2616_s14 + $0xb8] sm:$0xff]   ;;  %v2158_v4 = vld [vmem:[%s2616_s14 + $0x180] sm:$0xff]   ;;  %v2236_v37 = vmov 0.0  }
  0x8a   : > { %1987 = vmatpush3.bf16.msra.mxu1 %v2133_v38  ;;  %1966 = vmatprep.subr.bf16.mxu0 %v2134_v39  ;;  %v2159_v6 = vld [vmem:[%s2616_s14 + $0x148] sm:$0xff]   ;;  %v2163_v10 = vld [vmem:[%s2616_s14 + $0x150] sm:$0xff]   ;;  %v2167_v14 = vld [vmem:[%s2616_s14 + $0x158] sm:$0xff]   ;;  %v1060_v38 = vcombine.high %v1044_v33, %v1044_v33 }
  0x8b   : > { %1988 = vmatprep.subr.bf16.mxu1 %v2135_v40  ;;  %v2160_v7 = vld [vmem:[%s2616_s14 + $0x108] sm:$0xff]   ;;  %v2164_v11 = vld [vmem:[%s2616_s14 + $0x110] sm:$0xff]   ;;  %v2168_v15 = vld [vmem:[%s2616_s14 + $0x118] sm:$0xff]  }
  0x8c   : > { %v2161_v8 = vld [vmem:[%s2616_s14 + $0x1c8] sm:$0xff]   ;;  %v2165_v12 = vld [vmem:[%s2616_s14 + $0x1d0] sm:$0xff]   ;;  %v2169_v16 = vld [vmem:[%s2616_s14 + $0x1d8] sm:$0xff]  }
  0x8d   : > { %1967 = vmatpush3.bf16.msra.mxu0 %v2136_v41  ;;  %v2162_v9 = vld [vmem:[%s2616_s14 + $0x188] sm:$0xff]   ;;  %v2166_v13 = vld [vmem:[%s2616_s14 + $0x190] sm:$0xff]   ;;  %v2170_v17 = vld [vmem:[%s2616_s14 + $0x198] sm:$0xff]  }
  0x8e   : > { %1989 = vmatpush3.bf16.msra.mxu1 %v2137_v42  ;;  %1968 = vmatprep.subr.bf16.mxu0 %v2138_v43  ;;  %v2171_v18 = vld [vmem:[%s2616_s14 + $0x160] sm:$0xff]   ;;  %v2175_v22 = vld [vmem:[%s2616_s14 + $0x168] sm:$0xff]   ;;  %v2179_v27 = vld [vmem:[%s2616_s14 + $0x170] sm:$0xff]  }
  0x8f   : > { %1990 = vmatprep.subr.bf16.mxu1 %v2139_v44  ;;  %v2172_v19 = vld [vmem:[%s2616_s14 + $0x120] sm:$0xff]   ;;  %v2176_v23 = vld [vmem:[%s2616_s14 + $0x128] sm:$0xff]   ;;  %v2180_v28 = vld [vmem:[%s2616_s14 + $0x130] sm:$0xff]  }
  0x90   : > { %v2173_v20 = vld [vmem:[%s2616_s14 + $0x1e0] sm:$0xff]   ;;  %v2177_v25 = vld [vmem:[%s2616_s14 + $0x1e8] sm:$0xff]   ;;  %v2181_v29 = vld [vmem:[%s2616_s14 + $0x1f0] sm:$0xff]  }
  0x91   : > { %1969 = vmatpush3.bf16.msra.mxu0 %v2140_v45  ;;  %v2174_v21 = vld [vmem:[%s2616_s14 + $0x1a0] sm:$0xff]   ;;  %v2178_v26 = vld [vmem:[%s2616_s14 + $0x1a8] sm:$0xff]   ;;  %v2182_v30 = vld [vmem:[%s2616_s14 + $0x1b0] sm:$0xff]  }
  0x92   : > { %1991 = vmatpush3.bf16.msra.mxu1 %v2141_v46  ;;  %1970 = vmatprep.subr.bf16.mxu0 %v2142_v48  ;;  %v2183_v31 = vld [vmem:[%s2616_s14 + $0x178] sm:$0xff]   ;;  %v2187_v36 = vld [vmem:[%s2616_s14 + $0x200] sm:$0xff]   ;;  %v2188_v39 = vld [vmem:[%s2616_s14 + $0x208] sm:$0xff]  }
  0x93   : > { %1992 = vmatprep.subr.bf16.mxu1 %v2143_v49  ;;  %v2184_v32 = vld [vmem:[%s2616_s14 + $0x138] sm:$0xff]   ;;  %v2189_v40 = vld [vmem:[%s2616_s14 + $0x210] sm:$0xff]   ;;  %v2191_v42 = vld [vmem:[%s2616_s14 + $0x220] sm:$0xff]  }
  0x94   : > { %v2185_v34 = vld [vmem:[%s2616_s14 + $0x1f8] sm:$0xff]   ;;  %v2192_v43 = vld [vmem:[%s2616_s14 + $0x228] sm:$0xff]   ;;  %v2193_v44 = vld [vmem:[%s2616_s14 + $0x230] sm:$0xff]  }
  0x95   : > { %1971 = vmatpush3.bf16.msra.mxu0 %v2144_v50  ;;  %v2186_v35 = vld [vmem:[%s2616_s14 + $0x1b8] sm:$0xff]   ;;  %v1882_v46 = vld.sshfl [vmem:[%s2739_s1 + $0x8] sm:$0x1 pattern:$0x75316420] }
  0x96   : > { %1993 = vmatpush3.bf16.msra.mxu1 %v2145_v51  ;;  %1972 = vmatprep.subr.bf16.mxu0 %v2146_v53  ;;  %v2190_v41 = vld [vmem:[%s2616_s14 + $0x218] sm:$0xff]   ;;  %v1076_v47 = vrot.slane %v1882_v46, %v2620_v24 }
  0x97   : > { %1994 = vmatprep.subr.bf16.mxu1 %v2147_v54  ;;  %v2194_v45 = vld [vmem:[%s2616_s14 + $0x238] sm:$0xff]  }
  0x99   : > { %1973 = vmatpush3.bf16.msra.mxu0 %v2148_v55 }
  0x9a   : > { %1995 = vmatpush3.bf16.msra.mxu1 %v2149_v56  ;;  %1974 = vmatprep.subr.bf16.mxu0 %v2150_v58 }
  0x9b   : > { %1996 = vmatprep.subr.bf16.mxu1 %v2151_v60 }
  0x9d   : > { %1975 = vmatpush3.bf16.msra.mxu0 %v2152_v61 }
  0x9e   : > { %1997 = vmatpush3.bf16.msra.mxu1 %v2153_v62  ;;  %2004 = vmatprep.subr.bf16.mxu0 %v2155_v1 }
  0x9f   : > { %2026 = vmatprep.subr.bf16.mxu1 %v2157_v3 }
  0xa0   : > { %1551 = vmatmul.mubr.bf16.vlgmr.msra.gmra.mrb[0].mxu0 %v1037_v59 }
  0xa1   : > { %1591 = vmatmul.mubr.bf16.vlgmr.msra.gmra.mrb[0].mxu1 %v1059_v0  ;;  %2005 = vmatpush3.bf16.msra.mxu0 %v2156_v2 }
  0xa2   : > { %1630 = vmatprep.mubr.bf16.mxu0 %v1058_v63  ;;  %2027 = vmatpush3.bf16.msra.mxu1 %v2158_v4 }
  0xa3   : > { %2006 = vmatprep.subr.bf16.mxu0 %v2159_v6  ;;  %1670 = vmatprep.mubr.bf16.mxu1 %v1062_v5 }
  0xa4   : > { %2028 = vmatprep.subr.bf16.mxu1 %v2161_v8 }
  0xa5   : > { %2007 = vmatpush3.bf16.msra.mxu0 %v2160_v7  ;;  %v1955_v7 = vld [vmem:[%s861_s25] ss:$0 sm:$0xff] }
  0xa6   : > { %2029 = vmatpush3.bf16.msra.mxu1 %v2162_v9  ;;  %2008 = vmatprep.subr.bf16.mxu0 %v2163_v10  ;;  %v1956_v10 = vld [vmem:[%s864_s30] ss:$0 sm:$0xff] }
  0xa7   : > { %2030 = vmatprep.subr.bf16.mxu1 %v2165_v12 }
  0xa9   : > { %2009 = vmatpush3.bf16.msra.mxu0 %v2164_v11 }
  0xaa   : > { %2031 = vmatpush3.bf16.msra.mxu1 %v2166_v13  ;;  %2010 = vmatprep.subr.bf16.mxu0 %v2167_v14 }
  0xab   : > { %2032 = vmatprep.subr.bf16.mxu1 %v2169_v16 }
  0xad   : > { %2011 = vmatpush3.bf16.msra.mxu0 %v2168_v15 }
  0xae   : > { %2033 = vmatpush3.bf16.msra.mxu1 %v2170_v17  ;;  %2012 = vmatprep.subr.bf16.mxu0 %v2171_v18 }
  0xaf   : > { %2034 = vmatprep.subr.bf16.mxu1 %v2173_v20 }
  0xb1   : > { %2013 = vmatpush3.bf16.msra.mxu0 %v2172_v19 }
  0xb2   : > { %2035 = vmatpush3.bf16.msra.mxu1 %v2174_v21  ;;  %2014 = vmatprep.subr.bf16.mxu0 %v2175_v22 }
  0xb3   : > { %2036 = vmatprep.subr.bf16.mxu1 %v2177_v25 }
  0xb5   : > { %2015 = vmatpush3.bf16.msra.mxu0 %v2176_v23 }
  0xb6   : > { %2037 = vmatpush3.bf16.msra.mxu1 %v2178_v26  ;;  %2016 = vmatprep.subr.bf16.mxu0 %v2179_v27 }
  0xb7   : > { %2038 = vmatprep.subr.bf16.mxu1 %v2181_v29 }
  0xb9   : > { %2017 = vmatpush3.bf16.msra.mxu0 %v2180_v28 }
  0xba   : > { %2039 = vmatpush3.bf16.msra.mxu1 %v2182_v30  ;;  %2018 = vmatprep.subr.bf16.mxu0 %v2183_v31 }
  0xbb   : > { %2040 = vmatprep.subr.bf16.mxu1 %v2185_v34 }
  0xbd   : > { %2019 = vmatpush3.bf16.msra.mxu0 %v2184_v32 }
  0xbe   : > { %2057 = vmatprep.subr.bf16.mxu0 %v2236_v37  ;;  %2041 = vmatpush3.bf16.msra.mxu1 %v2186_v35 }
  0xc0   : > { %1631 = vmatmul.mubr.bf16.vlgmr.msra.gmra.mrb[4].mxu0 %v1044_v33 }
  0xc1   : > { %2058 = vmatpush3.bf16.msra.mxu0 %v2187_v36  ;;  %2073 = vmatprep.mubr.msk.bf16.mxu0 %vm2237_vm0, %v2236_v37 }
  0xc2   : > { %1671 = vmatmul.mubr.bf16.vlgmr.msra.gmra.mrb[4].mxu1 %v1060_v38  ;;  %2059 = vmatprep.subr.bf16.mxu0 %v2236_v37 }
  0xc5   : > { %2060 = vmatpush3.bf16.msra.mxu0 %v2188_v39 }
  0xc6   : > { %2061 = vmatprep.subr.bf16.mxu0 %v2236_v37 }
  0xc9   : > { %2062 = vmatpush3.bf16.msra.mxu0 %v2189_v40 }
  0xca   : > { %2063 = vmatprep.subr.bf16.mxu0 %v2236_v37 }
  0xcd   : > { %2064 = vmatpush3.bf16.msra.mxu0 %v2190_v41 }
  0xce   : > { %2065 = vmatprep.subr.bf16.mxu0 %v2236_v37 }
  0xd1   : > { %2066 = vmatpush3.bf16.msra.mxu0 %v2191_v42 }
  0xd2   : > { %2067 = vmatprep.subr.bf16.mxu0 %v2236_v37 }
  0xd5   : > { %2068 = vmatpush3.bf16.msra.mxu0 %v2192_v43 }
  0xd6   : > { %2069 = vmatprep.subr.bf16.mxu0 %v2236_v37 }
  0xd9   : > { %2070 = vmatpush3.bf16.msra.mxu0 %v2193_v44 }
  0xda   : > { %2071 = vmatprep.subr.bf16.mxu0 %v2236_v37 }
  0xdd   : > { %2072 = vmatpush3.bf16.msra.mxu0 %v2194_v45 }
  0xe0   : > { %2074 = vmatmul.mubr.bf16.vlgmr.msra.gmra.mrb[8].mxu0 %v1076_v47 }
 0x173   : > { %v1976_v48 = vpop.f32.mrb[0].mxu0 }
 0x174   : > { %v1998_v49 = vpop.f32.mrb[0].mxu1  ;;  %v1977_v50 = vpop.f32.mrb[1].mxu0 }
 0x175   : > { %v1978_v51 = vadd.f32 %v1977_v50, %v1976_v48  ;;  %v1999_v52 = vpop.f32.mrb[1].mxu1  ;;  %v1979_v53 = vpop.f32.mrb[2].mxu0 }
 0x176   : > { %v2000_v54 = vadd.f32 %v1999_v52, %v1998_v49  ;;  %v1980_v55 = vpop.f32.mrb[3].mxu0  ;;  %v2001_v56 = vpop.f32.mrb[2].mxu1 }
 0x177   : > { %v2002_v57 = vpop.f32.mrb[3].mxu1 }
 0x178   : > { %v1593_v58 = vadd.f32 %v2000_v54, %v1978_v51 }
 0x193   : > { %v2020_v59 = vpop.f32.mrb[4].mxu0 }
 0x194   : > { %v2021_v60 = vpop.f32.mrb[5].mxu0 }
 0x195   : > { %v2022_v61 = vadd.f32 %v2021_v60, %v2020_v59  ;;  %v2023_v62 = vpop.f32.mrb[6].mxu0  ;;  %v2042_v24 = vpop.f32.mrb[4].mxu1 }
 0x196   : > { %v2024_v63 = vpop.f32.mrb[7].mxu0  ;;  %v2043_v0 = vpop.f32.mrb[5].mxu1 }
 0x197   : > { %v1633_v1 = vadd.f32 %v2022_v61, %v1593_v58  ;;  %v2044_v2 = vadd.f32 %v2043_v0, %v2042_v24  ;;  %v2045_v3 = vpop.f32.mrb[6].mxu1 }
 0x198   : > { %v2046_v4 = vpop.f32.mrb[7].mxu1 }
 0x199   : > { %v1673_v5 = vadd.f32 %v2044_v2, %v1633_v1 }
 0x1b3   : > { %v1712_v6 = vpop.f32.mrb[8].mxu0 }
 0x1b4   : > { %v1713_v8 = vadd.f32 %v1712_v6, %v1673_v5  ;;  %v2075_v9 = vpop.f32.mrb[9].mxu0 }
 0x1b5   : > { %v1715_v11 = vpop.f32.mrb[10].mxu0 }
 0x1b6   : > { %v1725_v12 = vmul.f32 %v1955_v7, %v1713_v8  ;;  %v2076_v13 = vpop.f32.mrb[11].mxu0 }
 0x1b8   : > { %v1733_v14 = vadd.f32 %v1956_v10, %v1725_v12 }
 0x1b9   : > { %1744 = sbr.rel (!%p2303_p6) target bundleno = 456 (0x1c8), region = 81 }
 0x1ba   : > { %vm1734_vm1 = vcmp.ge.f32.partialorder %v1733_v14, 0.0  ;;  %v1735_v15 = vmul.f32 0.01, %v1733_v14 }
 0x1bc   : > { %v1736_v16 = vsel %vm1734_vm1, %v1733_v14, %v1735_v15 }
 0x1bd   : > { %v1737_v17 = vpack.c.bf16 %v1736_v16, %v1736_v16 }
 0x1bf   : > { %1738 = vst [vmem:[%s854_s6] sm:$0x1] %v1737_v17 }
 0x1c6   : > { %v1763_v18 = vld [vmem:[%s854_s6] sm:$0x1] }
 0x1c7   : > { %1957 = vst [vmem:[%s1814_s9 + $0x8] sm:$0x1] %v1763_v18 }
 0x1c8 PF: > { %s16_s21 = sadd.s32 1, %s2233_s21   ;;  %s2745_s18 = smov %s2221_s19 }
 0x1c9   : > { %p13_p12 = scmp.ge.s32.totalorder %s16_s21, 4   ;;  %s2746_s19 = smov %s2308_s27 }
 0x1ca   : > { %s2747_s0 = smov %s2229_s20  ;;  %s2748_s20 = smov %s2750_s22 }
 0x1cb   :  { %15 = sbr.rel (!%p13_p12) target bundleno = 3 (0x3), region = 156 }

// kernel: resnet_forward.27
= control target key start
LH: loop header
LB: loop body
LE: loop exit
PB: predicated region body
PF: predicated region fallthrough
CT: control target
= control target key end

     0   :  { %v462_v7 = vmov 0.0|0.0   ;;  %v463_v13 = vmov 1966171168   ;;  %v70_v15 = vlaneseq  ;;  %s681_s0 = inlined_call_operand.vmem [shape: f32[2,1,256], index: 0, kind: input, shape index: {}]   ;;  %s682_s1 = inlined_call_operand.vmem [shape: f32[256,128], index: 1, kind: input, shape index: {}]   ;;  %s683_s2 = inlined_call_operand.vmem [shape: f32[1,128], index: 2, kind: input, shape index: {}]   ;;  %s684_s3 = inlined_call_operand.vmem [shape: f32[128,10], index: 3, kind: input, shape index: {}]   ;;  %s685_s4 = inlined_call_operand.vmem [shape: f32[1,10], index: 4, kind: input, shape index: {}]   ;;  %s686_s5 = inlined_call_operand.hbm [shape: f32[2,10], index: 5, kind: output, shape index: {}]  }
   0x1   :  { %v41_v0 = vld [vmem:[%s682_s1 + $0x80] sm:$0xff]  ;;  %v42_v1 = vld [vmem:[%s682_s1 + $0x88] sm:$0xff]  ;;  %v43_v5 = vld [vmem:[%s682_s1 + $0x90] sm:$0xff]  ;;  %405 = vmatprep.subr.bf16.mxu1 %v462_v7  ;;  %v68_v14 = vunpack.c.l.s4 %v463_v13 }
   0x2   :  { %v25_v2 = vld [vmem:[%s682_s1] sm:$0xff]  ;;  %v373_v3 = vpack.c.bf16 %v42_v1, %v41_v0  ;;  %v26_v4 = vld [vmem:[%s682_s1 + $0x8] sm:$0xff]  ;;  %v44_v6 = vld [vmem:[%s682_s1 + $0x98] sm:$0xff]  ;;  %v71_v24 = vshrl.u32 %v70_v15, 7 }
   0x3   :  { %v375_v8 = vpack.c.bf16 %v26_v4, %v25_v2  ;;  %v377_v9 = vpack.c.bf16 %v44_v6, %v43_v5  ;;  %v27_v10 = vld [vmem:[%s682_s1 + $0x10] sm:$0xff]  ;;  %v28_v11 = vld [vmem:[%s682_s1 + $0x18] sm:$0xff]  ;;  %v45_v12 = vld [vmem:[%s682_s1 + $0xa0] sm:$0xff]  ;;  %v69_v23 = vunpack.c.0.s8 %v68_v14 }
   0x4   :  { %374 = vmatprep.subr.bf16.mxu0 %v373_v3  ;;  %v46_v16 = vld [vmem:[%s682_s1 + $0xa8] sm:$0xff]  ;;  %v379_v17 = vpack.c.bf16 %v28_v11, %v27_v10  ;;  %v29_v19 = vld [vmem:[%s682_s1 + $0x20] sm:$0xff]  ;;  %v47_v21 = vld [vmem:[%s682_s1 + $0xb0] sm:$0xff] }
   0x5   :  { %376 = vmatpush3.bf16.msra.mxu0 %v375_v8  ;;  %v381_v18 = vpack.c.bf16 %v46_v16, %v45_v12  ;;  %v30_v20 = vld [vmem:[%s682_s1 + $0x28] sm:$0xff]  ;;  %v48_v22 = vld [vmem:[%s682_s1 + $0xb8] sm:$0xff]  ;;  %v31_v27 = vld [vmem:[%s682_s1 + $0x30] sm:$0xff]  ;;  %v555_v32 = vsub.s32 %v69_v23, %v71_v24 }
   0x6   :  { %378 = vmatprep.subr.bf16.mxu0 %v377_v9  ;;  %v383_v25 = vpack.c.bf16 %v30_v20, %v29_v19  ;;  %v385_v26 = vpack.c.bf16 %v48_v22, %v47_v21  ;;  %v32_v28 = vld [vmem:[%s682_s1 + $0x38] sm:$0xff]  ;;  %v49_v29 = vld [vmem:[%s682_s1 + $0xc0] sm:$0xff]  ;;  %v50_v30 = vld [vmem:[%s682_s1 + $0xc8] sm:$0xff] }
   0x7   :  { %v21_v31 = vld [vmem:[%s681_s0] sm:$0x3]  ;;  %v22_v33 = vld [vmem:[%s681_s0 + $0x2] sm:$0x3]  ;;  %v165_v35 = vld [vmem:[%s684_s3 + $0x8] sm:$0xff]  ;;  %v387_v36 = vpack.c.bf16 %v32_v28, %v31_v27  ;;  %v389_v41 = vpack.c.bf16 %v50_v30, %v49_v29 }
   0x8   :  { %v164_v34 = vld [vmem:[%s684_s3] sm:$0xff]  ;;  %v66_v37 = vcombine.low %v21_v31, %v22_v33  ;;  %v166_v39 = vld [vmem:[%s684_s3 + $0x10] sm:$0xff]  ;;  %v167_v40 = vld [vmem:[%s684_s3 + $0x18] sm:$0xff] }
   0x9   :  { %380 = vmatpush3.bf16.msra.mxu0 %v379_v17  ;;  %v406_v38 = vpack.c.bf16 %v165_v35, %v164_v34  ;;  %v33_v42 = vld [vmem:[%s682_s1 + $0x40] sm:$0xff]  ;;  %v34_v43 = vld [vmem:[%s682_s1 + $0x48] sm:$0xff]  ;;  %v51_v44 = vld [vmem:[%s682_s1 + $0xd0] sm:$0xff]  ;;  %v409_v47 = vpack.c.bf16 %v167_v40, %v166_v39 }
   0xa   :  { %382 = vmatprep.subr.bf16.mxu0 %v381_v18  ;;  %v52_v45 = vld [vmem:[%s682_s1 + $0xd8] sm:$0xff]  ;;  %v73_v46 = vrot.slane %v66_v37, %v555_v32  ;;  %v168_v48 = vld [vmem:[%s684_s3 + $0x20] sm:$0xff]  ;;  %v169_v49 = vld [vmem:[%s684_s3 + $0x28] sm:$0xff] }
   0xb   :  { %407 = vmatpush3.bf16.msra.mxu1 %v406_v38 }
   0xc   :  { %408 = vmatprep.subr.bf16.mxu1 %v462_v7 }
   0xd   :  { %384 = vmatpush3.bf16.msra.mxu0 %v383_v25 }
   0xe   :  { %386 = vmatprep.subr.bf16.mxu0 %v385_v26 }
   0xf   :  { %10 = vsyncpa [#allocation3], 0  ;;  %v391_v50 = vpack.c.bf16 %v34_v43, %v33_v42  ;;  %v74_v51 = vcombine.high %v73_v46, %v73_v46  ;;  %v393_v52 = vpack.c.bf16 %v52_v45, %v51_v44  ;;  %v35_v53 = vld [vmem:[%s682_s1 + $0x50] sm:$0xff]  ;;  %v36_v54 = vld [vmem:[%s682_s1 + $0x58] sm:$0xff]  ;;  %410 = vmatpush3.bf16.msra.mxu1 %v409_v47  ;;  %v412_v58 = vpack.c.bf16 %v169_v49, %v168_v48 }
  0x10   :  { %v53_v55 = vld [vmem:[%s682_s1 + $0xe0] sm:$0xff]  ;;  %v54_v56 = vld [vmem:[%s682_s1 + $0xe8] sm:$0xff]  ;;  %411 = vmatprep.subr.bf16.mxu1 %v462_v7  ;;  %v170_v59 = vld [vmem:[%s684_s3 + $0x30] sm:$0xff]  ;;  %v395_v61 = vpack.c.bf16 %v36_v54, %v35_v53  ;;  %v81_v16 = vrot.slane %v73_v46, %v555_v32  ;;  %vm464_vm0 = vmmov 0   ;;  %v465_v23 = vmov 0.0  }
  0x11   :  { %388 = vmatpush3.bf16.msra.mxu0 %v387_v36  ;;  %v88_v57 = vrot.slane %v74_v51, %v555_v32  ;;  %v171_v60 = vld [vmem:[%s684_s3 + $0x38] sm:$0xff]  ;;  %v397_v62 = vpack.c.bf16 %v54_v56, %v53_v55  ;;  %v37_v63 = vld [vmem:[%s682_s1 + $0x60] sm:$0xff]  ;;  %v38_v0 = vld [vmem:[%s682_s1 + $0x68] sm:$0xff]  ;;  %370 = vmatprep.mubr.msk.f32.mxu1 %vm464_vm0, %v465_v23  ;;  %vm257_vm2 = vcmask 74752  }
  0x12   :  { %390 = vmatprep.subr.bf16.mxu0 %v389_v41  ;;  %v55_v1 = vld [vmem:[%s682_s1 + $0xf0] sm:$0xff]  ;;  %v56_v2 = vld [vmem:[%s682_s1 + $0xf8] sm:$0xff]  ;;  %v415_v3 = vpack.c.bf16 %v171_v60, %v170_v59  ;;  %v172_v4 = vld [vmem:[%s684_s3 + $0x40] sm:$0xff]  ;;  %v399_v6 = vpack.c.bf16 %v38_v0, %v37_v63 }
  0x13   :  { %155 = vmatprep.mubr.f32.mxu0 %v88_v57  ;;  %413 = vmatpush3.bf16.msra.mxu1 %v412_v58  ;;  %v173_v5 = vld [vmem:[%s684_s3 + $0x48] sm:$0xff]  ;;  %v401_v8 = vpack.c.bf16 %v56_v2, %v55_v1  ;;  %v39_v9 = vld [vmem:[%s682_s1 + $0x70] sm:$0xff]  ;;  %v40_v10 = vld [vmem:[%s682_s1 + $0x78] sm:$0xff] }
  0x14   :  { %414 = vmatprep.subr.bf16.mxu1 %v462_v7  ;;  %v418_v11 = vpack.c.bf16 %v173_v5, %v172_v4  ;;  %v174_v12 = vld [vmem:[%s684_s3 + $0x50] sm:$0xff]  ;;  %v175_v13 = vld [vmem:[%s684_s3 + $0x58] sm:$0xff]  ;;  %v403_v14 = vpack.c.bf16 %v40_v10, %v39_v9  ;;  %v176_v17 = vld [vmem:[%s684_s3 + $0x60] sm:$0xff] }
  0x15   :  { %392 = vmatpush3.bf16.msra.mxu0 %v391_v50  ;;  %v421_v15 = vpack.c.bf16 %v175_v13, %v174_v12  ;;  %v177_v18 = vld [vmem:[%s684_s3 + $0x68] sm:$0xff]  ;;  %v178_v20 = vld [vmem:[%s684_s3 + $0x70] sm:$0xff]  ;;  %v179_v21 = vld [vmem:[%s684_s3 + $0x78] sm:$0xff] }
  0x16   :  { %394 = vmatprep.subr.bf16.mxu0 %v393_v52  ;;  %v424_v19 = vpack.c.bf16 %v177_v18, %v176_v17  ;;  %v427_v22 = vpack.c.bf16 %v179_v21, %v178_v20  ;;  %v284_v25 = vld [vmem:[%s683_s2] ss:$0 sm:$0xff]  ;;  %s466_s2 = smov [#allocation2]  }
  0x17   :  { %416 = vmatpush3.bf16.msra.mxu1 %v415_v3  ;;  %v285_v30 = vld [vmem:[%s685_s4] ss:$0 sm:$0xff]  ;;  %s276_s3 = sshll.u32 %s466_s2, 4  ;;  %s277_s3 = int_to_ptr.vmem [resolvable:$true] %s276_s3 }
  0x18   :  { %417 = vmatprep.subr.bf16.mxu1 %v462_v7  ;;  %s438_s4 = scalar_lea.vmem %s277_s3, 32  ;;  %p443_p1 = scmp.lt.s32.totalorder %s277_s3, %s277_s3 }
  0x19   :  { %396 = vmatpush3.bf16.msra.mxu0 %v395_v61  ;;  %p439_p0 = scmp.ne.s32.totalorder %s277_s3, %s438_s4  ;;  %p444_p2 = scmp.lt.s32.totalorder %s438_s4, %s438_s4 }
  0x1a   :  { %398 = vmatprep.subr.bf16.mxu0 %v397_v62 }
  0x1b   :  { %419 = vmatpush3.bf16.msra.mxu1 %v418_v11  ;;  %p445_p3 = por %p444_p2, %p443_p1 }
  0x1c   :  { %420 = vmatprep.subr.bf16.mxu1 %v462_v7 }
  0x1d   :  { %400 = vmatpush3.bf16.msra.mxu0 %v399_v6  ;;  %p446_p4 = pnand %p445_p3, %p439_p0 }
  0x1e   :  { %402 = vmatprep.subr.bf16.mxu0 %v401_v8 }
  0x1f   :  { %422 = vmatpush3.bf16.msra.mxu1 %v421_v15 }
  0x20   :  { %423 = vmatprep.subr.bf16.mxu1 %v462_v7 }
  0x21   :  { %404 = vmatpush3.bf16.msra.mxu0 %v403_v14 }
  0x23   :  { %425 = vmatpush3.bf16.msra.mxu1 %v424_v19 }
  0x24   :  { %156 = vmatmul.mubr.f32.vlgmr.msra.gmra.mrb[0].mxu0 %v81_v16  ;;  %426 = vmatprep.subr.bf16.mxu1 %v462_v7 }
  0x27   :  { %428 = vmatpush3.bf16.msra.mxu1 %v427_v22 }
  0xf7   :  { %v318_v24 = vpop.f32.mrb[0].mxu0 }
  0xf8   :  { %v319_v26 = vpop.f32.mrb[1].mxu0 }
  0xf9   :  { %v320_v7 = vadd.f32 %v319_v26, %v318_v24 }
  0xfb   :  { %v158_v27 = vadd.f32 %v320_v7, %v284_v25 }
  0xfd   :  { %vm161_vm1 = vcmp.ge.f32.partialorder %v158_v27, 0.0  ;;  %v162_v28 = vmul.f32 0.01, %v158_v27 }
  0xff   :  { %v163_v29 = vsel %vm161_vm1, %v158_v27, %v162_v28 }
 0x100   :  { %371 = vmatmul.mubr.f32.vlgmr.msra.gmra.mrb[0].mxu1 %v163_v29 }
 0x1d3   :  { %v253_v31 = vpop.f32.mrb[0].mxu1 }
 0x1d4   :  { %v254_v32 = vadd.f32 %v285_v30, %v253_v31  ;;  %v372_v33 = vpop.f32.mrb[1].mxu1 }
 0x1d6   :  { %v258_v34 = vsel %vm257_vm2, %v254_v32, -inf }
 0x1d7   :  { %259 = vmax.xlane.f32.xlu0 %v258_v34 }
 0x264   :  { %v260_v35 = vpop.xlane.xlu0 %259 }
 0x265   :  { %v261_v36 = vsub.f32 %v254_v32, %v260_v35 }
 0x267   :  { %v262_v37 = vmul.f32 1.442695, %v261_v36 }
 0x269   :  { %434 = vpow2.f32 %v262_v37 }
 0x273   :  { %v435_v38 = vpop.eup %434 }
 0x274   :  { %v264_v39 = vsel %vm257_vm2, %v435_v38, 0.0 }
 0x275   :  { %265 = vadd.xlane.f32.xlu0 %v264_v39 }
 0x302   :  { %v266_v40 = vpop.xlane.xlu0 %265 }
 0x303   :  { %436 = vrcp.f32 %v266_v40 }
 0x30d   :  { %v437_v41 = vpop.eup %436 }
 0x30e   :  { %v268_v42 = vmul.f32 %v437_v41, %v435_v38 }
 0x310   :  { %269 = vst.msk [vmem:[#allocation2] sm:$0x3] %vm257_vm2, %v268_v42 }
 0x311   :  { %449 = shalt.err (!%p446_p4)
}
 0x312   :  { %s450_s20 = scalar_lea.hbm %s686_s5, 32 }
 0x313   :  { %p451_p5 = scmp.ne.s32.totalorder %s686_s5, %s450_s20  ;;  %p454_p6 = scmp.lt.u32.totalorder %s450_s20, %s686_s5 }
 0x315   :  { %p456_p7 = pnand %p454_p6, %p451_p5 }
 0x317   :  { %459 = shalt.err (!%p456_p7)
}
 0x318   :  { %279 = dma.vmem_to_hbm [thread:$0]  %s277_s3, 32, %s686_s5, [#allocation3]  }
 0x319   :  { %460 = dma.done.wait [#allocation3], 32  }
 0x31a   :  { %461 = vsyncadd [#allocation3], 4294967264 }
 0x31b   :  { %283 = vsyncpa [#allocation3], 1 }

// kernel: resnet_forward.26
= control target key start
LH: loop header
LB: loop body
LE: loop exit
PB: predicated region body
PF: predicated region fallthrough
CT: control target
= control target key end

     0   :  { %s3926_s18 = smov 0   ;;  %s3928_s19 = smov 0   ;;  %s4772_s0 = inlined_call_operand.vmem [shape: bf16[2,2304], index: 0, kind: input, shape index: {}]   ;;  %s4773_s1 = inlined_call_operand.vmem [shape: bf16[2304,256], index: 1, kind: input, shape index: {}]   ;;  %s4774_s2 = inlined_call_operand.vmem [shape: f32[1,256], index: 2, kind: input, shape index: {}]   ;;  %s4775_s3 = inlined_call_operand.vmem [shape: f32[1,256], index: 3, kind: input, shape index: {}]   ;;  %s4776_s4 = inlined_call_operand.vmem [shape: bf16[2,256], index: 4, kind: input, shape index: {}]   ;;  %s4777_s5 = inlined_call_operand.vmem [shape: bf16[2,256], index: 5, kind: output, shape index: {}]  }
   0x1   :  { %s3930_s20 = smov 0   ;;  %s3932_s21 = smov 0  }
   0x2   :  { %s3934_s22 = smov 0  }
   0x3 LB: > { %s24_s23 = sadd.s32 1, %s3889_s21  ;;  %p67_p1 = scmp.ne.s32.totalorder %s3881_s19, %s3877_s18  ;;  %s3893_s22 = sphi %s3934_s22, %s15_s22   ;;  %s3889_s21 = sphi %s3932_s21, %s4781_s21   ;;  %s3885_s20 = sphi %s3930_s20, %s4780_s20   ;;  %s3881_s19 = sphi %s3928_s19, %s4779_s19   ;;  %s3877_s18 = sphi %s3926_s18, %s4778_s18  }
   0x4   : > { %p25_p0 = scmp.ge.s32.totalorder %s24_s23, 2  ;;  %p68_p2 = scmp.eq.s32.totalorder %s3893_s22, 0 }
   0x5   : > { %s60_s25 = sadd.s32 1, %s3881_s19  ;;  %p3316_p5 = scmp.ge.s32.totalorder %s3893_s22, 2 }
   0x6   : > { %s4783_s23 = smov (%p25_p0, %s24_s23), 0  ;;  %p69_p3 = por %p68_p2, %p67_p1 }
   0x7   : > { %s57_s24 = ssub.s32 %s3889_s21, %s4783_s23  ;;  %208 = sbr.rel (%p3316_p5) target bundleno = 210 (0xd2), region = 20 }
   0x8   : > { %p58_p4 = scmp.eq.s32.totalorder %s57_s24, 0 }
   0xa   : > { %s3961_s26 = scalar_select %p58_p4, %s3881_s19, %s60_s25  }
   0xe   : > { %211 = sbr.rel (!%p69_p3) target bundleno = 210 (0xd2), region = 24  ;;  %s213_s27 = sand.u32 (%p69_p3), 1, %s3881_s19  }
   0xf   : > { %s3317_s28 = sshll.u32 (%p69_p3), %s3889_s21, 2  ;;  %s3666_s29 = smul.u32 (%p69_p3), 1152, %s213_s27 }
  0x10   : > { %s3969_s7 = scalar_lea.vmem (%p69_p3), %s4773_s1, %s3317_s28 }
  0x11   : > { %v233_v0 = vld [vmem:[%s3969_s7] sm:$0xf] (%p69_p3)  ;;  %v235_v1 = vld [vmem:[%s3969_s7 + $0x8] sm:$0xf] (%p69_p3)  ;;  %v237_v2 = vld [vmem:[%s3969_s7 + $0x10] sm:$0xf] (%p69_p3) }
  0x12   : > { %v239_v3 = vld [vmem:[%s3969_s7 + $0x18] sm:$0xf] (%p69_p3)  ;;  %v241_v4 = vld [vmem:[%s3969_s7 + $0x20] sm:$0xf] (%p69_p3)  ;;  %s3976_s8 = scalar_lea.vmem (%p69_p3), [#allocation2], %s3666_s29 }
  0x13   : > { %234 = vst [vmem:[%s3976_s8] sm:$0xf] (%p69_p3), %v233_v0  ;;  %236 = vst [vmem:[%s3976_s8 + $0x4] sm:$0xf] (%p69_p3), %v235_v1  ;;  %v243_v5 = vld [vmem:[%s3969_s7 + $0x28] sm:$0xf] (%p69_p3) }
  0x14   : > { %238 = vst [vmem:[%s3976_s8 + $0x8] sm:$0xf] (%p69_p3), %v237_v2  ;;  %240 = vst [vmem:[%s3976_s8 + $0xc] sm:$0xf] (%p69_p3), %v239_v3  ;;  %v245_v6 = vld [vmem:[%s3969_s7 + $0x30] sm:$0xf] (%p69_p3) }
  0x15   : > { %242 = vst [vmem:[%s3976_s8 + $0x10] sm:$0xf] %v241_v4  ;;  %v247_v7 = vld [vmem:[%s3969_s7 + $0x38] sm:$0xf]  ;;  %244 = vst [vmem:[%s3976_s8 + $0x14] sm:$0xf] %v243_v5 }
  0x16   : > { %246 = vst [vmem:[%s3976_s8 + $0x18] sm:$0xf] %v245_v6  ;;  %248 = vst [vmem:[%s3976_s8 + $0x1c] sm:$0xf] %v247_v7  ;;  %v249_v8 = vld [vmem:[%s3969_s7 + $0x40] sm:$0xf] }
  0x17   : > { %v251_v9 = vld [vmem:[%s3969_s7 + $0x48] sm:$0xf]  ;;  %v253_v10 = vld [vmem:[%s3969_s7 + $0x50] sm:$0xf]  ;;  %250 = vst [vmem:[%s3976_s8 + $0x20] sm:$0xf] %v249_v8 }
  0x18   : > { %252 = vst [vmem:[%s3976_s8 + $0x24] sm:$0xf] %v251_v9  ;;  %254 = vst [vmem:[%s3976_s8 + $0x28] sm:$0xf] %v253_v10  ;;  %v255_v11 = vld [vmem:[%s3969_s7 + $0x58] sm:$0xf] }
  0x19   : > { %v257_v12 = vld [vmem:[%s3969_s7 + $0x60] sm:$0xf]  ;;  %v259_v13 = vld [vmem:[%s3969_s7 + $0x68] sm:$0xf]  ;;  %256 = vst [vmem:[%s3976_s8 + $0x2c] sm:$0xf] %v255_v11 }
  0x1a   : > { %258 = vst [vmem:[%s3976_s8 + $0x30] sm:$0xf] %v257_v12  ;;  %260 = vst [vmem:[%s3976_s8 + $0x34] sm:$0xf] %v259_v13  ;;  %v261_v14 = vld [vmem:[%s3969_s7 + $0x70] sm:$0xf] }
  0x1b   : > { %v263_v15 = vld [vmem:[%s3969_s7 + $0x78] sm:$0xf]  ;;  %v265_v16 = vld [vmem:[%s3969_s7 + $0x80] sm:$0xf]  ;;  %262 = vst [vmem:[%s3976_s8 + $0x38] sm:$0xf] %v261_v14 }
  0x1c   : > { %264 = vst [vmem:[%s3976_s8 + $0x3c] sm:$0xf] %v263_v15  ;;  %266 = vst [vmem:[%s3976_s8 + $0x40] sm:$0xf] %v265_v16  ;;  %v267_v17 = vld [vmem:[%s3969_s7 + $0x88] sm:$0xf] }
  0x1d   : > { %v269_v18 = vld [vmem:[%s3969_s7 + $0x90] sm:$0xf]  ;;  %v271_v19 = vld [vmem:[%s3969_s7 + $0x98] sm:$0xf]  ;;  %268 = vst [vmem:[%s3976_s8 + $0x44] sm:$0xf] %v267_v17 }
  0x1e   : > { %270 = vst [vmem:[%s3976_s8 + $0x48] sm:$0xf] %v269_v18  ;;  %272 = vst [vmem:[%s3976_s8 + $0x4c] sm:$0xf] %v271_v19  ;;  %v273_v20 = vld [vmem:[%s3969_s7 + $0xa0] sm:$0xf] }
  0x1f   : > { %v275_v21 = vld [vmem:[%s3969_s7 + $0xa8] sm:$0xf]  ;;  %v277_v22 = vld [vmem:[%s3969_s7 + $0xb0] sm:$0xf]  ;;  %274 = vst [vmem:[%s3976_s8 + $0x50] sm:$0xf] %v273_v20 }
  0x20   : > { %276 = vst [vmem:[%s3976_s8 + $0x54] sm:$0xf] %v275_v21  ;;  %278 = vst [vmem:[%s3976_s8 + $0x58] sm:$0xf] %v277_v22  ;;  %v279_v23 = vld [vmem:[%s3969_s7 + $0xb8] sm:$0xf] }
  0x21   : > { %v281_v24 = vld [vmem:[%s3969_s7 + $0xc0] sm:$0xf]  ;;  %v283_v25 = vld [vmem:[%s3969_s7 + $0xc8] sm:$0xf]  ;;  %280 = vst [vmem:[%s3976_s8 + $0x5c] sm:$0xf] %v279_v23 }
  0x22   : > { %282 = vst [vmem:[%s3976_s8 + $0x60] sm:$0xf] %v281_v24  ;;  %284 = vst [vmem:[%s3976_s8 + $0x64] sm:$0xf] %v283_v25  ;;  %v285_v26 = vld [vmem:[%s3969_s7 + $0xd0] sm:$0xf] }
  0x23   : > { %v287_v27 = vld [vmem:[%s3969_s7 + $0xd8] sm:$0xf]  ;;  %v289_v28 = vld [vmem:[%s3969_s7 + $0xe0] sm:$0xf]  ;;  %286 = vst [vmem:[%s3976_s8 + $0x68] sm:$0xf] %v285_v26 }
  0x24   : > { %288 = vst [vmem:[%s3976_s8 + $0x6c] sm:$0xf] %v287_v27  ;;  %290 = vst [vmem:[%s3976_s8 + $0x70] sm:$0xf] %v289_v28  ;;  %v291_v29 = vld [vmem:[%s3969_s7 + $0xe8] sm:$0xf] }
  0x25   : > { %v293_v30 = vld [vmem:[%s3969_s7 + $0xf0] sm:$0xf]  ;;  %v295_v31 = vld [vmem:[%s3969_s7 + $0xf8] sm:$0xf]  ;;  %292 = vst [vmem:[%s3976_s8 + $0x74] sm:$0xf] %v291_v29 }
  0x26   : > { %294 = vst [vmem:[%s3976_s8 + $0x78] sm:$0xf] %v293_v30  ;;  %296 = vst [vmem:[%s3976_s8 + $0x7c] sm:$0xf] %v295_v31  ;;  %v297_v32 = vld [vmem:[%s3969_s7 + $0x100] sm:$0xf] }
  0x27   : > { %v299_v33 = vld [vmem:[%s3969_s7 + $0x108] sm:$0xf]  ;;  %v301_v34 = vld [vmem:[%s3969_s7 + $0x110] sm:$0xf]  ;;  %298 = vst [vmem:[%s3976_s8 + $0x80] sm:$0xf] %v297_v32 }
  0x28   : > { %300 = vst [vmem:[%s3976_s8 + $0x84] sm:$0xf] %v299_v33  ;;  %302 = vst [vmem:[%s3976_s8 + $0x88] sm:$0xf] %v301_v34  ;;  %v303_v35 = vld [vmem:[%s3969_s7 + $0x118] sm:$0xf] }
  0x29   : > { %v305_v36 = vld [vmem:[%s3969_s7 + $0x120] sm:$0xf]  ;;  %v307_v37 = vld [vmem:[%s3969_s7 + $0x128] sm:$0xf]  ;;  %304 = vst [vmem:[%s3976_s8 + $0x8c] sm:$0xf] %v303_v35 }
  0x2a   : > { %306 = vst [vmem:[%s3976_s8 + $0x90] sm:$0xf] %v305_v36  ;;  %308 = vst [vmem:[%s3976_s8 + $0x94] sm:$0xf] %v307_v37  ;;  %v309_v38 = vld [vmem:[%s3969_s7 + $0x130] sm:$0xf] }
  0x2b   : > { %v311_v39 = vld [vmem:[%s3969_s7 + $0x138] sm:$0xf]  ;;  %v313_v40 = vld [vmem:[%s3969_s7 + $0x140] sm:$0xf]  ;;  %310 = vst [vmem:[%s3976_s8 + $0x98] sm:$0xf] %v309_v38 }
  0x2c   : > { %312 = vst [vmem:[%s3976_s8 + $0x9c] sm:$0xf] %v311_v39  ;;  %314 = vst [vmem:[%s3976_s8 + $0xa0] sm:$0xf] %v313_v40  ;;  %v315_v41 = vld [vmem:[%s3969_s7 + $0x148] sm:$0xf] }
  0x2d   : > { %v317_v42 = vld [vmem:[%s3969_s7 + $0x150] sm:$0xf]  ;;  %v319_v43 = vld [vmem:[%s3969_s7 + $0x158] sm:$0xf]  ;;  %316 = vst [vmem:[%s3976_s8 + $0xa4] sm:$0xf] %v315_v41 }
  0x2e   : > { %318 = vst [vmem:[%s3976_s8 + $0xa8] sm:$0xf] %v317_v42  ;;  %320 = vst [vmem:[%s3976_s8 + $0xac] sm:$0xf] %v319_v43  ;;  %v321_v44 = vld [vmem:[%s3969_s7 + $0x160] sm:$0xf] }
  0x2f   : > { %v323_v45 = vld [vmem:[%s3969_s7 + $0x168] sm:$0xf]  ;;  %v325_v46 = vld [vmem:[%s3969_s7 + $0x170] sm:$0xf]  ;;  %322 = vst [vmem:[%s3976_s8 + $0xb0] sm:$0xf] %v321_v44 }
  0x30   : > { %324 = vst [vmem:[%s3976_s8 + $0xb4] sm:$0xf] %v323_v45  ;;  %326 = vst [vmem:[%s3976_s8 + $0xb8] sm:$0xf] %v325_v46  ;;  %v327_v47 = vld [vmem:[%s3969_s7 + $0x178] sm:$0xf] }
  0x31   : > { %v329_v48 = vld [vmem:[%s3969_s7 + $0x180] sm:$0xf]  ;;  %v331_v49 = vld [vmem:[%s3969_s7 + $0x188] sm:$0xf]  ;;  %328 = vst [vmem:[%s3976_s8 + $0xbc] sm:$0xf] %v327_v47 }
  0x32   : > { %330 = vst [vmem:[%s3976_s8 + $0xc0] sm:$0xf] %v329_v48  ;;  %332 = vst [vmem:[%s3976_s8 + $0xc4] sm:$0xf] %v331_v49  ;;  %v333_v50 = vld [vmem:[%s3969_s7 + $0x190] sm:$0xf] }
  0x33   : > { %v335_v51 = vld [vmem:[%s3969_s7 + $0x198] sm:$0xf]  ;;  %v337_v52 = vld [vmem:[%s3969_s7 + $0x1a0] sm:$0xf]  ;;  %334 = vst [vmem:[%s3976_s8 + $0xc8] sm:$0xf] %v333_v50 }
  0x34   : > { %336 = vst [vmem:[%s3976_s8 + $0xcc] sm:$0xf] %v335_v51  ;;  %338 = vst [vmem:[%s3976_s8 + $0xd0] sm:$0xf] %v337_v52  ;;  %v339_v53 = vld [vmem:[%s3969_s7 + $0x1a8] sm:$0xf] }
  0x35   : > { %v341_v54 = vld [vmem:[%s3969_s7 + $0x1b0] sm:$0xf]  ;;  %v343_v55 = vld [vmem:[%s3969_s7 + $0x1b8] sm:$0xf]  ;;  %340 = vst [vmem:[%s3976_s8 + $0xd4] sm:$0xf] %v339_v53 }
  0x36   : > { %342 = vst [vmem:[%s3976_s8 + $0xd8] sm:$0xf] %v341_v54  ;;  %344 = vst [vmem:[%s3976_s8 + $0xdc] sm:$0xf] %v343_v55  ;;  %v345_v56 = vld [vmem:[%s3969_s7 + $0x1c0] sm:$0xf] }
  0x37   : > { %v347_v57 = vld [vmem:[%s3969_s7 + $0x1c8] sm:$0xf]  ;;  %v349_v58 = vld [vmem:[%s3969_s7 + $0x1d0] sm:$0xf]  ;;  %346 = vst [vmem:[%s3976_s8 + $0xe0] sm:$0xf] %v345_v56 }
  0x38   : > { %348 = vst [vmem:[%s3976_s8 + $0xe4] sm:$0xf] %v347_v57  ;;  %350 = vst [vmem:[%s3976_s8 + $0xe8] sm:$0xf] %v349_v58  ;;  %v351_v59 = vld [vmem:[%s3969_s7 + $0x1d8] sm:$0xf] }
  0x39   : > { %v353_v60 = vld [vmem:[%s3969_s7 + $0x1e0] sm:$0xf]  ;;  %v355_v61 = vld [vmem:[%s3969_s7 + $0x1e8] sm:$0xf]  ;;  %352 = vst [vmem:[%s3976_s8 + $0xec] sm:$0xf] %v351_v59 }
  0x3a   : > { %354 = vst [vmem:[%s3976_s8 + $0xf0] sm:$0xf] %v353_v60  ;;  %356 = vst [vmem:[%s3976_s8 + $0xf4] sm:$0xf] %v355_v61  ;;  %v357_v62 = vld [vmem:[%s3969_s7 + $0x1f0] sm:$0xf] }
  0x3b   : > { %v359_v63 = vld [vmem:[%s3969_s7 + $0x1f8] sm:$0xf]  ;;  %v361_v0 = vld [vmem:[%s3969_s7 + $0x200] sm:$0xf]  ;;  %358 = vst [vmem:[%s3976_s8 + $0xf8] sm:$0xf] %v357_v62 }
  0x3c   : > { %360 = vst [vmem:[%s3976_s8 + $0xfc] sm:$0xf] %v359_v63  ;;  %362 = vst [vmem:[%s3976_s8 + $0x100] sm:$0xf] %v361_v0  ;;  %v363_v1 = vld [vmem:[%s3969_s7 + $0x208] sm:$0xf] }
  0x3d   : > { %v365_v2 = vld [vmem:[%s3969_s7 + $0x210] sm:$0xf]  ;;  %v367_v3 = vld [vmem:[%s3969_s7 + $0x218] sm:$0xf]  ;;  %364 = vst [vmem:[%s3976_s8 + $0x104] sm:$0xf] %v363_v1 }
  0x3e   : > { %366 = vst [vmem:[%s3976_s8 + $0x108] sm:$0xf] %v365_v2  ;;  %368 = vst [vmem:[%s3976_s8 + $0x10c] sm:$0xf] %v367_v3  ;;  %v369_v4 = vld [vmem:[%s3969_s7 + $0x220] sm:$0xf] }
  0x3f   : > { %v371_v5 = vld [vmem:[%s3969_s7 + $0x228] sm:$0xf]  ;;  %v373_v6 = vld [vmem:[%s3969_s7 + $0x230] sm:$0xf]  ;;  %370 = vst [vmem:[%s3976_s8 + $0x110] sm:$0xf] %v369_v4 }
  0x40   : > { %372 = vst [vmem:[%s3976_s8 + $0x114] sm:$0xf] %v371_v5  ;;  %374 = vst [vmem:[%s3976_s8 + $0x118] sm:$0xf] %v373_v6  ;;  %v375_v7 = vld [vmem:[%s3969_s7 + $0x238] sm:$0xf] }
  0x41   : > { %v377_v8 = vld [vmem:[%s3969_s7 + $0x240] sm:$0xf]  ;;  %v379_v9 = vld [vmem:[%s3969_s7 + $0x248] sm:$0xf]  ;;  %376 = vst [vmem:[%s3976_s8 + $0x11c] sm:$0xf] %v375_v7 }
  0x42   : > { %378 = vst [vmem:[%s3976_s8 + $0x120] sm:$0xf] %v377_v8  ;;  %380 = vst [vmem:[%s3976_s8 + $0x124] sm:$0xf] %v379_v9  ;;  %v381_v10 = vld [vmem:[%s3969_s7 + $0x250] sm:$0xf] }
  0x43   : > { %v383_v11 = vld [vmem:[%s3969_s7 + $0x258] sm:$0xf]  ;;  %v385_v12 = vld [vmem:[%s3969_s7 + $0x260] sm:$0xf]  ;;  %382 = vst [vmem:[%s3976_s8 + $0x128] sm:$0xf] %v381_v10 }
  0x44   : > { %384 = vst [vmem:[%s3976_s8 + $0x12c] sm:$0xf] %v383_v11  ;;  %386 = vst [vmem:[%s3976_s8 + $0x130] sm:$0xf] %v385_v12  ;;  %v387_v13 = vld [vmem:[%s3969_s7 + $0x268] sm:$0xf] }
  0x45   : > { %v389_v14 = vld [vmem:[%s3969_s7 + $0x270] sm:$0xf]  ;;  %v391_v15 = vld [vmem:[%s3969_s7 + $0x278] sm:$0xf]  ;;  %388 = vst [vmem:[%s3976_s8 + $0x134] sm:$0xf] %v387_v13 }
  0x46   : > { %390 = vst [vmem:[%s3976_s8 + $0x138] sm:$0xf] %v389_v14  ;;  %392 = vst [vmem:[%s3976_s8 + $0x13c] sm:$0xf] %v391_v15  ;;  %v393_v16 = vld [vmem:[%s3969_s7 + $0x280] sm:$0xf] }
  0x47   : > { %v395_v17 = vld [vmem:[%s3969_s7 + $0x288] sm:$0xf]  ;;  %v397_v18 = vld [vmem:[%s3969_s7 + $0x290] sm:$0xf]  ;;  %394 = vst [vmem:[%s3976_s8 + $0x140] sm:$0xf] %v393_v16 }
  0x48   : > { %396 = vst [vmem:[%s3976_s8 + $0x144] sm:$0xf] %v395_v17  ;;  %398 = vst [vmem:[%s3976_s8 + $0x148] sm:$0xf] %v397_v18  ;;  %v399_v19 = vld [vmem:[%s3969_s7 + $0x298] sm:$0xf] }
  0x49   : > { %v401_v20 = vld [vmem:[%s3969_s7 + $0x2a0] sm:$0xf]  ;;  %v403_v21 = vld [vmem:[%s3969_s7 + $0x2a8] sm:$0xf]  ;;  %400 = vst [vmem:[%s3976_s8 + $0x14c] sm:$0xf] %v399_v19 }
  0x4a   : > { %402 = vst [vmem:[%s3976_s8 + $0x150] sm:$0xf] %v401_v20  ;;  %404 = vst [vmem:[%s3976_s8 + $0x154] sm:$0xf] %v403_v21  ;;  %v405_v22 = vld [vmem:[%s3969_s7 + $0x2b0] sm:$0xf] }
  0x4b   : > { %v407_v23 = vld [vmem:[%s3969_s7 + $0x2b8] sm:$0xf]  ;;  %v409_v24 = vld [vmem:[%s3969_s7 + $0x2c0] sm:$0xf]  ;;  %406 = vst [vmem:[%s3976_s8 + $0x158] sm:$0xf] %v405_v22 }
  0x4c   : > { %408 = vst [vmem:[%s3976_s8 + $0x15c] sm:$0xf] %v407_v23  ;;  %410 = vst [vmem:[%s3976_s8 + $0x160] sm:$0xf] %v409_v24  ;;  %v411_v25 = vld [vmem:[%s3969_s7 + $0x2c8] sm:$0xf] }
  0x4d   : > { %v413_v26 = vld [vmem:[%s3969_s7 + $0x2d0] sm:$0xf]  ;;  %v415_v27 = vld [vmem:[%s3969_s7 + $0x2d8] sm:$0xf]  ;;  %412 = vst [vmem:[%s3976_s8 + $0x164] sm:$0xf] %v411_v25 }
  0x4e   : > { %414 = vst [vmem:[%s3976_s8 + $0x168] sm:$0xf] %v413_v26  ;;  %416 = vst [vmem:[%s3976_s8 + $0x16c] sm:$0xf] %v415_v27  ;;  %v417_v28 = vld [vmem:[%s3969_s7 + $0x2e0] sm:$0xf] }
  0x4f   : > { %v419_v29 = vld [vmem:[%s3969_s7 + $0x2e8] sm:$0xf]  ;;  %v421_v30 = vld [vmem:[%s3969_s7 + $0x2f0] sm:$0xf]  ;;  %418 = vst [vmem:[%s3976_s8 + $0x170] sm:$0xf] %v417_v28 }
  0x50   : > { %420 = vst [vmem:[%s3976_s8 + $0x174] sm:$0xf] %v419_v29  ;;  %422 = vst [vmem:[%s3976_s8 + $0x178] sm:$0xf] %v421_v30  ;;  %v423_v31 = vld [vmem:[%s3969_s7 + $0x2f8] sm:$0xf] }
  0x51   : > { %v425_v32 = vld [vmem:[%s3969_s7 + $0x300] sm:$0xf]  ;;  %v427_v33 = vld [vmem:[%s3969_s7 + $0x308] sm:$0xf]  ;;  %424 = vst [vmem:[%s3976_s8 + $0x17c] sm:$0xf] %v423_v31 }
  0x52   : > { %426 = vst [vmem:[%s3976_s8 + $0x180] sm:$0xf] %v425_v32  ;;  %428 = vst [vmem:[%s3976_s8 + $0x184] sm:$0xf] %v427_v33  ;;  %v429_v34 = vld [vmem:[%s3969_s7 + $0x310] sm:$0xf] }
  0x53   : > { %v431_v35 = vld [vmem:[%s3969_s7 + $0x318] sm:$0xf]  ;;  %v433_v36 = vld [vmem:[%s3969_s7 + $0x320] sm:$0xf]  ;;  %430 = vst [vmem:[%s3976_s8 + $0x188] sm:$0xf] %v429_v34 }
  0x54   : > { %432 = vst [vmem:[%s3976_s8 + $0x18c] sm:$0xf] %v431_v35  ;;  %434 = vst [vmem:[%s3976_s8 + $0x190] sm:$0xf] %v433_v36  ;;  %v435_v37 = vld [vmem:[%s3969_s7 + $0x328] sm:$0xf] }
  0x55   : > { %v437_v38 = vld [vmem:[%s3969_s7 + $0x330] sm:$0xf]  ;;  %v439_v39 = vld [vmem:[%s3969_s7 + $0x338] sm:$0xf]  ;;  %436 = vst [vmem:[%s3976_s8 + $0x194] sm:$0xf] %v435_v37 }
  0x56   : > { %438 = vst [vmem:[%s3976_s8 + $0x198] sm:$0xf] %v437_v38  ;;  %440 = vst [vmem:[%s3976_s8 + $0x19c] sm:$0xf] %v439_v39  ;;  %v441_v40 = vld [vmem:[%s3969_s7 + $0x340] sm:$0xf] }
  0x57   : > { %v443_v41 = vld [vmem:[%s3969_s7 + $0x348] sm:$0xf]  ;;  %v445_v42 = vld [vmem:[%s3969_s7 + $0x350] sm:$0xf]  ;;  %442 = vst [vmem:[%s3976_s8 + $0x1a0] sm:$0xf] %v441_v40 }
  0x58   : > { %444 = vst [vmem:[%s3976_s8 + $0x1a4] sm:$0xf] %v443_v41  ;;  %446 = vst [vmem:[%s3976_s8 + $0x1a8] sm:$0xf] %v445_v42  ;;  %v447_v43 = vld [vmem:[%s3969_s7 + $0x358] sm:$0xf] }
  0x59   : > { %v449_v44 = vld [vmem:[%s3969_s7 + $0x360] sm:$0xf]  ;;  %v451_v45 = vld [vmem:[%s3969_s7 + $0x368] sm:$0xf]  ;;  %448 = vst [vmem:[%s3976_s8 + $0x1ac] sm:$0xf] %v447_v43 }
  0x5a   : > { %450 = vst [vmem:[%s3976_s8 + $0x1b0] sm:$0xf] %v449_v44  ;;  %452 = vst [vmem:[%s3976_s8 + $0x1b4] sm:$0xf] %v451_v45  ;;  %v453_v46 = vld [vmem:[%s3969_s7 + $0x370] sm:$0xf] }
  0x5b   : > { %v455_v47 = vld [vmem:[%s3969_s7 + $0x378] sm:$0xf]  ;;  %v457_v48 = vld [vmem:[%s3969_s7 + $0x380] sm:$0xf]  ;;  %454 = vst [vmem:[%s3976_s8 + $0x1b8] sm:$0xf] %v453_v46 }
  0x5c   : > { %456 = vst [vmem:[%s3976_s8 + $0x1bc] sm:$0xf] %v455_v47  ;;  %458 = vst [vmem:[%s3976_s8 + $0x1c0] sm:$0xf] %v457_v48  ;;  %v459_v49 = vld [vmem:[%s3969_s7 + $0x388] sm:$0xf] }
  0x5d   : > { %v461_v50 = vld [vmem:[%s3969_s7 + $0x390] sm:$0xf]  ;;  %v463_v51 = vld [vmem:[%s3969_s7 + $0x398] sm:$0xf]  ;;  %460 = vst [vmem:[%s3976_s8 + $0x1c4] sm:$0xf] %v459_v49 }
  0x5e   : > { %462 = vst [vmem:[%s3976_s8 + $0x1c8] sm:$0xf] %v461_v50  ;;  %464 = vst [vmem:[%s3976_s8 + $0x1cc] sm:$0xf] %v463_v51  ;;  %v465_v52 = vld [vmem:[%s3969_s7 + $0x3a0] sm:$0xf] }
  0x5f   : > { %v467_v53 = vld [vmem:[%s3969_s7 + $0x3a8] sm:$0xf]  ;;  %v469_v54 = vld [vmem:[%s3969_s7 + $0x3b0] sm:$0xf]  ;;  %466 = vst [vmem:[%s3976_s8 + $0x1d0] sm:$0xf] %v465_v52 }
  0x60   : > { %468 = vst [vmem:[%s3976_s8 + $0x1d4] sm:$0xf] %v467_v53  ;;  %470 = vst [vmem:[%s3976_s8 + $0x1d8] sm:$0xf] %v469_v54  ;;  %v471_v55 = vld [vmem:[%s3969_s7 + $0x3b8] sm:$0xf] }
  0x61   : > { %v473_v56 = vld [vmem:[%s3969_s7 + $0x3c0] sm:$0xf]  ;;  %v475_v57 = vld [vmem:[%s3969_s7 + $0x3c8] sm:$0xf]  ;;  %472 = vst [vmem:[%s3976_s8 + $0x1dc] sm:$0xf] %v471_v55 }
  0x62   : > { %474 = vst [vmem:[%s3976_s8 + $0x1e0] sm:$0xf] %v473_v56  ;;  %476 = vst [vmem:[%s3976_s8 + $0x1e4] sm:$0xf] %v475_v57  ;;  %v477_v58 = vld [vmem:[%s3969_s7 + $0x3d0] sm:$0xf] }
  0x63   : > { %v479_v59 = vld [vmem:[%s3969_s7 + $0x3d8] sm:$0xf]  ;;  %v481_v60 = vld [vmem:[%s3969_s7 + $0x3e0] sm:$0xf]  ;;  %478 = vst [vmem:[%s3976_s8 + $0x1e8] sm:$0xf] %v477_v58 }
  0x64   : > { %480 = vst [vmem:[%s3976_s8 + $0x1ec] sm:$0xf] %v479_v59  ;;  %482 = vst [vmem:[%s3976_s8 + $0x1f0] sm:$0xf] %v481_v60  ;;  %v483_v61 = vld [vmem:[%s3969_s7 + $0x3e8] sm:$0xf] }
  0x65   : > { %v485_v62 = vld [vmem:[%s3969_s7 + $0x3f0] sm:$0xf]  ;;  %v487_v63 = vld [vmem:[%s3969_s7 + $0x3f8] sm:$0xf]  ;;  %484 = vst [vmem:[%s3976_s8 + $0x1f4] sm:$0xf] %v483_v61 }
  0x66   : > { %486 = vst [vmem:[%s3976_s8 + $0x1f8] sm:$0xf] %v485_v62  ;;  %488 = vst [vmem:[%s3976_s8 + $0x1fc] sm:$0xf] %v487_v63  ;;  %v489_v0 = vld [vmem:[%s3969_s7 + $0x400] sm:$0xf] }
  0x67   : > { %v491_v1 = vld [vmem:[%s3969_s7 + $0x408] sm:$0xf]  ;;  %v493_v2 = vld [vmem:[%s3969_s7 + $0x410] sm:$0xf]  ;;  %490 = vst [vmem:[%s3976_s8 + $0x200] sm:$0xf] %v489_v0 }
  0x68   : > { %492 = vst [vmem:[%s3976_s8 + $0x204] sm:$0xf] %v491_v1  ;;  %494 = vst [vmem:[%s3976_s8 + $0x208] sm:$0xf] %v493_v2  ;;  %v495_v3 = vld [vmem:[%s3969_s7 + $0x418] sm:$0xf] }
  0x69   : > { %v497_v4 = vld [vmem:[%s3969_s7 + $0x420] sm:$0xf]  ;;  %v499_v5 = vld [vmem:[%s3969_s7 + $0x428] sm:$0xf]  ;;  %496 = vst [vmem:[%s3976_s8 + $0x20c] sm:$0xf] %v495_v3 }
  0x6a   : > { %498 = vst [vmem:[%s3976_s8 + $0x210] sm:$0xf] %v497_v4  ;;  %500 = vst [vmem:[%s3976_s8 + $0x214] sm:$0xf] %v499_v5  ;;  %v501_v6 = vld [vmem:[%s3969_s7 + $0x430] sm:$0xf] }
  0x6b   : > { %v503_v7 = vld [vmem:[%s3969_s7 + $0x438] sm:$0xf]  ;;  %v505_v8 = vld [vmem:[%s3969_s7 + $0x440] sm:$0xf]  ;;  %502 = vst [vmem:[%s3976_s8 + $0x218] sm:$0xf] %v501_v6 }
  0x6c   : > { %504 = vst [vmem:[%s3976_s8 + $0x21c] sm:$0xf] %v503_v7  ;;  %506 = vst [vmem:[%s3976_s8 + $0x220] sm:$0xf] %v505_v8  ;;  %v507_v9 = vld [vmem:[%s3969_s7 + $0x448] sm:$0xf] }
  0x6d   : > { %v509_v10 = vld [vmem:[%s3969_s7 + $0x450] sm:$0xf]  ;;  %v511_v11 = vld [vmem:[%s3969_s7 + $0x458] sm:$0xf]  ;;  %508 = vst [vmem:[%s3976_s8 + $0x224] sm:$0xf] %v507_v9 }
  0x6e   : > { %510 = vst [vmem:[%s3976_s8 + $0x228] sm:$0xf] %v509_v10  ;;  %512 = vst [vmem:[%s3976_s8 + $0x22c] sm:$0xf] %v511_v11  ;;  %v513_v12 = vld [vmem:[%s3969_s7 + $0x460] sm:$0xf] }
  0x6f   : > { %v515_v13 = vld [vmem:[%s3969_s7 + $0x468] sm:$0xf]  ;;  %v517_v14 = vld [vmem:[%s3969_s7 + $0x470] sm:$0xf]  ;;  %514 = vst [vmem:[%s3976_s8 + $0x230] sm:$0xf] %v513_v12 }
  0x70   : > { %516 = vst [vmem:[%s3976_s8 + $0x234] sm:$0xf] %v515_v13  ;;  %518 = vst [vmem:[%s3976_s8 + $0x238] sm:$0xf] %v517_v14  ;;  %v519_v15 = vld [vmem:[%s3969_s7 + $0x478] sm:$0xf] }
  0x71   : > { %v521_v16 = vld [vmem:[%s3969_s7 + $0x480] sm:$0xf]  ;;  %v523_v17 = vld [vmem:[%s3969_s7 + $0x488] sm:$0xf]  ;;  %520 = vst [vmem:[%s3976_s8 + $0x23c] sm:$0xf] %v519_v15 }
  0x72   : > { %522 = vst [vmem:[%s3976_s8 + $0x240] sm:$0xf] %v521_v16  ;;  %524 = vst [vmem:[%s3976_s8 + $0x244] sm:$0xf] %v523_v17  ;;  %v525_v18 = vld [vmem:[%s3969_s7 + $0x490] sm:$0xf] }
  0x73   : > { %v527_v19 = vld [vmem:[%s3969_s7 + $0x498] sm:$0xf]  ;;  %v529_v20 = vld [vmem:[%s3969_s7 + $0x4a0] sm:$0xf]  ;;  %526 = vst [vmem:[%s3976_s8 + $0x248] sm:$0xf] %v525_v18 }
  0x74   : > { %528 = vst [vmem:[%s3976_s8 + $0x24c] sm:$0xf] %v527_v19  ;;  %530 = vst [vmem:[%s3976_s8 + $0x250] sm:$0xf] %v529_v20  ;;  %v531_v21 = vld [vmem:[%s3969_s7 + $0x4a8] sm:$0xf] }
  0x75   : > { %v533_v22 = vld [vmem:[%s3969_s7 + $0x4b0] sm:$0xf]  ;;  %v535_v23 = vld [vmem:[%s3969_s7 + $0x4b8] sm:$0xf]  ;;  %532 = vst [vmem:[%s3976_s8 + $0x254] sm:$0xf] %v531_v21 }
  0x76   : > { %534 = vst [vmem:[%s3976_s8 + $0x258] sm:$0xf] %v533_v22  ;;  %536 = vst [vmem:[%s3976_s8 + $0x25c] sm:$0xf] %v535_v23  ;;  %v537_v24 = vld [vmem:[%s3969_s7 + $0x4c0] sm:$0xf] }
  0x77   : > { %v539_v25 = vld [vmem:[%s3969_s7 + $0x4c8] sm:$0xf]  ;;  %v541_v26 = vld [vmem:[%s3969_s7 + $0x4d0] sm:$0xf]  ;;  %538 = vst [vmem:[%s3976_s8 + $0x260] sm:$0xf] %v537_v24 }
  0x78   : > { %540 = vst [vmem:[%s3976_s8 + $0x264] sm:$0xf] %v539_v25  ;;  %542 = vst [vmem:[%s3976_s8 + $0x268] sm:$0xf] %v541_v26  ;;  %v543_v27 = vld [vmem:[%s3969_s7 + $0x4d8] sm:$0xf] }
  0x79   : > { %v545_v28 = vld [vmem:[%s3969_s7 + $0x4e0] sm:$0xf]  ;;  %v547_v29 = vld [vmem:[%s3969_s7 + $0x4e8] sm:$0xf]  ;;  %544 = vst [vmem:[%s3976_s8 + $0x26c] sm:$0xf] %v543_v27 }
  0x7a   : > { %546 = vst [vmem:[%s3976_s8 + $0x270] sm:$0xf] %v545_v28  ;;  %548 = vst [vmem:[%s3976_s8 + $0x274] sm:$0xf] %v547_v29  ;;  %v549_v30 = vld [vmem:[%s3969_s7 + $0x4f0] sm:$0xf] }
  0x7b   : > { %v551_v31 = vld [vmem:[%s3969_s7 + $0x4f8] sm:$0xf]  ;;  %v553_v32 = vld [vmem:[%s3969_s7 + $0x500] sm:$0xf]  ;;  %550 = vst [vmem:[%s3976_s8 + $0x278] sm:$0xf] %v549_v30 }
  0x7c   : > { %552 = vst [vmem:[%s3976_s8 + $0x27c] sm:$0xf] %v551_v31  ;;  %554 = vst [vmem:[%s3976_s8 + $0x280] sm:$0xf] %v553_v32  ;;  %v555_v33 = vld [vmem:[%s3969_s7 + $0x508] sm:$0xf] }
  0x7d   : > { %v557_v34 = vld [vmem:[%s3969_s7 + $0x510] sm:$0xf]  ;;  %v559_v35 = vld [vmem:[%s3969_s7 + $0x518] sm:$0xf]  ;;  %556 = vst [vmem:[%s3976_s8 + $0x284] sm:$0xf] %v555_v33 }
  0x7e   : > { %558 = vst [vmem:[%s3976_s8 + $0x288] sm:$0xf] %v557_v34  ;;  %560 = vst [vmem:[%s3976_s8 + $0x28c] sm:$0xf] %v559_v35  ;;  %v561_v36 = vld [vmem:[%s3969_s7 + $0x520] sm:$0xf] }
  0x7f   : > { %v563_v37 = vld [vmem:[%s3969_s7 + $0x528] sm:$0xf]  ;;  %v565_v38 = vld [vmem:[%s3969_s7 + $0x530] sm:$0xf]  ;;  %562 = vst [vmem:[%s3976_s8 + $0x290] sm:$0xf] %v561_v36 }
  0x80   : > { %564 = vst [vmem:[%s3976_s8 + $0x294] sm:$0xf] %v563_v37  ;;  %566 = vst [vmem:[%s3976_s8 + $0x298] sm:$0xf] %v565_v38  ;;  %v567_v39 = vld [vmem:[%s3969_s7 + $0x538] sm:$0xf] }
  0x81   : > { %v569_v40 = vld [vmem:[%s3969_s7 + $0x540] sm:$0xf]  ;;  %v571_v41 = vld [vmem:[%s3969_s7 + $0x548] sm:$0xf]  ;;  %568 = vst [vmem:[%s3976_s8 + $0x29c] sm:$0xf] %v567_v39 }
  0x82   : > { %570 = vst [vmem:[%s3976_s8 + $0x2a0] sm:$0xf] %v569_v40  ;;  %572 = vst [vmem:[%s3976_s8 + $0x2a4] sm:$0xf] %v571_v41  ;;  %v573_v42 = vld [vmem:[%s3969_s7 + $0x550] sm:$0xf] }
  0x83   : > { %v575_v43 = vld [vmem:[%s3969_s7 + $0x558] sm:$0xf]  ;;  %v577_v44 = vld [vmem:[%s3969_s7 + $0x560] sm:$0xf]  ;;  %574 = vst [vmem:[%s3976_s8 + $0x2a8] sm:$0xf] %v573_v42 }
  0x84   : > { %576 = vst [vmem:[%s3976_s8 + $0x2ac] sm:$0xf] %v575_v43  ;;  %578 = vst [vmem:[%s3976_s8 + $0x2b0] sm:$0xf] %v577_v44  ;;  %v579_v45 = vld [vmem:[%s3969_s7 + $0x568] sm:$0xf] }
  0x85   : > { %v581_v46 = vld [vmem:[%s3969_s7 + $0x570] sm:$0xf]  ;;  %v583_v47 = vld [vmem:[%s3969_s7 + $0x578] sm:$0xf]  ;;  %580 = vst [vmem:[%s3976_s8 + $0x2b4] sm:$0xf] %v579_v45 }
  0x86   : > { %582 = vst [vmem:[%s3976_s8 + $0x2b8] sm:$0xf] %v581_v46  ;;  %584 = vst [vmem:[%s3976_s8 + $0x2bc] sm:$0xf] %v583_v47  ;;  %v585_v48 = vld [vmem:[%s3969_s7 + $0x580] sm:$0xf] }
  0x87   : > { %v587_v49 = vld [vmem:[%s3969_s7 + $0x588] sm:$0xf]  ;;  %v589_v50 = vld [vmem:[%s3969_s7 + $0x590] sm:$0xf]  ;;  %586 = vst [vmem:[%s3976_s8 + $0x2c0] sm:$0xf] %v585_v48 }
  0x88   : > { %588 = vst [vmem:[%s3976_s8 + $0x2c4] sm:$0xf] %v587_v49  ;;  %590 = vst [vmem:[%s3976_s8 + $0x2c8] sm:$0xf] %v589_v50  ;;  %v591_v51 = vld [vmem:[%s3969_s7 + $0x598] sm:$0xf] }
  0x89   : > { %v593_v52 = vld [vmem:[%s3969_s7 + $0x5a0] sm:$0xf]  ;;  %v595_v53 = vld [vmem:[%s3969_s7 + $0x5a8] sm:$0xf]  ;;  %592 = vst [vmem:[%s3976_s8 + $0x2cc] sm:$0xf] %v591_v51 }
  0x8a   : > { %594 = vst [vmem:[%s3976_s8 + $0x2d0] sm:$0xf] %v593_v52  ;;  %596 = vst [vmem:[%s3976_s8 + $0x2d4] sm:$0xf] %v595_v53  ;;  %v597_v54 = vld [vmem:[%s3969_s7 + $0x5b0] sm:$0xf] }
  0x8b   : > { %v599_v55 = vld [vmem:[%s3969_s7 + $0x5b8] sm:$0xf]  ;;  %v601_v56 = vld [vmem:[%s3969_s7 + $0x5c0] sm:$0xf]  ;;  %598 = vst [vmem:[%s3976_s8 + $0x2d8] sm:$0xf] %v597_v54 }
  0x8c   : > { %600 = vst [vmem:[%s3976_s8 + $0x2dc] sm:$0xf] %v599_v55  ;;  %602 = vst [vmem:[%s3976_s8 + $0x2e0] sm:$0xf] %v601_v56  ;;  %v603_v57 = vld [vmem:[%s3969_s7 + $0x5c8] sm:$0xf] }
  0x8d   : > { %v605_v58 = vld [vmem:[%s3969_s7 + $0x5d0] sm:$0xf]  ;;  %v607_v59 = vld [vmem:[%s3969_s7 + $0x5d8] sm:$0xf]  ;;  %604 = vst [vmem:[%s3976_s8 + $0x2e4] sm:$0xf] %v603_v57 }
  0x8e   : > { %606 = vst [vmem:[%s3976_s8 + $0x2e8] sm:$0xf] %v605_v58  ;;  %608 = vst [vmem:[%s3976_s8 + $0x2ec] sm:$0xf] %v607_v59  ;;  %v609_v60 = vld [vmem:[%s3969_s7 + $0x5e0] sm:$0xf] }
  0x8f   : > { %v611_v61 = vld [vmem:[%s3969_s7 + $0x5e8] sm:$0xf]  ;;  %v613_v62 = vld [vmem:[%s3969_s7 + $0x5f0] sm:$0xf]  ;;  %610 = vst [vmem:[%s3976_s8 + $0x2f0] sm:$0xf] %v609_v60 }
  0x90   : > { %612 = vst [vmem:[%s3976_s8 + $0x2f4] sm:$0xf] %v611_v61  ;;  %614 = vst [vmem:[%s3976_s8 + $0x2f8] sm:$0xf] %v613_v62  ;;  %v615_v63 = vld [vmem:[%s3969_s7 + $0x5f8] sm:$0xf] }
  0x91   : > { %v617_v0 = vld [vmem:[%s3969_s7 + $0x600] sm:$0xf]  ;;  %v619_v1 = vld [vmem:[%s3969_s7 + $0x608] sm:$0xf]  ;;  %616 = vst [vmem:[%s3976_s8 + $0x2fc] sm:$0xf] %v615_v63 }
  0x92   : > { %618 = vst [vmem:[%s3976_s8 + $0x300] sm:$0xf] %v617_v0  ;;  %620 = vst [vmem:[%s3976_s8 + $0x304] sm:$0xf] %v619_v1  ;;  %v621_v2 = vld [vmem:[%s3969_s7 + $0x610] sm:$0xf] }
  0x93   : > { %v623_v3 = vld [vmem:[%s3969_s7 + $0x618] sm:$0xf]  ;;  %v625_v4 = vld [vmem:[%s3969_s7 + $0x620] sm:$0xf]  ;;  %622 = vst [vmem:[%s3976_s8 + $0x308] sm:$0xf] %v621_v2 }
  0x94   : > { %624 = vst [vmem:[%s3976_s8 + $0x30c] sm:$0xf] %v623_v3  ;;  %626 = vst [vmem:[%s3976_s8 + $0x310] sm:$0xf] %v625_v4  ;;  %v627_v5 = vld [vmem:[%s3969_s7 + $0x628] sm:$0xf] }
  0x95   : > { %v629_v6 = vld [vmem:[%s3969_s7 + $0x630] sm:$0xf]  ;;  %v631_v7 = vld [vmem:[%s3969_s7 + $0x638] sm:$0xf]  ;;  %628 = vst [vmem:[%s3976_s8 + $0x314] sm:$0xf] %v627_v5 }
  0x96   : > { %630 = vst [vmem:[%s3976_s8 + $0x318] sm:$0xf] %v629_v6  ;;  %632 = vst [vmem:[%s3976_s8 + $0x31c] sm:$0xf] %v631_v7  ;;  %v633_v8 = vld [vmem:[%s3969_s7 + $0x640] sm:$0xf] }
  0x97   : > { %v635_v9 = vld [vmem:[%s3969_s7 + $0x648] sm:$0xf]  ;;  %v637_v10 = vld [vmem:[%s3969_s7 + $0x650] sm:$0xf]  ;;  %634 = vst [vmem:[%s3976_s8 + $0x320] sm:$0xf] %v633_v8 }
  0x98   : > { %636 = vst [vmem:[%s3976_s8 + $0x324] sm:$0xf] %v635_v9  ;;  %638 = vst [vmem:[%s3976_s8 + $0x328] sm:$0xf] %v637_v10  ;;  %v639_v11 = vld [vmem:[%s3969_s7 + $0x658] sm:$0xf] }
  0x99   : > { %v641_v12 = vld [vmem:[%s3969_s7 + $0x660] sm:$0xf]  ;;  %v643_v13 = vld [vmem:[%s3969_s7 + $0x668] sm:$0xf]  ;;  %640 = vst [vmem:[%s3976_s8 + $0x32c] sm:$0xf] %v639_v11 }
  0x9a   : > { %642 = vst [vmem:[%s3976_s8 + $0x330] sm:$0xf] %v641_v12  ;;  %644 = vst [vmem:[%s3976_s8 + $0x334] sm:$0xf] %v643_v13  ;;  %v645_v14 = vld [vmem:[%s3969_s7 + $0x670] sm:$0xf] }
  0x9b   : > { %v647_v15 = vld [vmem:[%s3969_s7 + $0x678] sm:$0xf]  ;;  %v649_v16 = vld [vmem:[%s3969_s7 + $0x680] sm:$0xf]  ;;  %646 = vst [vmem:[%s3976_s8 + $0x338] sm:$0xf] %v645_v14 }
  0x9c   : > { %648 = vst [vmem:[%s3976_s8 + $0x33c] sm:$0xf] %v647_v15  ;;  %650 = vst [vmem:[%s3976_s8 + $0x340] sm:$0xf] %v649_v16  ;;  %v651_v17 = vld [vmem:[%s3969_s7 + $0x688] sm:$0xf] }
  0x9d   : > { %v653_v18 = vld [vmem:[%s3969_s7 + $0x690] sm:$0xf]  ;;  %v655_v19 = vld [vmem:[%s3969_s7 + $0x698] sm:$0xf]  ;;  %652 = vst [vmem:[%s3976_s8 + $0x344] sm:$0xf] %v651_v17 }
  0x9e   : > { %654 = vst [vmem:[%s3976_s8 + $0x348] sm:$0xf] %v653_v18  ;;  %656 = vst [vmem:[%s3976_s8 + $0x34c] sm:$0xf] %v655_v19  ;;  %v657_v20 = vld [vmem:[%s3969_s7 + $0x6a0] sm:$0xf] }
  0x9f   : > { %v659_v21 = vld [vmem:[%s3969_s7 + $0x6a8] sm:$0xf]  ;;  %v661_v22 = vld [vmem:[%s3969_s7 + $0x6b0] sm:$0xf]  ;;  %658 = vst [vmem:[%s3976_s8 + $0x350] sm:$0xf] %v657_v20 }
  0xa0   : > { %660 = vst [vmem:[%s3976_s8 + $0x354] sm:$0xf] %v659_v21  ;;  %662 = vst [vmem:[%s3976_s8 + $0x358] sm:$0xf] %v661_v22  ;;  %v663_v23 = vld [vmem:[%s3969_s7 + $0x6b8] sm:$0xf] }
  0xa1   : > { %v665_v24 = vld [vmem:[%s3969_s7 + $0x6c0] sm:$0xf]  ;;  %v667_v25 = vld [vmem:[%s3969_s7 + $0x6c8] sm:$0xf]  ;;  %664 = vst [vmem:[%s3976_s8 + $0x35c] sm:$0xf] %v663_v23 }
  0xa2   : > { %666 = vst [vmem:[%s3976_s8 + $0x360] sm:$0xf] %v665_v24  ;;  %668 = vst [vmem:[%s3976_s8 + $0x364] sm:$0xf] %v667_v25  ;;  %v669_v26 = vld [vmem:[%s3969_s7 + $0x6d0] sm:$0xf] }
  0xa3   : > { %v671_v27 = vld [vmem:[%s3969_s7 + $0x6d8] sm:$0xf]  ;;  %v673_v28 = vld [vmem:[%s3969_s7 + $0x6e0] sm:$0xf]  ;;  %670 = vst [vmem:[%s3976_s8 + $0x368] sm:$0xf] %v669_v26 }
  0xa4   : > { %672 = vst [vmem:[%s3976_s8 + $0x36c] sm:$0xf] %v671_v27  ;;  %674 = vst [vmem:[%s3976_s8 + $0x370] sm:$0xf] %v673_v28  ;;  %v675_v29 = vld [vmem:[%s3969_s7 + $0x6e8] sm:$0xf] }
  0xa5   : > { %v677_v30 = vld [vmem:[%s3969_s7 + $0x6f0] sm:$0xf]  ;;  %v679_v31 = vld [vmem:[%s3969_s7 + $0x6f8] sm:$0xf]  ;;  %676 = vst [vmem:[%s3976_s8 + $0x374] sm:$0xf] %v675_v29 }
  0xa6   : > { %678 = vst [vmem:[%s3976_s8 + $0x378] sm:$0xf] %v677_v30  ;;  %680 = vst [vmem:[%s3976_s8 + $0x37c] sm:$0xf] %v679_v31  ;;  %v681_v32 = vld [vmem:[%s3969_s7 + $0x700] sm:$0xf] }
  0xa7   : > { %v683_v33 = vld [vmem:[%s3969_s7 + $0x708] sm:$0xf]  ;;  %v685_v34 = vld [vmem:[%s3969_s7 + $0x710] sm:$0xf]  ;;  %682 = vst [vmem:[%s3976_s8 + $0x380] sm:$0xf] %v681_v32 }
  0xa8   : > { %684 = vst [vmem:[%s3976_s8 + $0x384] sm:$0xf] %v683_v33  ;;  %686 = vst [vmem:[%s3976_s8 + $0x388] sm:$0xf] %v685_v34  ;;  %v687_v35 = vld [vmem:[%s3969_s7 + $0x718] sm:$0xf] }
  0xa9   : > { %v689_v36 = vld [vmem:[%s3969_s7 + $0x720] sm:$0xf]  ;;  %v691_v37 = vld [vmem:[%s3969_s7 + $0x728] sm:$0xf]  ;;  %688 = vst [vmem:[%s3976_s8 + $0x38c] sm:$0xf] %v687_v35 }
  0xaa   : > { %690 = vst [vmem:[%s3976_s8 + $0x390] sm:$0xf] %v689_v36  ;;  %692 = vst [vmem:[%s3976_s8 + $0x394] sm:$0xf] %v691_v37  ;;  %v693_v38 = vld [vmem:[%s3969_s7 + $0x730] sm:$0xf] }
  0xab   : > { %v695_v39 = vld [vmem:[%s3969_s7 + $0x738] sm:$0xf]  ;;  %v697_v40 = vld [vmem:[%s3969_s7 + $0x740] sm:$0xf]  ;;  %694 = vst [vmem:[%s3976_s8 + $0x398] sm:$0xf] %v693_v38 }
  0xac   : > { %696 = vst [vmem:[%s3976_s8 + $0x39c] sm:$0xf] %v695_v39  ;;  %698 = vst [vmem:[%s3976_s8 + $0x3a0] sm:$0xf] %v697_v40  ;;  %v699_v41 = vld [vmem:[%s3969_s7 + $0x748] sm:$0xf] }
  0xad   : > { %v701_v42 = vld [vmem:[%s3969_s7 + $0x750] sm:$0xf]  ;;  %v703_v43 = vld [vmem:[%s3969_s7 + $0x758] sm:$0xf]  ;;  %700 = vst [vmem:[%s3976_s8 + $0x3a4] sm:$0xf] %v699_v41 }
  0xae   : > { %702 = vst [vmem:[%s3976_s8 + $0x3a8] sm:$0xf] %v701_v42  ;;  %704 = vst [vmem:[%s3976_s8 + $0x3ac] sm:$0xf] %v703_v43  ;;  %v705_v44 = vld [vmem:[%s3969_s7 + $0x760] sm:$0xf] }
  0xaf   : > { %v707_v45 = vld [vmem:[%s3969_s7 + $0x768] sm:$0xf]  ;;  %v709_v46 = vld [vmem:[%s3969_s7 + $0x770] sm:$0xf]  ;;  %706 = vst [vmem:[%s3976_s8 + $0x3b0] sm:$0xf] %v705_v44 }
  0xb0   : > { %708 = vst [vmem:[%s3976_s8 + $0x3b4] sm:$0xf] %v707_v45  ;;  %710 = vst [vmem:[%s3976_s8 + $0x3b8] sm:$0xf] %v709_v46  ;;  %v711_v47 = vld [vmem:[%s3969_s7 + $0x778] sm:$0xf] }
  0xb1   : > { %v713_v48 = vld [vmem:[%s3969_s7 + $0x780] sm:$0xf]  ;;  %v715_v49 = vld [vmem:[%s3969_s7 + $0x788] sm:$0xf]  ;;  %712 = vst [vmem:[%s3976_s8 + $0x3bc] sm:$0xf] %v711_v47 }
  0xb2   : > { %714 = vst [vmem:[%s3976_s8 + $0x3c0] sm:$0xf] %v713_v48  ;;  %716 = vst [vmem:[%s3976_s8 + $0x3c4] sm:$0xf] %v715_v49  ;;  %v717_v50 = vld [vmem:[%s3969_s7 + $0x790] sm:$0xf] }
  0xb3   : > { %v719_v51 = vld [vmem:[%s3969_s7 + $0x798] sm:$0xf]  ;;  %v721_v52 = vld [vmem:[%s3969_s7 + $0x7a0] sm:$0xf]  ;;  %718 = vst [vmem:[%s3976_s8 + $0x3c8] sm:$0xf] %v717_v50 }
  0xb4   : > { %720 = vst [vmem:[%s3976_s8 + $0x3cc] sm:$0xf] %v719_v51  ;;  %722 = vst [vmem:[%s3976_s8 + $0x3d0] sm:$0xf] %v721_v52  ;;  %v723_v53 = vld [vmem:[%s3969_s7 + $0x7a8] sm:$0xf] }
  0xb5   : > { %v725_v54 = vld [vmem:[%s3969_s7 + $0x7b0] sm:$0xf]  ;;  %v727_v55 = vld [vmem:[%s3969_s7 + $0x7b8] sm:$0xf]  ;;  %724 = vst [vmem:[%s3976_s8 + $0x3d4] sm:$0xf] %v723_v53 }
  0xb6   : > { %726 = vst [vmem:[%s3976_s8 + $0x3d8] sm:$0xf] %v725_v54  ;;  %728 = vst [vmem:[%s3976_s8 + $0x3dc] sm:$0xf] %v727_v55  ;;  %v729_v56 = vld [vmem:[%s3969_s7 + $0x7c0] sm:$0xf] }
  0xb7   : > { %v731_v57 = vld [vmem:[%s3969_s7 + $0x7c8] sm:$0xf]  ;;  %v733_v58 = vld [vmem:[%s3969_s7 + $0x7d0] sm:$0xf]  ;;  %730 = vst [vmem:[%s3976_s8 + $0x3e0] sm:$0xf] %v729_v56 }
  0xb8   : > { %732 = vst [vmem:[%s3976_s8 + $0x3e4] sm:$0xf] %v731_v57  ;;  %734 = vst [vmem:[%s3976_s8 + $0x3e8] sm:$0xf] %v733_v58  ;;  %v735_v59 = vld [vmem:[%s3969_s7 + $0x7d8] sm:$0xf] }
  0xb9   : > { %v737_v60 = vld [vmem:[%s3969_s7 + $0x7e0] sm:$0xf]  ;;  %v739_v61 = vld [vmem:[%s3969_s7 + $0x7e8] sm:$0xf]  ;;  %736 = vst [vmem:[%s3976_s8 + $0x3ec] sm:$0xf] %v735_v59 }
  0xba   : > { %738 = vst [vmem:[%s3976_s8 + $0x3f0] sm:$0xf] %v737_v60  ;;  %740 = vst [vmem:[%s3976_s8 + $0x3f4] sm:$0xf] %v739_v61  ;;  %v741_v62 = vld [vmem:[%s3969_s7 + $0x7f0] sm:$0xf] }
  0xbb   : > { %v743_v63 = vld [vmem:[%s3969_s7 + $0x7f8] sm:$0xf]  ;;  %v745_v0 = vld [vmem:[%s3969_s7 + $0x800] sm:$0xf]  ;;  %742 = vst [vmem:[%s3976_s8 + $0x3f8] sm:$0xf] %v741_v62 }
  0xbc   : > { %744 = vst [vmem:[%s3976_s8 + $0x3fc] sm:$0xf] %v743_v63  ;;  %746 = vst [vmem:[%s3976_s8 + $0x400] sm:$0xf] %v745_v0  ;;  %v747_v1 = vld [vmem:[%s3969_s7 + $0x808] sm:$0xf] }
  0xbd   : > { %v749_v2 = vld [vmem:[%s3969_s7 + $0x810] sm:$0xf]  ;;  %v751_v3 = vld [vmem:[%s3969_s7 + $0x818] sm:$0xf]  ;;  %748 = vst [vmem:[%s3976_s8 + $0x404] sm:$0xf] %v747_v1 }
  0xbe   : > { %750 = vst [vmem:[%s3976_s8 + $0x408] sm:$0xf] %v749_v2  ;;  %752 = vst [vmem:[%s3976_s8 + $0x40c] sm:$0xf] %v751_v3  ;;  %v753_v4 = vld [vmem:[%s3969_s7 + $0x820] sm:$0xf] }
  0xbf   : > { %v755_v5 = vld [vmem:[%s3969_s7 + $0x828] sm:$0xf]  ;;  %v757_v6 = vld [vmem:[%s3969_s7 + $0x830] sm:$0xf]  ;;  %754 = vst [vmem:[%s3976_s8 + $0x410] sm:$0xf] %v753_v4 }
  0xc0   : > { %756 = vst [vmem:[%s3976_s8 + $0x414] sm:$0xf] %v755_v5  ;;  %758 = vst [vmem:[%s3976_s8 + $0x418] sm:$0xf] %v757_v6  ;;  %v759_v7 = vld [vmem:[%s3969_s7 + $0x838] sm:$0xf] }
  0xc1   : > { %v761_v8 = vld [vmem:[%s3969_s7 + $0x840] sm:$0xf]  ;;  %v763_v9 = vld [vmem:[%s3969_s7 + $0x848] sm:$0xf]  ;;  %760 = vst [vmem:[%s3976_s8 + $0x41c] sm:$0xf] %v759_v7 }
  0xc2   : > { %762 = vst [vmem:[%s3976_s8 + $0x420] sm:$0xf] %v761_v8  ;;  %764 = vst [vmem:[%s3976_s8 + $0x424] sm:$0xf] %v763_v9  ;;  %v765_v10 = vld [vmem:[%s3969_s7 + $0x850] sm:$0xf] }
  0xc3   : > { %v767_v11 = vld [vmem:[%s3969_s7 + $0x858] sm:$0xf]  ;;  %v769_v12 = vld [vmem:[%s3969_s7 + $0x860] sm:$0xf]  ;;  %766 = vst [vmem:[%s3976_s8 + $0x428] sm:$0xf] %v765_v10 }
  0xc4   : > { %768 = vst [vmem:[%s3976_s8 + $0x42c] sm:$0xf] %v767_v11  ;;  %770 = vst [vmem:[%s3976_s8 + $0x430] sm:$0xf] %v769_v12  ;;  %v771_v13 = vld [vmem:[%s3969_s7 + $0x868] sm:$0xf] }
  0xc5   : > { %v773_v14 = vld [vmem:[%s3969_s7 + $0x870] sm:$0xf]  ;;  %v775_v15 = vld [vmem:[%s3969_s7 + $0x878] sm:$0xf]  ;;  %772 = vst [vmem:[%s3976_s8 + $0x434] sm:$0xf] %v771_v13 }
  0xc6   : > { %774 = vst [vmem:[%s3976_s8 + $0x438] sm:$0xf] %v773_v14  ;;  %776 = vst [vmem:[%s3976_s8 + $0x43c] sm:$0xf] %v775_v15  ;;  %v777_v16 = vld [vmem:[%s3969_s7 + $0x880] sm:$0xf] }
  0xc7   : > { %v779_v17 = vld [vmem:[%s3969_s7 + $0x888] sm:$0xf]  ;;  %v781_v18 = vld [vmem:[%s3969_s7 + $0x890] sm:$0xf]  ;;  %778 = vst [vmem:[%s3976_s8 + $0x440] sm:$0xf] %v777_v16 }
  0xc8   : > { %780 = vst [vmem:[%s3976_s8 + $0x444] sm:$0xf] %v779_v17  ;;  %782 = vst [vmem:[%s3976_s8 + $0x448] sm:$0xf] %v781_v18  ;;  %v783_v19 = vld [vmem:[%s3969_s7 + $0x898] sm:$0xf] }
  0xc9   : > { %v785_v20 = vld [vmem:[%s3969_s7 + $0x8a0] sm:$0xf]  ;;  %v787_v21 = vld [vmem:[%s3969_s7 + $0x8a8] sm:$0xf]  ;;  %784 = vst [vmem:[%s3976_s8 + $0x44c] sm:$0xf] %v783_v19 }
  0xca   : > { %786 = vst [vmem:[%s3976_s8 + $0x450] sm:$0xf] %v785_v20  ;;  %788 = vst [vmem:[%s3976_s8 + $0x454] sm:$0xf] %v787_v21  ;;  %v789_v22 = vld [vmem:[%s3969_s7 + $0x8b0] sm:$0xf] }
  0xcb   : > { %v791_v23 = vld [vmem:[%s3969_s7 + $0x8b8] sm:$0xf]  ;;  %v793_v24 = vld [vmem:[%s3969_s7 + $0x8c0] sm:$0xf]  ;;  %790 = vst [vmem:[%s3976_s8 + $0x458] sm:$0xf] %v789_v22 }
  0xcc   : > { %792 = vst [vmem:[%s3976_s8 + $0x45c] sm:$0xf] %v791_v23  ;;  %794 = vst [vmem:[%s3976_s8 + $0x460] sm:$0xf] %v793_v24  ;;  %v795_v25 = vld [vmem:[%s3969_s7 + $0x8c8] sm:$0xf] }
  0xcd   : > { %v797_v26 = vld [vmem:[%s3969_s7 + $0x8d0] sm:$0xf]  ;;  %v799_v27 = vld [vmem:[%s3969_s7 + $0x8d8] sm:$0xf]  ;;  %796 = vst [vmem:[%s3976_s8 + $0x464] sm:$0xf] %v795_v25 }
  0xce   : > { %798 = vst [vmem:[%s3976_s8 + $0x468] sm:$0xf] %v797_v26  ;;  %800 = vst [vmem:[%s3976_s8 + $0x46c] sm:$0xf] %v799_v27  ;;  %v801_v28 = vld [vmem:[%s3969_s7 + $0x8e0] sm:$0xf] }
  0xcf   : > { %v803_v29 = vld [vmem:[%s3969_s7 + $0x8e8] sm:$0xf]  ;;  %v805_v30 = vld [vmem:[%s3969_s7 + $0x8f0] sm:$0xf]  ;;  %802 = vst [vmem:[%s3976_s8 + $0x470] sm:$0xf] %v801_v28 }
  0xd0   : > { %804 = vst [vmem:[%s3976_s8 + $0x474] sm:$0xf] %v803_v29  ;;  %806 = vst [vmem:[%s3976_s8 + $0x478] sm:$0xf] %v805_v30  ;;  %v807_v31 = vld [vmem:[%s3969_s7 + $0x8f8] sm:$0xf] }
  0xd1   : > { %808 = vst [vmem:[%s3976_s8 + $0x47c] sm:$0xf] %v807_v31 }
  0xd2 PF: > { %p3318_p6 = scmp.ge.s32.totalorder %s3893_s22, 1  ;;  %p1428_p7 = scmp.lt.s32.totalorder %s3893_s22, 3 }
  0xd4   : > { %p1429_p8 = pnand %p3318_p6, %p1428_p7 }
  0xd5   : > { %s1435_s9 = sand.u32 (!%p1429_p8), 1, %s3877_s18   ;;  %v1804_v32 = vlaneseq (!%p1429_p8)  ;;  %v3895_v33 = vmov (!%p1429_p8), 1966171168   ;;  %v1506_v36 = vld [vmem:[%s4772_s0] sm:$0xff] (!%p1429_p8)  ;;  %p1485_p9 = scmp.lt.s32.totalorder (!%p1429_p8), %s3885_s20, 1 }
  0xd6   : > { %1432 = sbr.rel (%p1429_p8) target bundleno = 609 (0x261), region = 77  ;;  %v1802_v34 = vunpack.c.l.s4 (!%p1429_p8), %v3895_v33  ;;  %v1800_v63 = vcombine.high (!%p1429_p8), %v1506_v36, %v1506_v36 }
  0xd7   : > { %s3667_s10 = smul.u32 (!%p1429_p8), 1152, %s1435_s9  ;;  %v1805_v35 = vshrl.u32 (!%p1429_p8), %v1804_v32, 7 }
  0xd8   : > { %v1803_v37 = vunpack.c.0.s8 (!%p1429_p8), %v1802_v34 }
  0xd9   : > { %s4555_s13 = scalar_lea.vmem (!%p1429_p8), [#allocation2], %s3667_s10 }
  0xda   : > { %v3709_v38 = vld [vmem:[%s4555_s13 + $0x40] sm:$0xff] (!%p1429_p8)   ;;  %v4559_v40 = vsub.s32 (!%p1429_p8), %v1803_v37, %v1805_v35  ;;  %v3713_v44 = vld [vmem:[%s4555_s13 + $0x48] sm:$0xff] (!%p1429_p8)   ;;  %v3717_v50 = vld [vmem:[%s4555_s13 + $0x50] sm:$0xff] (!%p1429_p8)  }
  0xdb   : > { %v3710_v39 = vld [vmem:[%s4555_s13 + $0xc0] sm:$0xff] (!%p1429_p8)   ;;  %3468 = vmatprep.subr.bf16.mxu0 (!%p1429_p8), %v3709_v38  ;;  %v3714_v45 = vld [vmem:[%s4555_s13 + $0xc8] sm:$0xff] (!%p1429_p8)   ;;  %v3718_v51 = vld [vmem:[%s4555_s13 + $0xd0] sm:$0xff] (!%p1429_p8)  }
  0xdc   : > { %v3711_v41 = vld [vmem:[%s4555_s13] sm:$0xff] (!%p1429_p8)   ;;  %3490 = vmatprep.subr.bf16.mxu1 (!%p1429_p8), %v3710_v39  ;;  %v1807_v43 = vrot.slane (!%p1429_p8), %v1506_v36, %v4559_v40  ;;  %v3715_v47 = vld [vmem:[%s4555_s13 + $0x8] sm:$0xff] (!%p1429_p8)   ;;  %v3719_v53 = vld [vmem:[%s4555_s13 + $0x10] sm:$0xff] (!%p1429_p8)   ;;  %v4586_v4 = vrot.slane (!%p1429_p8), %v1800_v63, %v4559_v40 }
  0xdd   : > { %v3712_v42 = vld [vmem:[%s4555_s13 + $0x80] sm:$0xff]   ;;  %3469 = vmatpush3.bf16.msra.mxu0 %v3711_v41  ;;  %v3716_v48 = vld [vmem:[%s4555_s13 + $0x88] sm:$0xff]   ;;  %v3720_v54 = vld [vmem:[%s4555_s13 + $0x90] sm:$0xff]   ;;  %s4785_s20 = smov (!%p1485_p9, %s3885_s20), 1 }
  0xde   : > { %3491 = vmatpush3.bf16.msra.mxu1 %v3712_v42  ;;  %v1815_v46 = vcombine.high %v1807_v43, %v1807_v43  ;;  %3470 = vmatprep.subr.bf16.mxu0 %v3713_v44  ;;  %v3721_v55 = vld [vmem:[%s4555_s13 + $0x58] sm:$0xff]   ;;  %v3725_v59 = vld [vmem:[%s4555_s13 + $0x60] sm:$0xff]   ;;  %v3729_v0 = vld [vmem:[%s4555_s13 + $0x68] sm:$0xff]   ;;  %v1816_v9 = vcombine.high %v4586_v4, %v4586_v4  ;;  %v1823_v11 = vrot.slane %v1807_v43, %v4559_v40  ;;  %s1487_s25 = scalar_lea.vmem %s4774_s2, %s4785_s20  ;;  %s1497_s29 = scalar_lea.vmem %s4776_s4, %s4785_s20 }
  0xdf   : > { %3492 = vmatprep.subr.bf16.mxu1 %v3714_v45  ;;  %v3722_v56 = vld [vmem:[%s4555_s13 + $0xd8] sm:$0xff]   ;;  %v3726_v60 = vld [vmem:[%s4555_s13 + $0xe0] sm:$0xff]   ;;  %v3730_v1 = vld [vmem:[%s4555_s13 + $0xe8] sm:$0xff]   ;;  %s1490_s7 = scalar_lea.vmem %s4775_s3, %s4785_s20  ;;  %s1504_s10 = scalar_lea.vmem %s4777_s5, %s4785_s20 }
  0xe0   : > { %v1837_v49 = vrot.slane %v1815_v46, %v4559_v40  ;;  %v3723_v57 = vld [vmem:[%s4555_s13 + $0x18] sm:$0xff]   ;;  %v3727_v61 = vld [vmem:[%s4555_s13 + $0x20] sm:$0xff]   ;;  %v3731_v2 = vld [vmem:[%s4555_s13 + $0x28] sm:$0xff]   ;;  %v1844_v15 = vrot.slane %v1816_v9, %v4559_v40  ;;  %v1845_v16 = vcombine.high %v1823_v11, %v1823_v11 }
  0xe1   : > { %3471 = vmatpush3.bf16.msra.mxu0 %v3715_v47  ;;  %v3724_v58 = vld [vmem:[%s4555_s13 + $0x98] sm:$0xff]   ;;  %v3728_v62 = vld [vmem:[%s4555_s13 + $0xa0] sm:$0xff]   ;;  %v3732_v3 = vld [vmem:[%s4555_s13 + $0xa8] sm:$0xff]  }
  0xe2   : > { %3493 = vmatpush3.bf16.msra.mxu1 %v3716_v48  ;;  %2834 = vmatprep.mubr.bf16.mxu0 %v1837_v49  ;;  %v1847_v52 = vcombine.high %v1837_v49, %v1837_v49  ;;  %v3733_v5 = vld [vmem:[%s4555_s13 + $0x70] sm:$0xff]   ;;  %v3737_v10 = vld [vmem:[%s4555_s13 + $0x78] sm:$0xff]   ;;  %v3742_v17 = vld [vmem:[%s4555_s13 + $0x140] sm:$0xff]   ;;  %v1848_v21 = vcombine.high %v1844_v15, %v1844_v15 }
  0xe3   : > { %3472 = vmatprep.subr.bf16.mxu0 %v3717_v50  ;;  %3494 = vmatprep.subr.bf16.mxu1 %v3718_v51  ;;  %v3734_v6 = vld [vmem:[%s4555_s13 + $0xf0] sm:$0xff]   ;;  %v3738_v12 = vld [vmem:[%s4555_s13 + $0xf8] sm:$0xff]   ;;  %v3743_v18 = vld [vmem:[%s4555_s13 + $0x100] sm:$0xff]  }
  0xe4   : > { %2874 = vmatprep.mubr.bf16.mxu1 %v1847_v52  ;;  %v3735_v7 = vld [vmem:[%s4555_s13 + $0x30] sm:$0xff]   ;;  %v3739_v13 = vld [vmem:[%s4555_s13 + $0x38] sm:$0xff]   ;;  %v3744_v19 = vld [vmem:[%s4555_s13 + $0x1c0] sm:$0xff]   ;;  %v1830_v52 = vrot.slane %v4586_v4, %v4559_v40 }
  0xe5   : > { %3473 = vmatpush3.bf16.msra.mxu0 %v3719_v53  ;;  %v3736_v8 = vld [vmem:[%s4555_s13 + $0xb0] sm:$0xff]   ;;  %v3740_v14 = vld [vmem:[%s4555_s13 + $0xb8] sm:$0xff]   ;;  %v3745_v20 = vld [vmem:[%s4555_s13 + $0x180] sm:$0xff]  }
  0xe6   : > { %3495 = vmatpush3.bf16.msra.mxu1 %v3720_v54  ;;  %3474 = vmatprep.subr.bf16.mxu0 %v3721_v55  ;;  %v3746_v22 = vld [vmem:[%s4555_s13 + $0x148] sm:$0xff]   ;;  %v3750_v26 = vld [vmem:[%s4555_s13 + $0x150] sm:$0xff]   ;;  %v3754_v30 = vld [vmem:[%s4555_s13 + $0x158] sm:$0xff]  }
  0xe7   : > { %3496 = vmatprep.subr.bf16.mxu1 %v3722_v56  ;;  %v3747_v23 = vld [vmem:[%s4555_s13 + $0x108] sm:$0xff]   ;;  %v3751_v27 = vld [vmem:[%s4555_s13 + $0x110] sm:$0xff]   ;;  %v3755_v31 = vld [vmem:[%s4555_s13 + $0x118] sm:$0xff]  }
  0xe8   : > { %v3748_v24 = vld [vmem:[%s4555_s13 + $0x1c8] sm:$0xff]   ;;  %v3752_v28 = vld [vmem:[%s4555_s13 + $0x1d0] sm:$0xff]   ;;  %v3756_v32 = vld [vmem:[%s4555_s13 + $0x1d8] sm:$0xff]  }
  0xe9   : > { %3475 = vmatpush3.bf16.msra.mxu0 %v3723_v57  ;;  %v3749_v25 = vld [vmem:[%s4555_s13 + $0x188] sm:$0xff]   ;;  %v3753_v29 = vld [vmem:[%s4555_s13 + $0x190] sm:$0xff]   ;;  %v3757_v33 = vld [vmem:[%s4555_s13 + $0x198] sm:$0xff]  }
  0xea   : > { %3497 = vmatpush3.bf16.msra.mxu1 %v3724_v58  ;;  %3476 = vmatprep.subr.bf16.mxu0 %v3725_v59  ;;  %v3758_v34 = vld [vmem:[%s4555_s13 + $0x160] sm:$0xff]   ;;  %v4622_v37 = vld [vmem:[%s4772_s0 + $0x8] sm:$0xff]  ;;  %v3766_v45 = vld [vmem:[%s4555_s13 + $0x170] sm:$0xff]   ;;  %v1846_v58 = vcombine.high %v1830_v52, %v1830_v52 }
  0xeb   : > { %3498 = vmatprep.subr.bf16.mxu1 %v3726_v60  ;;  %v3759_v35 = vld [vmem:[%s4555_s13 + $0x120] sm:$0xff]   ;;  %v3762_v39 = vld [vmem:[%s4555_s13 + $0x168] sm:$0xff]   ;;  %v4631_v44 = vrot.slane %v4622_v37, %v4559_v40  ;;  %v3767_v46 = vld [vmem:[%s4555_s13 + $0x130] sm:$0xff]  }
  0xec   : > { %v3760_v36 = vld [vmem:[%s4555_s13 + $0x1e0] sm:$0xff]   ;;  %v3763_v41 = vld [vmem:[%s4555_s13 + $0x128] sm:$0xff]   ;;  %v3768_v47 = vld [vmem:[%s4555_s13 + $0x1f0] sm:$0xff]  }
  0xed   : > { %3477 = vmatpush3.bf16.msra.mxu0 %v3727_v61  ;;  %v3761_v38 = vld [vmem:[%s4555_s13 + $0x1a0] sm:$0xff]   ;;  %v3764_v42 = vld [vmem:[%s4555_s13 + $0x1e8] sm:$0xff]   ;;  %v3769_v48 = vld [vmem:[%s4555_s13 + $0x1b0] sm:$0xff]   ;;  %v1864_v49 = vcombine.high %v4631_v44, %v4631_v44 }
  0xee   : > { %3499 = vmatpush3.bf16.msra.mxu1 %v3728_v62  ;;  %3478 = vmatprep.subr.bf16.mxu0 %v3729_v0  ;;  %v3765_v43 = vld [vmem:[%s4555_s13 + $0x1a8] sm:$0xff]   ;;  %v3770_v50 = vld [vmem:[%s4555_s13 + $0x178] sm:$0xff]   ;;  %v3774_v56 = vld [vmem:[%s4555_s13 + $0x240] sm:$0xff]  }
  0xef   : > { %3500 = vmatprep.subr.bf16.mxu1 %v3730_v1  ;;  %v3771_v51 = vld [vmem:[%s4555_s13 + $0x138] sm:$0xff]   ;;  %v1886_v55 = vrot.slane %v1864_v49, %v4559_v40  ;;  %v3775_v57 = vld [vmem:[%s4555_s13 + $0x200] sm:$0xff]   ;;  %v3778_v62 = vld [vmem:[%s4555_s13 + $0x248] sm:$0xff]  }
  0xf0   : > { %v3772_v53 = vld [vmem:[%s4555_s13 + $0x1f8] sm:$0xff]   ;;  %v3776_v59 = vld [vmem:[%s4555_s13 + $0x2c0] sm:$0xff]   ;;  %v3779_v63 = vld [vmem:[%s4555_s13 + $0x208] sm:$0xff]  }
  0xf1   : > { %3479 = vmatpush3.bf16.msra.mxu0 %v3731_v2  ;;  %v3773_v54 = vld [vmem:[%s4555_s13 + $0x1b8] sm:$0xff]   ;;  %v3777_v60 = vld [vmem:[%s4555_s13 + $0x280] sm:$0xff]   ;;  %v1896_v61 = vcombine.high %v1886_v55, %v1886_v55  ;;  %v3780_v0 = vld [vmem:[%s4555_s13 + $0x2c8] sm:$0xff]  }
  0xf2   : > { %3501 = vmatpush3.bf16.msra.mxu1 %v3732_v3  ;;  %3480 = vmatprep.subr.bf16.mxu0 %v3733_v5  ;;  %v3781_v1 = vld [vmem:[%s4555_s13 + $0x288] sm:$0xff]   ;;  %v3782_v2 = vld [vmem:[%s4555_s13 + $0x250] sm:$0xff]   ;;  %v3789_v9 = vld [vmem:[%s4555_s13 + $0x298] sm:$0xff]  }
  0xf3   : > { %3502 = vmatprep.subr.bf16.mxu1 %v3734_v6  ;;  %v3783_v3 = vld [vmem:[%s4555_s13 + $0x210] sm:$0xff]   ;;  %v3786_v6 = vld [vmem:[%s4555_s13 + $0x258] sm:$0xff]  }
  0xf4   : > { %v3784_v4 = vld [vmem:[%s4555_s13 + $0x2d0] sm:$0xff]   ;;  %v3821_v49 = vld [vmem:[%s4555_s13 + $0x398] sm:$0xff]  }
  0xf5   : > { %3481 = vmatpush3.bf16.msra.mxu0 %v3735_v7  ;;  %v3785_v5 = vld [vmem:[%s4555_s13 + $0x290] sm:$0xff]   ;;  %v3787_v7 = vld [vmem:[%s4555_s13 + $0x218] sm:$0xff]  }
  0xf6   : > { %3503 = vmatpush3.bf16.msra.mxu1 %v3736_v8  ;;  %3482 = vmatprep.subr.bf16.mxu0 %v3737_v10  ;;  %v3788_v8 = vld [vmem:[%s4555_s13 + $0x2d8] sm:$0xff]   ;;  %v3790_v10 = vld [vmem:[%s4555_s13 + $0x260] sm:$0xff]  }
  0xf7   : > { %3504 = vmatprep.subr.bf16.mxu1 %v3738_v12  ;;  %v3792_v12 = vld [vmem:[%s4555_s13 + $0x2e0] sm:$0xff]  }
  0xf9   : > { %3483 = vmatpush3.bf16.msra.mxu0 %v3739_v13  ;;  %v3793_v13 = vld [vmem:[%s4555_s13 + $0x2a0] sm:$0xff]  }
  0xfa   : > { %3505 = vmatpush3.bf16.msra.mxu1 %v3740_v14  ;;  %3512 = vmatprep.subr.bf16.mxu0 %v3742_v17  ;;  %v1849_v14 = vcombine.high %v4622_v37, %v4622_v37  ;;  %v3796_v17 = vld [vmem:[%s4555_s13 + $0x2e8] sm:$0xff]  }
  0xfb   : > { %3534 = vmatprep.subr.bf16.mxu1 %v3744_v19  ;;  %v3810_v37 = vld [vmem:[%s4555_s13 + $0x348] sm:$0xff]  }
  0xfc   : > { %2835 = vmatmul.mubr.bf16.vlgmr.msra.gmra.mrb[0].mxu0 %v1823_v11  ;;  %v3791_v11 = vld [vmem:[%s4555_s13 + $0x220] sm:$0xff]   ;;  %v4673_v19 = vrot.slane %v1849_v14, %v4559_v40  ;;  %v3319_v14 = vld.sshfl [vmem:[%s4772_s0 + $0x10] sm:$0x11 pattern:$0x75316420] }
  0xfd   : > { %2875 = vmatmul.mubr.bf16.vlgmr.msra.gmra.mrb[0].mxu1 %v1845_v16  ;;  %3513 = vmatpush3.bf16.msra.mxu0 %v3743_v18  ;;  %v3795_v16 = vld [vmem:[%s4555_s13 + $0x228] sm:$0xff]  }
  0xfe   : > { %2914 = vmatprep.mubr.bf16.mxu0 %v1844_v15  ;;  %3535 = vmatpush3.bf16.msra.mxu1 %v3745_v20  ;;  %v3794_v15 = vld [vmem:[%s4555_s13 + $0x268] sm:$0xff]   ;;  %v3798_v20 = vld [vmem:[%s4555_s13 + $0x270] sm:$0xff]  }
  0xff   : > { %3514 = vmatprep.subr.bf16.mxu0 %v3746_v22  ;;  %2954 = vmatprep.mubr.bf16.mxu1 %v1848_v21  ;;  %v3797_v18 = vld [vmem:[%s4555_s13 + $0x2a8] sm:$0xff]   ;;  %v3799_v21 = vld [vmem:[%s4555_s13 + $0x230] sm:$0xff]  }
 0x100   : > { %3536 = vmatprep.subr.bf16.mxu1 %v3748_v24  ;;  %v3800_v22 = vld [vmem:[%s4555_s13 + $0x2f0] sm:$0xff]   ;;  %v1865_v24 = vcombine.high %v4673_v19, %v4673_v19 }
 0x101   : > { %3515 = vmatpush3.bf16.msra.mxu0 %v3747_v23  ;;  %v3801_v23 = vld [vmem:[%s4555_s13 + $0x2b0] sm:$0xff]  }
 0x102   : > { %3537 = vmatpush3.bf16.msra.mxu1 %v3749_v25  ;;  %3516 = vmatprep.subr.bf16.mxu0 %v3750_v26  ;;  %v3802_v25 = vld [vmem:[%s4555_s13 + $0x278] sm:$0xff]  }
 0x103   : > { %3538 = vmatprep.subr.bf16.mxu1 %v3752_v28  ;;  %v3803_v26 = vld [vmem:[%s4555_s13 + $0x238] sm:$0xff]  }
 0x104   : > { %v3804_v28 = vld [vmem:[%s4555_s13 + $0x2f8] sm:$0xff]  }
 0x105   : > { %3517 = vmatpush3.bf16.msra.mxu0 %v3751_v27  ;;  %v1872_v27 = vrot.slane %v4631_v44, %v4559_v40  ;;  %v3816_v44 = vld [vmem:[%s4555_s13 + $0x3d0] sm:$0xff]  }
 0x106   : > { %3539 = vmatpush3.bf16.msra.mxu1 %v3753_v29  ;;  %3518 = vmatprep.subr.bf16.mxu0 %v3754_v30  ;;  %v3805_v29 = vld [vmem:[%s4555_s13 + $0x2b8] sm:$0xff]   ;;  %v1893_v30 = vrot.slane %v1865_v24, %v4559_v40 }
 0x107   : > { %3540 = vmatprep.subr.bf16.mxu1 %v3756_v32  ;;  %v3807_v32 = vld [vmem:[%s4555_s13 + $0x300] sm:$0xff]  }
 0x109   : > { %3519 = vmatpush3.bf16.msra.mxu0 %v3755_v31  ;;  %v3806_v31 = vld [vmem:[%s4555_s13 + $0x340] sm:$0xff]  }
 0x10a   : > { %3541 = vmatpush3.bf16.msra.mxu1 %v3757_v33  ;;  %3520 = vmatprep.subr.bf16.mxu0 %v3758_v34  ;;  %v1894_v33 = vcombine.high %v1872_v27, %v1872_v27  ;;  %v3808_v34 = vld [vmem:[%s4555_s13 + $0x3c0] sm:$0xff]  }
 0x10b   : > { %3542 = vmatprep.subr.bf16.mxu1 %v3760_v36  ;;  %v1897_v36 = vcombine.high %v1893_v30, %v1893_v30 }
 0x10d   : > { %3521 = vmatpush3.bf16.msra.mxu0 %v3759_v35  ;;  %v3809_v35 = vld [vmem:[%s4555_s13 + $0x380] sm:$0xff]  }
 0x10e   : > { %3543 = vmatpush3.bf16.msra.mxu1 %v3761_v38  ;;  %3522 = vmatprep.subr.bf16.mxu0 %v3762_v39  ;;  %v3811_v38 = vld [vmem:[%s4555_s13 + $0x308] sm:$0xff]  }
 0x10f   : > { %3544 = vmatprep.subr.bf16.mxu1 %v3764_v42  ;;  %v3812_v39 = vld [vmem:[%s4555_s13 + $0x3c8] sm:$0xff]   ;;  %v3814_v42 = vld [vmem:[%s4555_s13 + $0x350] sm:$0xff]  }
 0x111   : > { %3523 = vmatpush3.bf16.msra.mxu0 %v3763_v41  ;;  %v3813_v41 = vld [vmem:[%s4555_s13 + $0x388] sm:$0xff]  }
 0x112   : > { %3545 = vmatpush3.bf16.msra.mxu1 %v3765_v43  ;;  %3524 = vmatprep.subr.bf16.mxu0 %v3766_v45  ;;  %v3815_v43 = vld [vmem:[%s4555_s13 + $0x310] sm:$0xff]  }
 0x113   : > { %3546 = vmatprep.subr.bf16.mxu1 %v3768_v47  ;;  %v3817_v45 = vld [vmem:[%s4555_s13 + $0x390] sm:$0xff]   ;;  %v3819_v47 = vld [vmem:[%s4555_s13 + $0x318] sm:$0xff]  }
 0x115   : > { %3525 = vmatpush3.bf16.msra.mxu0 %v3767_v46  ;;  %v3818_v46 = vld [vmem:[%s4555_s13 + $0x358] sm:$0xff]  }
 0x116   : > { %3547 = vmatpush3.bf16.msra.mxu1 %v3769_v48  ;;  %3526 = vmatprep.subr.bf16.mxu0 %v3770_v50  ;;  %v3820_v48 = vld [vmem:[%s4555_s13 + $0x3d8] sm:$0xff]   ;;  %v3822_v50 = vld [vmem:[%s4555_s13 + $0x360] sm:$0xff]  }
 0x117   : > { %3548 = vmatprep.subr.bf16.mxu1 %v3772_v53  ;;  %v3825_v53 = vld [vmem:[%s4555_s13 + $0x3a0] sm:$0xff]  }
 0x119   : > { %3527 = vmatpush3.bf16.msra.mxu0 %v3771_v51  ;;  %v3823_v51 = vld [vmem:[%s4555_s13 + $0x320] sm:$0xff]  }
 0x11a   : > { %3549 = vmatpush3.bf16.msra.mxu1 %v3773_v54  ;;  %3556 = vmatprep.subr.bf16.mxu0 %v3774_v56  ;;  %v3826_v54 = vld [vmem:[%s4555_s13 + $0x368] sm:$0xff]  }
 0x11b   : > { %3578 = vmatprep.subr.bf16.mxu1 %v3776_v59  ;;  %v3828_v56 = vld [vmem:[%s4555_s13 + $0x3e8] sm:$0xff]   ;;  %v3831_v59 = vld [vmem:[%s4555_s13 + $0x330] sm:$0xff]  }
 0x11c   : > { %2915 = vmatmul.mubr.bf16.vlgmr.msra.gmra.mrb[4].mxu0 %v1830_v52  ;;  %v3824_v52 = vld [vmem:[%s4555_s13 + $0x3e0] sm:$0xff]  }
 0x11d   : > { %3557 = vmatpush3.bf16.msra.mxu0 %v3775_v57  ;;  %2955 = vmatmul.mubr.bf16.vlgmr.msra.gmra.mrb[4].mxu1 %v1846_v58  ;;  %v3829_v57 = vld [vmem:[%s4555_s13 + $0x3a8] sm:$0xff]   ;;  %v3830_v58 = vld [vmem:[%s4555_s13 + $0x370] sm:$0xff]  }
 0x11e   : > { %2994 = vmatprep.mubr.bf16.mxu0 %v1886_v55  ;;  %3579 = vmatpush3.bf16.msra.mxu1 %v3777_v60  ;;  %v3827_v55 = vld [vmem:[%s4555_s13 + $0x328] sm:$0xff]   ;;  %v3832_v60 = vld [vmem:[%s4555_s13 + $0x3f0] sm:$0xff]  }
 0x11f   : > { %3558 = vmatprep.subr.bf16.mxu0 %v3778_v62  ;;  %3034 = vmatprep.mubr.bf16.mxu1 %v1896_v61  ;;  %v3833_v61 = vld [vmem:[%s4555_s13 + $0x3b0] sm:$0xff]   ;;  %v3834_v62 = vld [vmem:[%s4555_s13 + $0x378] sm:$0xff]  }
 0x120   : > { %3580 = vmatprep.subr.bf16.mxu1 %v3780_v0  ;;  %v1879_v0 = vrot.slane %v4673_v19, %v4559_v40  ;;  %v3851_v19 = vld [vmem:[%s4555_s13 + $0x470] sm:$0xff]  }
 0x121   : > { %3559 = vmatpush3.bf16.msra.mxu0 %v3779_v63  ;;  %v3835_v63 = vld [vmem:[%s4555_s13 + $0x338] sm:$0xff]  }
 0x122   : > { %3581 = vmatpush3.bf16.msra.mxu1 %v3781_v1  ;;  %3560 = vmatprep.subr.bf16.mxu0 %v3782_v2  ;;  %v3836_v1 = vld [vmem:[%s4555_s13 + $0x3f8] sm:$0xff]  }
 0x123   : > { %3582 = vmatprep.subr.bf16.mxu1 %v3784_v4  ;;  %v3838_v2 = vld [vmem:[%s4555_s13 + $0x3b8] sm:$0xff]   ;;  %v3840_v4 = vld [vmem:[%s4555_s13 + $0x400] sm:$0xff]  }
 0x125   : > { %3561 = vmatpush3.bf16.msra.mxu0 %v3783_v3  ;;  %v3839_v3 = vld [vmem:[%s4555_s13 + $0x440] sm:$0xff]  }
 0x126   : > { %3583 = vmatpush3.bf16.msra.mxu1 %v3785_v5  ;;  %3562 = vmatprep.subr.bf16.mxu0 %v3786_v6  ;;  %v1895_v5 = vcombine.high %v1879_v0, %v1879_v0  ;;  %v3841_v6 = vld [vmem:[%s4555_s13 + $0x448] sm:$0xff]  }
 0x127   : > { %3584 = vmatprep.subr.bf16.mxu1 %v3788_v8  ;;  %v3843_v8 = vld [vmem:[%s4555_s13 + $0x450] sm:$0xff]  }
 0x129   : > { %3563 = vmatpush3.bf16.msra.mxu0 %v3787_v7  ;;  %v3842_v7 = vld [vmem:[%s4555_s13 + $0x408] sm:$0xff]  }
 0x12a   : > { %3585 = vmatpush3.bf16.msra.mxu1 %v3789_v9  ;;  %3564 = vmatprep.subr.bf16.mxu0 %v3790_v10  ;;  %v3844_v9 = vld [vmem:[%s4555_s13 + $0x410] sm:$0xff]   ;;  %v3845_v10 = vld [vmem:[%s4555_s13 + $0x458] sm:$0xff]  }
 0x12b   : > { %3586 = vmatprep.subr.bf16.mxu1 %v3792_v12  ;;  %v3847_v12 = vld [vmem:[%s4555_s13 + $0x460] sm:$0xff]  }
 0x12d   : > { %3565 = vmatpush3.bf16.msra.mxu0 %v3791_v11  ;;  %v3846_v11 = vld [vmem:[%s4555_s13 + $0x418] sm:$0xff]  }
 0x12e   : > { %3587 = vmatpush3.bf16.msra.mxu1 %v3793_v13  ;;  %3566 = vmatprep.subr.bf16.mxu0 %v3794_v15  ;;  %v3848_v13 = vld [vmem:[%s4555_s13 + $0x420] sm:$0xff]   ;;  %v3849_v15 = vld [vmem:[%s4555_s13 + $0x468] sm:$0xff]  }
 0x12f   : > { %3588 = vmatprep.subr.bf16.mxu1 %v3796_v17 }
 0x131   : > { %3567 = vmatpush3.bf16.msra.mxu0 %v3795_v16  ;;  %v1905_v16 = vcombine.high %v3319_v14, %v3319_v14 }
 0x132   : > { %3589 = vmatpush3.bf16.msra.mxu1 %v3797_v18  ;;  %3568 = vmatprep.subr.bf16.mxu0 %v3798_v20  ;;  %v3850_v18 = vld [vmem:[%s4555_s13 + $0x428] sm:$0xff]   ;;  %v3852_v20 = vld [vmem:[%s4555_s13 + $0x430] sm:$0xff]  }
 0x133   : > { %3590 = vmatprep.subr.bf16.mxu1 %v3800_v22  ;;  %v1919_v17 = vrot.slane %v1905_v16, %v4559_v40  ;;  %v3854_v22 = vld [vmem:[%s4555_s13 + $0x438] sm:$0xff]  }
 0x135   : > { %3569 = vmatpush3.bf16.msra.mxu0 %v3799_v21  ;;  %v3853_v21 = vld [vmem:[%s4555_s13 + $0x478] sm:$0xff]  }
 0x136   : > { %3591 = vmatpush3.bf16.msra.mxu1 %v3801_v23  ;;  %3570 = vmatprep.subr.bf16.mxu0 %v3802_v25  ;;  %v1912_v23 = vrot.slane %v3319_v14, %v4559_v40 }
 0x137   : > { %3592 = vmatprep.subr.bf16.mxu1 %v3804_v28 }
 0x139   : > { %3571 = vmatpush3.bf16.msra.mxu0 %v3803_v26 }
 0x13a   : > { %3593 = vmatpush3.bf16.msra.mxu1 %v3805_v29  ;;  %3600 = vmatprep.subr.bf16.mxu0 %v3806_v31 }
 0x13b   : > { %3622 = vmatprep.subr.bf16.mxu1 %v3808_v34 }
 0x13c   : > { %2995 = vmatmul.mubr.bf16.vlgmr.msra.gmra.mrb[8].mxu0 %v1872_v27 }
 0x13d   : > { %3601 = vmatpush3.bf16.msra.mxu0 %v3807_v32  ;;  %3035 = vmatmul.mubr.bf16.vlgmr.msra.gmra.mrb[8].mxu1 %v1894_v33 }
 0x13e   : > { %3074 = vmatprep.mubr.bf16.mxu0 %v1893_v30  ;;  %3623 = vmatpush3.bf16.msra.mxu1 %v3809_v35 }
 0x13f   : > { %3602 = vmatprep.subr.bf16.mxu0 %v3810_v37  ;;  %3114 = vmatprep.mubr.bf16.mxu1 %v1897_v36 }
 0x140   : > { %3624 = vmatprep.subr.bf16.mxu1 %v3812_v39 }
 0x141   : > { %3603 = vmatpush3.bf16.msra.mxu0 %v3811_v38 }
 0x142   : > { %3625 = vmatpush3.bf16.msra.mxu1 %v3813_v41  ;;  %3604 = vmatprep.subr.bf16.mxu0 %v3814_v42 }
 0x143   : > { %3626 = vmatprep.subr.bf16.mxu1 %v3816_v44 }
 0x145   : > { %3605 = vmatpush3.bf16.msra.mxu0 %v3815_v43 }
 0x146   : > { %3627 = vmatpush3.bf16.msra.mxu1 %v3817_v45  ;;  %3606 = vmatprep.subr.bf16.mxu0 %v3818_v46 }
 0x147   : > { %3628 = vmatprep.subr.bf16.mxu1 %v3820_v48 }
 0x149   : > { %3607 = vmatpush3.bf16.msra.mxu0 %v3819_v47 }
 0x14a   : > { %3629 = vmatpush3.bf16.msra.mxu1 %v3821_v49  ;;  %3608 = vmatprep.subr.bf16.mxu0 %v3822_v50 }
 0x14b   : > { %3630 = vmatprep.subr.bf16.mxu1 %v3824_v52 }
 0x14d   : > { %3609 = vmatpush3.bf16.msra.mxu0 %v3823_v51 }
 0x14e   : > { %3631 = vmatpush3.bf16.msra.mxu1 %v3825_v53  ;;  %3610 = vmatprep.subr.bf16.mxu0 %v3826_v54 }
 0x14f   : > { %3632 = vmatprep.subr.bf16.mxu1 %v3828_v56 }
 0x151   : > { %3611 = vmatpush3.bf16.msra.mxu0 %v3827_v55 }
 0x152   : > { %3633 = vmatpush3.bf16.msra.mxu1 %v3829_v57  ;;  %3612 = vmatprep.subr.bf16.mxu0 %v3830_v58 }
 0x153   : > { %3634 = vmatprep.subr.bf16.mxu1 %v3832_v60 }
 0x155   : > { %3613 = vmatpush3.bf16.msra.mxu0 %v3831_v59 }
 0x156   : > { %3635 = vmatpush3.bf16.msra.mxu1 %v3833_v61  ;;  %3614 = vmatprep.subr.bf16.mxu0 %v3834_v62 }
 0x157   : > { %3636 = vmatprep.subr.bf16.mxu1 %v3836_v1 }
 0x159   : > { %3615 = vmatpush3.bf16.msra.mxu0 %v3835_v63 }
 0x15a   : > { %3637 = vmatpush3.bf16.msra.mxu1 %v3838_v2  ;;  %3644 = vmatprep.subr.bf16.mxu0 %v3839_v3 }
 0x15c   : > { %3075 = vmatmul.mubr.bf16.vlgmr.msra.gmra.mrb[12].mxu0 %v1879_v0 }
 0x15d   : > { %3645 = vmatpush3.bf16.msra.mxu0 %v3840_v4  ;;  %3115 = vmatmul.mubr.bf16.vlgmr.msra.gmra.mrb[12].mxu1 %v1895_v5 }
 0x15e   : > { %3646 = vmatprep.subr.bf16.mxu0 %v3841_v6  ;;  %3154 = vmatprep.mubr.bf16.mxu0 %v1919_v17 }
 0x161   : > { %3647 = vmatpush3.bf16.msra.mxu0 %v3842_v7 }
 0x162   : > { %3648 = vmatprep.subr.bf16.mxu0 %v3843_v8 }
 0x165   : > { %3649 = vmatpush3.bf16.msra.mxu0 %v3844_v9 }
 0x166   : > { %3650 = vmatprep.subr.bf16.mxu0 %v3845_v10 }
 0x169   : > { %3651 = vmatpush3.bf16.msra.mxu0 %v3846_v11  ;;  %v3464_v11 = vld [vmem:[%s1487_s25] ss:$0 sm:$0xff] }
 0x16a   : > { %3652 = vmatprep.subr.bf16.mxu0 %v3847_v12  ;;  %v3178_v12 = vld [vmem:[%s1497_s29] sm:$0x1] }
 0x16b   : > { %v3179_v17 = vunpack.c.l.bf16 %v3178_v12 }
 0x16d   : > { %3653 = vmatpush3.bf16.msra.mxu0 %v3848_v13 }
 0x16e   : > { %3654 = vmatprep.subr.bf16.mxu0 %v3849_v15  ;;  %v3465_v15 = vld [vmem:[%s1490_s7] ss:$0 sm:$0xff] }
 0x171   : > { %3655 = vmatpush3.bf16.msra.mxu0 %v3850_v18 }
 0x172   : > { %3656 = vmatprep.subr.bf16.mxu0 %v3851_v19 }
 0x175   : > { %3657 = vmatpush3.bf16.msra.mxu0 %v3852_v20 }
 0x176   : > { %3658 = vmatprep.subr.bf16.mxu0 %v3853_v21 }
 0x179   : > { %3659 = vmatpush3.bf16.msra.mxu0 %v3854_v22 }
 0x17c   : > { %3155 = vmatmul.mubr.bf16.vlgmr.msra.gmra.mrb[16].mxu0 %v1912_v23 }
 0x1cf   : > { %v3484_v24 = vpop.f32.mrb[0].mxu0 }
 0x1d0   : > { %v3506_v25 = vpop.f32.mrb[0].mxu1  ;;  %v3485_v26 = vpop.f32.mrb[1].mxu0 }
 0x1d1   : > { %v3486_v27 = vadd.f32 %v3485_v26, %v3484_v24  ;;  %v3507_v28 = vpop.f32.mrb[1].mxu1  ;;  %v3487_v29 = vpop.f32.mrb[2].mxu0 }
 0x1d2   : > { %v3508_v30 = vadd.f32 %v3507_v28, %v3506_v25  ;;  %v3488_v31 = vpop.f32.mrb[3].mxu0  ;;  %v3509_v32 = vpop.f32.mrb[2].mxu1 }
 0x1d3   : > { %v3510_v33 = vpop.f32.mrb[3].mxu1 }
 0x1d4   : > { %v2877_v34 = vadd.f32 %v3508_v30, %v3486_v27 }
 0x1ef   : > { %v3528_v35 = vpop.f32.mrb[4].mxu0 }
 0x1f0   : > { %v3529_v36 = vpop.f32.mrb[5].mxu0  ;;  %v3550_v39 = vpop.f32.mrb[4].mxu1 }
 0x1f1   : > { %v3530_v37 = vadd.f32 %v3529_v36, %v3528_v35  ;;  %v3531_v38 = vpop.f32.mrb[6].mxu0  ;;  %v3551_v40 = vpop.f32.mrb[5].mxu1 }
 0x1f2   : > { %v3532_v41 = vpop.f32.mrb[7].mxu0  ;;  %v3552_v43 = vadd.f32 %v3551_v40, %v3550_v39  ;;  %v3553_v44 = vpop.f32.mrb[6].mxu1 }
 0x1f3   : > { %v2917_v42 = vadd.f32 %v3530_v37, %v2877_v34  ;;  %v3554_v45 = vpop.f32.mrb[7].mxu1 }
 0x1f5   : > { %v2957_v46 = vadd.f32 %v3552_v43, %v2917_v42 }
 0x20f   : > { %v3572_v47 = vpop.f32.mrb[8].mxu0 }
 0x210   : > { %v3573_v48 = vpop.f32.mrb[9].mxu0  ;;  %v3594_v51 = vpop.f32.mrb[8].mxu1 }
 0x211   : > { %v3574_v49 = vadd.f32 %v3573_v48, %v3572_v47  ;;  %v3575_v50 = vpop.f32.mrb[10].mxu0  ;;  %v3595_v53 = vpop.f32.mrb[9].mxu1 }
 0x212   : > { %v3576_v52 = vpop.f32.mrb[11].mxu0  ;;  %v3596_v55 = vadd.f32 %v3595_v53, %v3594_v51  ;;  %v3597_v56 = vpop.f32.mrb[10].mxu1 }
 0x213   : > { %v2997_v54 = vadd.f32 %v3574_v49, %v2957_v46  ;;  %v3598_v57 = vpop.f32.mrb[11].mxu1 }
 0x215   : > { %v3037_v58 = vadd.f32 %v3596_v55, %v2997_v54 }
 0x22f   : > { %v3616_v59 = vpop.f32.mrb[12].mxu0 }
 0x230   : > { %v3617_v60 = vpop.f32.mrb[13].mxu0  ;;  %v3638_v63 = vpop.f32.mrb[12].mxu1 }
 0x231   : > { %v3618_v61 = vadd.f32 %v3617_v60, %v3616_v59  ;;  %v3619_v62 = vpop.f32.mrb[14].mxu0  ;;  %v3639_v1 = vpop.f32.mrb[13].mxu1 }
 0x232   : > { %v3620_v0 = vpop.f32.mrb[15].mxu0  ;;  %v3640_v3 = vadd.f32 %v3639_v1, %v3638_v63  ;;  %v3641_v4 = vpop.f32.mrb[14].mxu1 }
 0x233   : > { %v3077_v2 = vadd.f32 %v3618_v61, %v3037_v58  ;;  %v3642_v5 = vpop.f32.mrb[15].mxu1 }
 0x235   : > { %v3117_v6 = vadd.f32 %v3640_v3, %v3077_v2 }
 0x24f   : > { %v3660_v7 = vpop.f32.mrb[16].mxu0 }
 0x250   : > { %v3661_v8 = vpop.f32.mrb[17].mxu0 }
 0x251   : > { %v3662_v9 = vadd.f32 %v3661_v8, %v3660_v7  ;;  %v3663_v10 = vpop.f32.mrb[18].mxu0 }
 0x252   : > { %v3664_v13 = vpop.f32.mrb[19].mxu0 }
 0x253   : > { %v3157_v14 = vadd.f32 %v3662_v9, %v3117_v6 }
 0x255   : > { %v3169_v16 = vmul.f32 %v3464_v11, %v3157_v14 }
 0x257   : > { %v3177_v18 = vadd.f32 %v3465_v15, %v3169_v16 }
 0x259   : > { %v3180_v19 = vadd.f32 %v3179_v17, %v3177_v18 }
 0x25b   : > { %vm3181_vm0 = vcmp.ge.f32.partialorder %v3180_v19, 0.0  ;;  %v3182_v20 = vmul.f32 0.01, %v3180_v19 }
 0x25d   : > { %v3183_v21 = vsel %vm3181_vm0, %v3180_v19, %v3182_v20 }
 0x25e   : > { %v3184_v22 = vpack.c.bf16 %v3183_v21, %v3183_v21 }
 0x260   : > { %3185 = vst [vmem:[%s1504_s10] sm:$0x1] %v3184_v22 }
 0x261 PF: > { %s15_s22 = sadd.s32 1, %s3893_s22   ;;  %s4778_s18 = smov %s3881_s19 }
 0x262   : > { %p12_p10 = scmp.ge.s32.totalorder %s15_s22, 4   ;;  %s4779_s19 = smov %s3961_s26 }
 0x263   : > { %s4780_s20 = smov %s3889_s21  ;;  %s4781_s21 = smov %s4783_s23 }
 0x264   :  { %14 = sbr.rel (!%p12_p10) target bundleno = 3 (0x3), region = 128 }

</bundles_post_ra>
